<compile_context>
chip_gen: v5e
topology: v5e:2x2
jax: 0.10.0
libtpu: 0.0.40
codegen_flags: <defaults>
</compile_context>

<pallas_src>
import math

import jax
import jax.numpy as jnp
from jax import lax
from jax.experimental import pallas as pl
from jax.experimental.pallas import tpu as pltpu

jax.config.update("jax_default_matmul_precision", "float32")

# ----------------------- small synthetic BERT config -----------------------
BATCH = 2
SEQ = 8
HIDDEN = 32
N_HEADS = 4
HEAD_DIM = HIDDEN // N_HEADS
INTERMEDIATE = 64
N_LAYERS = 2
VOCAB = 100
TYPE_VOCAB = 2
MAX_POS = SEQ
NUM_CLASSES = 2
LN_EPS = 1e-12
DROPOUT_P = 0.3
LANE = 128                      # lane-dense padding target (vreg / MXU width)
NHS = N_HEADS * SEQ             # rows of the all-heads score block

_SQRT_2_OVER_PI = 0.7978845608028654


def _gelu(x):
    # tanh-approximation GELU (EUP tanh; avoids relying on an erf lowering).
    return 0.5 * x * (1.0 + jnp.tanh(_SQRT_2_OVER_PI * (x + 0.044715 * x * x * x)))


def _layernorm(x, g, b):
    mean = jnp.mean(x, axis=-1, keepdims=True)
    var = jnp.mean(jnp.square(x - mean), axis=-1, keepdims=True)
    return (x - mean) * lax.rsqrt(var + LN_EPS) * g + b


# Rows of the per-layer (8, LANE) bias/LN slab.
R_BQKV, R_BO, R_LN1G, R_LN1B, R_B1, R_B2, R_LN2G, R_LN2B = range(8)
# Rows of the global (8, LANE) slab.
G_EMBG, G_EMBB, G_POOLB, G_CLSB = range(4)


# --------------------------- the single fused kernel ------------------------
def _bert_kernel(x_ref, kb_ref, drop_ref, rep_ref, rept_ref, hm_ref,
                 slab_ref, pool_w_ref, cls_w_ref,
                 wqkv_ref, wo_ref, w1_ref, w2_ref, vec_ref,
                 out_ref):
    # One grid step == one batch row (grid axis is "parallel" -> v7x 2nd core).
    x = x_ref[0]                                          # (SEQ, HIDDEN)
    slab = slab_ref[...]                                  # (8, LANE) globals
    key_bias = kb_ref[0]                                  # (1, SEQ)
    rep = rep_ref[...]                                    # (NHS, SEQ)
    rept = rept_ref[...]                                  # (SEQ, NHS)
    hm = hm_ref[...]                                      # (NHS, HIDDEN)
    scale = 1.0 / math.sqrt(HEAD_DIM)

    # Embedding LayerNorm.
    h = _layernorm(x, slab[G_EMBG:G_EMBG + 1, :HIDDEN],
                   slab[G_EMBB:G_EMBB + 1, :HIDDEN])

    # Statically unrolled encoder: all weights resident, no per-layer grid step.
    for l in range(N_LAYERS):
        vec = vec_ref[l]                                  # (8, LANE) per-layer slab

        # Fused lane-dense QKV projection: one HIDDEN -> 128 matmul.
        qkv = (jnp.dot(h, wqkv_ref[l], preferred_element_type=jnp.float32)
               + vec[R_BQKV:R_BQKV + 1, :])
        q = qkv[:, 0 * HIDDEN:1 * HIDDEN] * scale
        k = qkv[:, 1 * HIDDEN:2 * HIDDEN]
        v = qkv[:, 2 * HIDDEN:3 * HIDDEN]

        # All heads in one dot: replicate queries per head (rep) and mask each
        # head's hidden columns (hm) so one (NHS, SEQ) score tile holds every
        # head's scores.  One softmax, one dot back, one reassembly dot.
        q_blk = jnp.dot(rep, q, preferred_element_type=jnp.float32) * hm
        s = jnp.dot(q_blk, k.T, preferred_element_type=jnp.float32) + key_bias
        s = s - jnp.max(s, axis=-1, keepdims=True)
        p = jnp.exp(s)
        p = p * pl.reciprocal(jnp.sum(p, axis=-1, keepdims=True), approx=True)
        ctx_blk = jnp.dot(p, v, preferred_element_type=jnp.float32) * hm
        ctx = jnp.dot(rept, ctx_blk, preferred_element_type=jnp.float32)

        attn_out = (jnp.dot(ctx, wo_ref[l], preferred_element_type=jnp.float32)
                    + vec[R_BO:R_BO + 1, :HIDDEN])
        h1 = _layernorm(attn_out + h, vec[R_LN1G:R_LN1G + 1, :HIDDEN],
                        vec[R_LN1B:R_LN1B + 1, :HIDDEN])

        # FFN, intermediate zero-padded 64 -> 128 lanes.
        f = (jnp.dot(h1, w1_ref[l], preferred_element_type=jnp.float32)
             + vec[R_B1:R_B1 + 1, :])
        f = _gelu(f)
        f = (jnp.dot(f, w2_ref[l], preferred_element_type=jnp.float32)
             + vec[R_B2:R_B2 + 1, :HIDDEN])
        h = _layernorm(f + h1, vec[R_LN2G:R_LN2G + 1, :HIDDEN],
                       vec[R_LN2B:R_LN2B + 1, :HIDDEN])

    # Pooler (tanh on CLS == row 0 of this batch) -> dropout -> classifier.
    cls = h[0:1, :]                                       # (1, HIDDEN)
    pooled = jnp.tanh(
        jnp.dot(cls, pool_w_ref[...], preferred_element_type=jnp.float32)
        + slab[G_POOLB:G_POOLB + 1, :HIDDEN])
    dropped = pooled * drop_ref[0]                        # pre-scaled keep mask
    logits = (jnp.dot(dropped, cls_w_ref[...], preferred_element_type=jnp.float32)
              + slab[G_CLSB:G_CLSB + 1, :])               # (1, LANE), lane-dense
    out_ref[...] = jnp.broadcast_to(logits, (1, 8, LANE)).astype(out_ref.dtype)


def bert_sentiment_pallas(packed, x_emb, key_bias, drop_mask, rep, rep_t, headmask):
    def const(shape):
        nd = len(shape)
        return pl.BlockSpec(shape, lambda b, _nd=nd: (0,) * _nd)

    in_specs = [
        pl.BlockSpec((1, SEQ, HIDDEN), lambda b: (b, 0, 0)),   # x_emb
        pl.BlockSpec((1, 1, SEQ), lambda b: (b, 0, 0)),        # key padding bias
        pl.BlockSpec((1, 1, HIDDEN), lambda b: (b, 0, 0)),     # dropout keep mask
        const((NHS, SEQ)),                                     # rep
        const((SEQ, NHS)),                                     # rep_t
        const((NHS, HIDDEN)),                                  # head mask
        const((8, LANE)),                                      # global slab
        const((HIDDEN, HIDDEN)),                               # pool_w
        const((HIDDEN, LANE)),                                 # cls_w (padded)
        const((N_LAYERS, HIDDEN, LANE)),                       # wqkv (padded)
        const((N_LAYERS, HIDDEN, HIDDEN)),                     # wo
        const((N_LAYERS, HIDDEN, LANE)),                       # w1 (padded)
        const((N_LAYERS, LANE, HIDDEN)),                       # w2 (padded rows)
        const((N_LAYERS, 8, LANE)),                            # per-layer vec slab
    ]

    out = pl.pallas_call(
        _bert_kernel,
        out_shape=jax.ShapeDtypeStruct((BATCH, 8, LANE), jnp.float32),
        grid=(BATCH,),
        in_specs=in_specs,
        out_specs=pl.BlockSpec((1, 8, LANE), lambda b: (b, 0, 0)),
        compiler_params=pltpu.CompilerParams(
            dimension_semantics=("parallel",)),     # batch rows are independent
    )(x_emb, key_bias, drop_mask, rep, rep_t, headmask,
      packed["slab"], packed["pool_w"], packed["cls_w"],
      packed["wqkv"], packed["wo"], packed["w1"], packed["w2"], packed["vec"])
    return out[:, 0, :NUM_CLASSES]


# ------------------------------ parameters ----------------------------------
def init_params(key):
    keys = iter(jax.random.split(key, 64))

    def w(shape):
        return jax.random.normal(next(keys), shape, jnp.float32) * 0.02

    zeros = lambda s: jnp.zeros(s, jnp.float32)
    ones = lambda s: jnp.ones(s, jnp.float32)

    params = {
        "word_emb": w((VOCAB, HIDDEN)),
        "pos_emb": w((MAX_POS, HIDDEN)),
        "type_emb": w((TYPE_VOCAB, HIDDEN)),
        "emb_ln_g": ones((HIDDEN,)), "emb_ln_b": zeros((HIDDEN,)),
        "layers": [],
        "pool_w": w((HIDDEN, HIDDEN)), "pool_b": zeros((HIDDEN,)),
        "cls_w": w((HIDDEN, NUM_CLASSES)), "cls_b": zeros((NUM_CLASSES,)),
    }
    for _ in range(N_LAYERS):
        params["layers"].append({
            "wq": w((HIDDEN, HIDDEN)), "bq": zeros((HIDDEN,)),
            "wk": w((HIDDEN, HIDDEN)), "bk": zeros((HIDDEN,)),
            "wv": w((HIDDEN, HIDDEN)), "bv": zeros((HIDDEN,)),
            "wo": w((HIDDEN, HIDDEN)), "bo": zeros((HIDDEN,)),
            "ln1_g": ones((HIDDEN,)), "ln1_b": zeros((HIDDEN,)),
            "w1": w((HIDDEN, INTERMEDIATE)), "b1": zeros((INTERMEDIATE,)),
            "w2": w((INTERMEDIATE, HIDDEN)), "b2": zeros((HIDDEN,)),
            "ln2_g": ones((HIDDEN,)), "ln2_b": zeros((HIDDEN,)),
        })
    return params


def pack_params(p):
    """Stack per-layer weights as [L, ...], pad to 128 lanes, pack the small
    per-layer vectors into one (8, LANE) slab per layer."""
    def pad_cols(a, n):
        return jnp.pad(a, ((0, 0), (0, n - a.shape[1])))

    def pad_rows(a, n):
        return jnp.pad(a, ((0, n - a.shape[0]), (0, 0)))

    def padded_row(v, n=LANE):
        return jnp.pad(v, (0, n - v.shape[0]))

    layers = p["layers"]

    vec_all = jnp.stack([jnp.stack([
        padded_row(jnp.concatenate([l["bq"], l["bk"], l["bv"]])),   # R_BQKV
        padded_row(l["bo"]),                                        # R_BO
        padded_row(l["ln1_g"]),                                     # R_LN1G
        padded_row(l["ln1_b"]),                                     # R_LN1B
        padded_row(l["b1"]),                                        # R_B1
        padded_row(l["b2"]),                                        # R_B2
        padded_row(l["ln2_g"]),                                     # R_LN2G
        padded_row(l["ln2_b"]),                                     # R_LN2B
    ]) for l in layers])                                            # (L, 8, LANE)

    slab = jnp.stack([
        padded_row(p["emb_ln_g"]),     # G_EMBG
        padded_row(p["emb_ln_b"]),     # G_EMBB
        padded_row(p["pool_b"]),       # G_POOLB
        padded_row(p["cls_b"]),        # G_CLSB
        jnp.zeros((LANE,), jnp.float32),
        jnp.zeros((LANE,), jnp.float32),
        jnp.zeros((LANE,), jnp.float32),
        jnp.zeros((LANE,), jnp.float32),
    ])                                                              # (8, LANE)

    return {
        "slab": slab,
        "pool_w": p["pool_w"],
        "cls_w": pad_cols(p["cls_w"], LANE),
        "wqkv": jnp.stack([pad_cols(jnp.concatenate(
            [l["wq"], l["wk"], l["wv"]], axis=1), LANE) for l in layers]),
        "wo": jnp.stack([l["wo"] for l in layers]),
        "w1": jnp.stack([pad_cols(l["w1"], LANE) for l in layers]),
        "w2": jnp.stack([pad_rows(l["w2"], LANE) for l in layers]),
        "vec": vec_all,
    }


# ------------------------------ forward pass --------------------------------
def sentiment_forward(params, input_ids, attention_mask, tt_ids, drop_mask=None):
    B, S = input_ids.shape

    # Embedding gathers stay in plain JAX (tiny tables, pure glue); everything
    # downstream runs inside a single fused pallas_call.
    pos = jnp.arange(S, dtype=jnp.int32)
    x_emb = (params["word_emb"][input_ids]
             + params["pos_emb"][pos][None, :, :]
             + params["type_emb"][tt_ids]).astype(jnp.float32)      # (B,S,H)

    key_bias = ((1.0 - attention_mask.astype(jnp.float32)) * -10000.0
                ).reshape(B, 1, S)

    if drop_mask is None:                    # eval(): dropout is the identity
        drop_mask = jnp.ones((B, HIDDEN), jnp.float32)
    drop_mask = drop_mask.reshape(B, 1, HIDDEN)

    # Head bookkeeping constants (built once host-side):
    #   rep[h*S+i, j]  = 1 iff j == i      (replicate queries per head)
    #   hm[h*S+i, d]   = 1 iff d in head h (select head-h hidden columns)
    row = jnp.arange(NHS)
    rep = (row[:, None] % SEQ == jnp.arange(SEQ)[None, :]).astype(jnp.float32)
    rep_t = rep.T
    headmask = ((row[:, None] // SEQ)
                == (jnp.arange(HIDDEN)[None, :] // HEAD_DIM)).astype(jnp.float32)

    packed = pack_params(params)
    return bert_sentiment_pallas(packed, x_emb, key_bias, drop_mask,
                                 rep, rep_t, headmask)


# -------------------------- pure-JAX reference -------------------------------
def _reference_forward(params, input_ids, attention_mask, tt_ids, drop_mask):
    B, S = input_ids.shape
    pos = jnp.arange(S, dtype=jnp.int32)
    x = (params["word_emb"][input_ids]
         + params["pos_emb"][pos][None, :, :]
         + params["type_emb"][tt_ids])
    h = _layernorm(x, params["emb_ln_g"], params["emb_ln_b"])
    bias = ((1.0 - attention_mask.astype(jnp.float32)) * -10000.0)[:, None, None, :]
    for layer in params["layers"]:
        def heads(t):
            return t.reshape(B, S, N_HEADS, HEAD_DIM).transpose(0, 2, 1, 3)
        q = heads(h @ layer["wq"] + layer["bq"]) / math.sqrt(HEAD_DIM)
        k = heads(h @ layer["wk"] + layer["bk"])
        v = heads(h @ layer["wv"] + layer["bv"])
        s = jnp.einsum("bhqd,bhkd->bhqk", q, k) + bias
        p = jax.nn.softmax(s, axis=-1)
        ctx = jnp.einsum("bhqk,bhkd->bhqd", p, v).transpose(0, 2, 1, 3)
        ctx = ctx.reshape(B, S, HIDDEN)
        h1 = _layernorm(ctx @ layer["wo"] + layer["bo"] + h,
                        layer["ln1_g"], layer["ln1_b"])
        f = _gelu(h1 @ layer["w1"] + layer["b1"])
        f = f @ layer["w2"] + layer["b2"]
        h = _layernorm(f + h1, layer["ln2_g"], layer["ln2_b"])
    pooled = jnp.tanh(h[:, 0, :] @ params["pool_w"] + params["pool_b"])
    return (pooled * drop_mask) @ params["cls_w"] + params["cls_b"]


# --------------------------------- main --------------------------------------
if __name__ == "__main__":
    key = jax.random.PRNGKey(0)
    pkey, ikey, dkey = jax.random.split(key, 3)

    params = init_params(pkey)

    input_ids = jax.random.randint(ikey, (BATCH, SEQ), 0, VOCAB, dtype=jnp.int32)
    attention_mask = jnp.ones((BATCH, SEQ), jnp.float32).at[1, SEQ - 2:].set(0.0)
    tt_ids = jnp.zeros((BATCH, SEQ), jnp.int32)

    # Training-mode dropout(0.3): pre-scaled Bernoulli keep mask (host-side RNG,
    # since the on-chip PRNG has no interpret/CPU lowering).  Pass None for eval.
    keep = jax.random.bernoulli(dkey, 1.0 - DROPOUT_P, (BATCH, HIDDEN))
    drop_mask = keep.astype(jnp.float32) / (1.0 - DROPOUT_P)

    logits = sentiment_forward(params, input_ids, attention_mask, tt_ids, drop_mask)
    logits = jax.block_until_ready(logits)

    ref = _reference_forward(params, input_ids, attention_mask, tt_ids, drop_mask)
    assert logits.shape == (BATCH, NUM_CLASSES)
    assert bool(jnp.all(jnp.isfinite(logits)))
    assert bool(jnp.allclose(logits, ref, atol=5e-3, rtol=5e-3)), (logits, ref)
    print("KERNEL_OK")
</pallas_src>

<mosaic_0001>
module attributes {stable_mosaic.version = 11 : i64} {
  func.func @_bert_kernel(%arg0: i32, %arg1: memref<1x8x32xf32, #tpu.memory_space<vmem>>, %arg2: memref<1x1x8xf32, #tpu.memory_space<vmem>>, %arg3: memref<1x1x32xf32, #tpu.memory_space<vmem>>, %arg4: memref<32x8xf32, #tpu.memory_space<vmem>>, %arg5: memref<8x32xf32, #tpu.memory_space<vmem>>, %arg6: memref<32x32xf32, #tpu.memory_space<vmem>>, %arg7: memref<8x128xf32, #tpu.memory_space<vmem>>, %arg8: memref<32x32xf32, #tpu.memory_space<vmem>>, %arg9: memref<32x128xf32, #tpu.memory_space<vmem>>, %arg10: memref<2x32x128xf32, #tpu.memory_space<vmem>>, %arg11: memref<2x32x32xf32, #tpu.memory_space<vmem>>, %arg12: memref<2x32x128xf32, #tpu.memory_space<vmem>>, %arg13: memref<2x128x32xf32, #tpu.memory_space<vmem>>, %arg14: memref<2x8x128xf32, #tpu.memory_space<vmem>>, %arg15: memref<1x8x128xf32, #tpu.memory_space<vmem>>) attributes {dimension_semantics = [#tpu.dimension_semantics<parallel>], iteration_bounds = array<i64: 2>, scalar_prefetch = 0 : i64, scratch_operands = 0 : i64, tpu.core_type = #tpu.core_type<tc>, window_params = [{transform_indices = @transform_0, window_bounds = array<i64: 1, 8, 32>}, {transform_indices = @transform_1, window_bounds = array<i64: 1, 1, 8>}, {transform_indices = @transform_2, window_bounds = array<i64: 1, 1, 32>}, {pipeline_mode = #tpu.pipeline_mode<synchronous>, transform_indices = @transform_3, window_bounds = array<i64: 32, 8>}, {pipeline_mode = #tpu.pipeline_mode<synchronous>, transform_indices = @transform_4, window_bounds = array<i64: 8, 32>}, {pipeline_mode = #tpu.pipeline_mode<synchronous>, transform_indices = @transform_5, window_bounds = array<i64: 32, 32>}, {pipeline_mode = #tpu.pipeline_mode<synchronous>, transform_indices = @transform_6, window_bounds = array<i64: 8, 128>}, {pipeline_mode = #tpu.pipeline_mode<synchronous>, transform_indices = @transform_7, window_bounds = array<i64: 32, 32>}, {pipeline_mode = #tpu.pipeline_mode<synchronous>, transform_indices = @transform_8, window_bounds = array<i64: 32, 128>}, {pipeline_mode = #tpu.pipeline_mode<synchronous>, transform_indices = @transform_9, window_bounds = array<i64: 2, 32, 128>}, {pipeline_mode = #tpu.pipeline_mode<synchronous>, transform_indices = @transform_10, window_bounds = array<i64: 2, 32, 32>}, {pipeline_mode = #tpu.pipeline_mode<synchronous>, transform_indices = @transform_11, window_bounds = array<i64: 2, 32, 128>}, {pipeline_mode = #tpu.pipeline_mode<synchronous>, transform_indices = @transform_12, window_bounds = array<i64: 2, 128, 32>}, {pipeline_mode = #tpu.pipeline_mode<synchronous>, transform_indices = @transform_13, window_bounds = array<i64: 2, 8, 128>}, {transform_indices = @transform_14, window_bounds = array<i64: 1, 8, 128>}]} {
    %c0 = arith.constant 0 : index
    %c0_0 = arith.constant 0 : index
    %c0_1 = arith.constant 0 : index
    %0 = vector.load %arg1[%c0, %c0_0, %c0_1] : memref<1x8x32xf32, #tpu.memory_space<vmem>>, vector<1x8x32xf32>
    %1 = vector.shape_cast %0 : vector<1x8x32xf32> to vector<8x32xf32>
    %c0_2 = arith.constant 0 : index
    %c0_3 = arith.constant 0 : index
    %2 = vector.load %arg7[%c0_2, %c0_3] : memref<8x128xf32, #tpu.memory_space<vmem>>, vector<8x128xf32>
    %c0_4 = arith.constant 0 : index
    %c0_5 = arith.constant 0 : index
    %c0_6 = arith.constant 0 : index
    %3 = vector.load %arg2[%c0_4, %c0_5, %c0_6] : memref<1x1x8xf32, #tpu.memory_space<vmem>>, vector<1x1x8xf32>
    %4 = vector.shape_cast %3 : vector<1x1x8xf32> to vector<1x8xf32>
    %c0_7 = arith.constant 0 : index
    %c0_8 = arith.constant 0 : index
    %5 = vector.load %arg4[%c0_7, %c0_8] : memref<32x8xf32, #tpu.memory_space<vmem>>, vector<32x8xf32>
    %c0_9 = arith.constant 0 : index
    %c0_10 = arith.constant 0 : index
    %6 = vector.load %arg5[%c0_9, %c0_10] : memref<8x32xf32, #tpu.memory_space<vmem>>, vector<8x32xf32>
    %c0_11 = arith.constant 0 : index
    %c0_12 = arith.constant 0 : index
    %7 = vector.load %arg6[%c0_11, %c0_12] : memref<32x32xf32, #tpu.memory_space<vmem>>, vector<32x32xf32>
    %8 = vector.extract_strided_slice %2 {offsets = [0, 0], sizes = [1, 32], strides = [1, 1]} : vector<8x128xf32> to vector<1x32xf32>
    %9 = vector.extract_strided_slice %2 {offsets = [1, 0], sizes = [1, 32], strides = [1, 1]} : vector<8x128xf32> to vector<1x32xf32>
    %cst = arith.constant dense<0.000000e+00> : vector<8xf32>
    %10 = vector.multi_reduction <add>, %1, %cst [1] : vector<8x32xf32> to vector<8xf32>
    %11 = vector.shape_cast %10 : vector<8xf32> to vector<8x1xf32>
    %cst_13 = arith.constant 3.200000e+01 : f32
    %12 = vector.broadcast %cst_13 : f32 to vector<8x1xf32>
    %13 = arith.divf %11, %12 : vector<8x1xf32>
    %14 = vector.broadcast %13 : vector<8x1xf32> to vector<8x32xf32>
    %15 = arith.subf %1, %14 : vector<8x32xf32>
    %16 = arith.mulf %15, %15 : vector<8x32xf32>
    %cst_14 = arith.constant dense<0.000000e+00> : vector<8xf32>
    %17 = vector.multi_reduction <add>, %16, %cst_14 [1] : vector<8x32xf32> to vector<8xf32>
    %18 = vector.shape_cast %17 : vector<8xf32> to vector<8x1xf32>
    %cst_15 = arith.constant 3.200000e+01 : f32
    %19 = vector.broadcast %cst_15 : f32 to vector<8x1xf32>
    %20 = arith.divf %18, %19 : vector<8x1xf32>
    %21 = vector.broadcast %13 : vector<8x1xf32> to vector<8x32xf32>
    %22 = arith.subf %1, %21 : vector<8x32xf32>
    %cst_16 = arith.constant 9.99999996E-13 : f32
    %23 = vector.broadcast %cst_16 : f32 to vector<8x1xf32>
    %24 = arith.addf %20, %23 : vector<8x1xf32>
    %25 = math.rsqrt %24 : vector<8x1xf32>
    %26 = vector.broadcast %25 : vector<8x1xf32> to vector<8x32xf32>
    %27 = arith.mulf %22, %26 : vector<8x32xf32>
    %28 = vector.broadcast %8 : vector<1x32xf32> to vector<8x32xf32>
    %29 = arith.mulf %27, %28 : vector<8x32xf32>
    %30 = vector.broadcast %9 : vector<1x32xf32> to vector<8x32xf32>
    %31 = arith.addf %29, %30 : vector<8x32xf32>
    %c0_17 = arith.constant 0 : index
    %c0_18 = arith.constant 0 : index
    %c0_19 = arith.constant 0 : index
    %32 = vector.load %arg14[%c0_17, %c0_18, %c0_19] : memref<2x8x128xf32, #tpu.memory_space<vmem>>, vector<1x8x128xf32>
    %33 = vector.shape_cast %32 : vector<1x8x128xf32> to vector<8x128xf32>
    %c0_20 = arith.constant 0 : index
    %c0_21 = arith.constant 0 : index
    %c0_22 = arith.constant 0 : index
    %34 = vector.load %arg10[%c0_20, %c0_21, %c0_22] : memref<2x32x128xf32, #tpu.memory_space<vmem>>, vector<1x32x128xf32>
    %35 = vector.shape_cast %34 : vector<1x32x128xf32> to vector<32x128xf32>
    %cst_23 = arith.constant dense<0.000000e+00> : vector<8x128xf32>
    %36 = tpu.matmul %31, %35, %cst_23 {dimension_numbers = #tpu.dot_dimension_numbers<[1], [0], [0], [1], [0, 0, 1, 1], [], []>, precision = #tpu.contract_precision<fp32>} : vector<8x32xf32>, vector<32x128xf32>, vector<8x128xf32> -> vector<8x128xf32>
    %37 = vector.extract_strided_slice %33 {offsets = [0, 0], sizes = [1, 128], strides = [1, 1]} : vector<8x128xf32> to vector<1x128xf32>
    %38 = vector.broadcast %37 : vector<1x128xf32> to vector<8x128xf32>
    %39 = arith.addf %36, %38 : vector<8x128xf32>
    %40 = vector.extract_strided_slice %39 {offsets = [0, 0], sizes = [8, 32], strides = [1, 1]} : vector<8x128xf32> to vector<8x32xf32>
    %cst_24 = arith.constant 0.353553385 : f32
    %41 = vector.broadcast %cst_24 : f32 to vector<8x32xf32>
    %42 = arith.mulf %40, %41 : vector<8x32xf32>
    %43 = vector.extract_strided_slice %39 {offsets = [0, 32], sizes = [8, 32], strides = [1, 1]} : vector<8x128xf32> to vector<8x32xf32>
    %44 = vector.extract_strided_slice %39 {offsets = [0, 64], sizes = [8, 32], strides = [1, 1]} : vector<8x128xf32> to vector<8x32xf32>
    %cst_25 = arith.constant dense<0.000000e+00> : vector<32x32xf32>
    %45 = tpu.matmul %5, %42, %cst_25 {dimension_numbers = #tpu.dot_dimension_numbers<[1], [0], [0], [1], [0, 0, 1, 1], [], []>, precision = #tpu.contract_precision<fp32>} : vector<32x8xf32>, vector<8x32xf32>, vector<32x32xf32> -> vector<32x32xf32>
    %46 = arith.mulf %45, %7 : vector<32x32xf32>
    %47 = tpu.transpose %43, [1, 0] : vector<8x32xf32> -> vector<32x8xf32>
    %cst_26 = arith.constant dense<0.000000e+00> : vector<32x8xf32>
    %48 = tpu.matmul %46, %47, %cst_26 {dimension_numbers = #tpu.dot_dimension_numbers<[1], [0], [0], [1], [0, 0, 1, 1], [], []>, precision = #tpu.contract_precision<fp32>} : vector<32x32xf32>, vector<32x8xf32>, vector<32x8xf32> -> vector<32x8xf32>
    %49 = vector.broadcast %4 : vector<1x8xf32> to vector<32x8xf32>
    %50 = arith.addf %48, %49 : vector<32x8xf32>
    %cst_27 = arith.constant dense<0xFF800000> : vector<32xf32>
    %51 = vector.multi_reduction <maximumf>, %50, %cst_27 [1] : vector<32x8xf32> to vector<32xf32>
    %52 = vector.shape_cast %51 : vector<32xf32> to vector<32x1xf32>
    %53 = vector.broadcast %52 : vector<32x1xf32> to vector<32x8xf32>
    %54 = arith.subf %50, %53 : vector<32x8xf32>
    %55 = math.exp %54 : vector<32x8xf32>
    %cst_28 = arith.constant dense<0.000000e+00> : vector<32xf32>
    %56 = vector.multi_reduction <add>, %55, %cst_28 [1] : vector<32x8xf32> to vector<32xf32>
    %57 = vector.shape_cast %56 : vector<32xf32> to vector<32x1xf32>
    %58 = tpu.reciprocal %57 {approx = true} : vector<32x1xf32> -> vector<32x1xf32>
    %59 = vector.broadcast %58 : vector<32x1xf32> to vector<32x8xf32>
    %60 = arith.mulf %55, %59 : vector<32x8xf32>
    %cst_29 = arith.constant dense<0.000000e+00> : vector<32x32xf32>
    %61 = tpu.matmul %60, %44, %cst_29 {dimension_numbers = #tpu.dot_dimension_numbers<[1], [0], [0], [1], [0, 0, 1, 1], [], []>, precision = #tpu.contract_precision<fp32>} : vector<32x8xf32>, vector<8x32xf32>, vector<32x32xf32> -> vector<32x32xf32>
    %62 = arith.mulf %61, %7 : vector<32x32xf32>
    %cst_30 = arith.constant dense<0.000000e+00> : vector<8x32xf32>
    %63 = tpu.matmul %6, %62, %cst_30 {dimension_numbers = #tpu.dot_dimension_numbers<[1], [0], [0], [1], [0, 0, 1, 1], [], []>, precision = #tpu.contract_precision<fp32>} : vector<8x32xf32>, vector<32x32xf32>, vector<8x32xf32> -> vector<8x32xf32>
    %c0_31 = arith.constant 0 : index
    %c0_32 = arith.constant 0 : index
    %c0_33 = arith.constant 0 : index
    %64 = vector.load %arg11[%c0_31, %c0_32, %c0_33] : memref<2x32x32xf32, #tpu.memory_space<vmem>>, vector<1x32x32xf32>
    %65 = vector.shape_cast %64 : vector<1x32x32xf32> to vector<32x32xf32>
    %cst_34 = arith.constant dense<0.000000e+00> : vector<8x32xf32>
    %66 = tpu.matmul %63, %65, %cst_34 {dimension_numbers = #tpu.dot_dimension_numbers<[1], [0], [0], [1], [0, 0, 1, 1], [], []>, precision = #tpu.contract_precision<fp32>} : vector<8x32xf32>, vector<32x32xf32>, vector<8x32xf32> -> vector<8x32xf32>
    %67 = vector.extract_strided_slice %33 {offsets = [1, 0], sizes = [1, 32], strides = [1, 1]} : vector<8x128xf32> to vector<1x32xf32>
    %68 = vector.broadcast %67 : vector<1x32xf32> to vector<8x32xf32>
    %69 = arith.addf %66, %68 : vector<8x32xf32>
    %70 = arith.addf %69, %31 : vector<8x32xf32>
    %71 = vector.extract_strided_slice %33 {offsets = [2, 0], sizes = [1, 32], strides = [1, 1]} : vector<8x128xf32> to vector<1x32xf32>
    %72 = vector.extract_strided_slice %33 {offsets = [3, 0], sizes = [1, 32], strides = [1, 1]} : vector<8x128xf32> to vector<1x32xf32>
    %cst_35 = arith.constant dense<0.000000e+00> : vector<8xf32>
    %73 = vector.multi_reduction <add>, %70, %cst_35 [1] : vector<8x32xf32> to vector<8xf32>
    %74 = vector.shape_cast %73 : vector<8xf32> to vector<8x1xf32>
    %cst_36 = arith.constant 3.200000e+01 : f32
    %75 = vector.broadcast %cst_36 : f32 to vector<8x1xf32>
    %76 = arith.divf %74, %75 : vector<8x1xf32>
    %77 = vector.broadcast %76 : vector<8x1xf32> to vector<8x32xf32>
    %78 = arith.subf %70, %77 : vector<8x32xf32>
    %79 = arith.mulf %78, %78 : vector<8x32xf32>
    %cst_37 = arith.constant dense<0.000000e+00> : vector<8xf32>
    %80 = vector.multi_reduction <add>, %79, %cst_37 [1] : vector<8x32xf32> to vector<8xf32>
    %81 = vector.shape_cast %80 : vector<8xf32> to vector<8x1xf32>
    %cst_38 = arith.constant 3.200000e+01 : f32
    %82 = vector.broadcast %cst_38 : f32 to vector<8x1xf32>
    %83 = arith.divf %81, %82 : vector<8x1xf32>
    %84 = vector.broadcast %76 : vector<8x1xf32> to vector<8x32xf32>
    %85 = arith.subf %70, %84 : vector<8x32xf32>
    %cst_39 = arith.constant 9.99999996E-13 : f32
    %86 = vector.broadcast %cst_39 : f32 to vector<8x1xf32>
    %87 = arith.addf %83, %86 : vector<8x1xf32>
    %88 = math.rsqrt %87 : vector<8x1xf32>
    %89 = vector.broadcast %88 : vector<8x1xf32> to vector<8x32xf32>
    %90 = arith.mulf %85, %89 : vector<8x32xf32>
    %91 = vector.broadcast %71 : vector<1x32xf32> to vector<8x32xf32>
    %92 = arith.mulf %90, %91 : vector<8x32xf32>
    %93 = vector.broadcast %72 : vector<1x32xf32> to vector<8x32xf32>
    %94 = arith.addf %92, %93 : vector<8x32xf32>
    %c0_40 = arith.constant 0 : index
    %c0_41 = arith.constant 0 : index
    %c0_42 = arith.constant 0 : index
    %95 = vector.load %arg12[%c0_40, %c0_41, %c0_42] : memref<2x32x128xf32, #tpu.memory_space<vmem>>, vector<1x32x128xf32>
    %96 = vector.shape_cast %95 : vector<1x32x128xf32> to vector<32x128xf32>
    %cst_43 = arith.constant dense<0.000000e+00> : vector<8x128xf32>
    %97 = tpu.matmul %94, %96, %cst_43 {dimension_numbers = #tpu.dot_dimension_numbers<[1], [0], [0], [1], [0, 0, 1, 1], [], []>, precision = #tpu.contract_precision<fp32>} : vector<8x32xf32>, vector<32x128xf32>, vector<8x128xf32> -> vector<8x128xf32>
    %98 = vector.extract_strided_slice %33 {offsets = [4, 0], sizes = [1, 128], strides = [1, 1]} : vector<8x128xf32> to vector<1x128xf32>
    %99 = vector.broadcast %98 : vector<1x128xf32> to vector<8x128xf32>
    %100 = arith.addf %97, %99 : vector<8x128xf32>
    %cst_44 = arith.constant 5.000000e-01 : f32
    %101 = vector.broadcast %cst_44 : f32 to vector<8x128xf32>
    %102 = arith.mulf %101, %100 : vector<8x128xf32>
    %cst_45 = arith.constant 4.471500e-02 : f32
    %103 = vector.broadcast %cst_45 : f32 to vector<8x128xf32>
    %104 = arith.mulf %103, %100 : vector<8x128xf32>
    %105 = arith.mulf %104, %100 : vector<8x128xf32>
    %106 = arith.mulf %105, %100 : vector<8x128xf32>
    %107 = arith.addf %100, %106 : vector<8x128xf32>
    %cst_46 = arith.constant 0.797884583 : f32
    %108 = vector.broadcast %cst_46 : f32 to vector<8x128xf32>
    %109 = arith.mulf %108, %107 : vector<8x128xf32>
    %110 = math.tanh %109 : vector<8x128xf32>
    %cst_47 = arith.constant 1.000000e+00 : f32
    %111 = vector.broadcast %cst_47 : f32 to vector<8x128xf32>
    %112 = arith.addf %111, %110 : vector<8x128xf32>
    %113 = arith.mulf %102, %112 : vector<8x128xf32>
    %c0_48 = arith.constant 0 : index
    %c0_49 = arith.constant 0 : index
    %c0_50 = arith.constant 0 : index
    %114 = vector.load %arg13[%c0_48, %c0_49, %c0_50] : memref<2x128x32xf32, #tpu.memory_space<vmem>>, vector<1x128x32xf32>
    %115 = vector.shape_cast %114 : vector<1x128x32xf32> to vector<128x32xf32>
    %cst_51 = arith.constant dense<0.000000e+00> : vector<8x32xf32>
    %116 = tpu.matmul %113, %115, %cst_51 {dimension_numbers = #tpu.dot_dimension_numbers<[1], [0], [0], [1], [0, 0, 1, 1], [], []>, precision = #tpu.contract_precision<fp32>} : vector<8x128xf32>, vector<128x32xf32>, vector<8x32xf32> -> vector<8x32xf32>
    %117 = vector.extract_strided_slice %33 {offsets = [5, 0], sizes = [1, 32], strides = [1, 1]} : vector<8x128xf32> to vector<1x32xf32>
    %118 = vector.broadcast %117 : vector<1x32xf32> to vector<8x32xf32>
    %119 = arith.addf %116, %118 : vector<8x32xf32>
    %120 = arith.addf %119, %94 : vector<8x32xf32>
    %121 = vector.extract_strided_slice %33 {offsets = [6, 0], sizes = [1, 32], strides = [1, 1]} : vector<8x128xf32> to vector<1x32xf32>
    %122 = vector.extract_strided_slice %33 {offsets = [7, 0], sizes = [1, 32], strides = [1, 1]} : vector<8x128xf32> to vector<1x32xf32>
    %cst_52 = arith.constant dense<0.000000e+00> : vector<8xf32>
    %123 = vector.multi_reduction <add>, %120, %cst_52 [1] : vector<8x32xf32> to vector<8xf32>
    %124 = vector.shape_cast %123 : vector<8xf32> to vector<8x1xf32>
    %cst_53 = arith.constant 3.200000e+01 : f32
    %125 = vector.broadcast %cst_53 : f32 to vector<8x1xf32>
    %126 = arith.divf %124, %125 : vector<8x1xf32>
    %127 = vector.broadcast %126 : vector<8x1xf32> to vector<8x32xf32>
    %128 = arith.subf %120, %127 : vector<8x32xf32>
    %129 = arith.mulf %128, %128 : vector<8x32xf32>
    %cst_54 = arith.constant dense<0.000000e+00> : vector<8xf32>
    %130 = vector.multi_reduction <add>, %129, %cst_54 [1] : vector<8x32xf32> to vector<8xf32>
    %131 = vector.shape_cast %130 : vector<8xf32> to vector<8x1xf32>
    %cst_55 = arith.constant 3.200000e+01 : f32
    %132 = vector.broadcast %cst_55 : f32 to vector<8x1xf32>
    %133 = arith.divf %131, %132 : vector<8x1xf32>
    %134 = vector.broadcast %126 : vector<8x1xf32> to vector<8x32xf32>
    %135 = arith.subf %120, %134 : vector<8x32xf32>
    %cst_56 = arith.constant 9.99999996E-13 : f32
    %136 = vector.broadcast %cst_56 : f32 to vector<8x1xf32>
    %137 = arith.addf %133, %136 : vector<8x1xf32>
    %138 = math.rsqrt %137 : vector<8x1xf32>
    %139 = vector.broadcast %138 : vector<8x1xf32> to vector<8x32xf32>
    %140 = arith.mulf %135, %139 : vector<8x32xf32>
    %141 = vector.broadcast %121 : vector<1x32xf32> to vector<8x32xf32>
    %142 = arith.mulf %140, %141 : vector<8x32xf32>
    %143 = vector.broadcast %122 : vector<1x32xf32> to vector<8x32xf32>
    %144 = arith.addf %142, %143 : vector<8x32xf32>
    %c1 = arith.constant 1 : index
    %c0_57 = arith.constant 0 : index
    %c0_58 = arith.constant 0 : index
    %145 = vector.load %arg14[%c1, %c0_57, %c0_58] : memref<2x8x128xf32, #tpu.memory_space<vmem>>, vector<1x8x128xf32>
    %146 = vector.shape_cast %145 : vector<1x8x128xf32> to vector<8x128xf32>
    %c1_59 = arith.constant 1 : index
    %c0_60 = arith.constant 0 : index
    %c0_61 = arith.constant 0 : index
    %147 = vector.load %arg10[%c1_59, %c0_60, %c0_61] : memref<2x32x128xf32, #tpu.memory_space<vmem>>, vector<1x32x128xf32>
    %148 = vector.shape_cast %147 : vector<1x32x128xf32> to vector<32x128xf32>
    %cst_62 = arith.constant dense<0.000000e+00> : vector<8x128xf32>
    %149 = tpu.matmul %144, %148, %cst_62 {dimension_numbers = #tpu.dot_dimension_numbers<[1], [0], [0], [1], [0, 0, 1, 1], [], []>, precision = #tpu.contract_precision<fp32>} : vector<8x32xf32>, vector<32x128xf32>, vector<8x128xf32> -> vector<8x128xf32>
    %150 = vector.extract_strided_slice %146 {offsets = [0, 0], sizes = [1, 128], strides = [1, 1]} : vector<8x128xf32> to vector<1x128xf32>
    %151 = vector.broadcast %150 : vector<1x128xf32> to vector<8x128xf32>
    %152 = arith.addf %149, %151 : vector<8x128xf32>
    %153 = vector.extract_strided_slice %152 {offsets = [0, 0], sizes = [8, 32], strides = [1, 1]} : vector<8x128xf32> to vector<8x32xf32>
    %cst_63 = arith.constant 0.353553385 : f32
    %154 = vector.broadcast %cst_63 : f32 to vector<8x32xf32>
    %155 = arith.mulf %153, %154 : vector<8x32xf32>
    %156 = vector.extract_strided_slice %152 {offsets = [0, 32], sizes = [8, 32], strides = [1, 1]} : vector<8x128xf32> to vector<8x32xf32>
    %157 = vector.extract_strided_slice %152 {offsets = [0, 64], sizes = [8, 32], strides = [1, 1]} : vector<8x128xf32> to vector<8x32xf32>
    %cst_64 = arith.constant dense<0.000000e+00> : vector<32x32xf32>
    %158 = tpu.matmul %5, %155, %cst_64 {dimension_numbers = #tpu.dot_dimension_numbers<[1], [0], [0], [1], [0, 0, 1, 1], [], []>, precision = #tpu.contract_precision<fp32>} : vector<32x8xf32>, vector<8x32xf32>, vector<32x32xf32> -> vector<32x32xf32>
    %159 = arith.mulf %158, %7 : vector<32x32xf32>
    %160 = tpu.transpose %156, [1, 0] : vector<8x32xf32> -> vector<32x8xf32>
    %cst_65 = arith.constant dense<0.000000e+00> : vector<32x8xf32>
    %161 = tpu.matmul %159, %160, %cst_65 {dimension_numbers = #tpu.dot_dimension_numbers<[1], [0], [0], [1], [0, 0, 1, 1], [], []>, precision = #tpu.contract_precision<fp32>} : vector<32x32xf32>, vector<32x8xf32>, vector<32x8xf32> -> vector<32x8xf32>
    %162 = vector.broadcast %4 : vector<1x8xf32> to vector<32x8xf32>
    %163 = arith.addf %161, %162 : vector<32x8xf32>
    %cst_66 = arith.constant dense<0xFF800000> : vector<32xf32>
    %164 = vector.multi_reduction <maximumf>, %163, %cst_66 [1] : vector<32x8xf32> to vector<32xf32>
    %165 = vector.shape_cast %164 : vector<32xf32> to vector<32x1xf32>
    %166 = vector.broadcast %165 : vector<32x1xf32> to vector<32x8xf32>
    %167 = arith.subf %163, %166 : vector<32x8xf32>
    %168 = math.exp %167 : vector<32x8xf32>
    %cst_67 = arith.constant dense<0.000000e+00> : vector<32xf32>
    %169 = vector.multi_reduction <add>, %168, %cst_67 [1] : vector<32x8xf32> to vector<32xf32>
    %170 = vector.shape_cast %169 : vector<32xf32> to vector<32x1xf32>
    %171 = tpu.reciprocal %170 {approx = true} : vector<32x1xf32> -> vector<32x1xf32>
    %172 = vector.broadcast %171 : vector<32x1xf32> to vector<32x8xf32>
    %173 = arith.mulf %168, %172 : vector<32x8xf32>
    %cst_68 = arith.constant dense<0.000000e+00> : vector<32x32xf32>
    %174 = tpu.matmul %173, %157, %cst_68 {dimension_numbers = #tpu.dot_dimension_numbers<[1], [0], [0], [1], [0, 0, 1, 1], [], []>, precision = #tpu.contract_precision<fp32>} : vector<32x8xf32>, vector<8x32xf32>, vector<32x32xf32> -> vector<32x32xf32>
    %175 = arith.mulf %174, %7 : vector<32x32xf32>
    %cst_69 = arith.constant dense<0.000000e+00> : vector<8x32xf32>
    %176 = tpu.matmul %6, %175, %cst_69 {dimension_numbers = #tpu.dot_dimension_numbers<[1], [0], [0], [1], [0, 0, 1, 1], [], []>, precision = #tpu.contract_precision<fp32>} : vector<8x32xf32>, vector<32x32xf32>, vector<8x32xf32> -> vector<8x32xf32>
    %c1_70 = arith.constant 1 : index
    %c0_71 = arith.constant 0 : index
    %c0_72 = arith.constant 0 : index
    %177 = vector.load %arg11[%c1_70, %c0_71, %c0_72] : memref<2x32x32xf32, #tpu.memory_space<vmem>>, vector<1x32x32xf32>
    %178 = vector.shape_cast %177 : vector<1x32x32xf32> to vector<32x32xf32>
    %cst_73 = arith.constant dense<0.000000e+00> : vector<8x32xf32>
    %179 = tpu.matmul %176, %178, %cst_73 {dimension_numbers = #tpu.dot_dimension_numbers<[1], [0], [0], [1], [0, 0, 1, 1], [], []>, precision = #tpu.contract_precision<fp32>} : vector<8x32xf32>, vector<32x32xf32>, vector<8x32xf32> -> vector<8x32xf32>
    %180 = vector.extract_strided_slice %146 {offsets = [1, 0], sizes = [1, 32], strides = [1, 1]} : vector<8x128xf32> to vector<1x32xf32>
    %181 = vector.broadcast %180 : vector<1x32xf32> to vector<8x32xf32>
    %182 = arith.addf %179, %181 : vector<8x32xf32>
    %183 = arith.addf %182, %144 : vector<8x32xf32>
    %184 = vector.extract_strided_slice %146 {offsets = [2, 0], sizes = [1, 32], strides = [1, 1]} : vector<8x128xf32> to vector<1x32xf32>
    %185 = vector.extract_strided_slice %146 {offsets = [3, 0], sizes = [1, 32], strides = [1, 1]} : vector<8x128xf32> to vector<1x32xf32>
    %cst_74 = arith.constant dense<0.000000e+00> : vector<8xf32>
    %186 = vector.multi_reduction <add>, %183, %cst_74 [1] : vector<8x32xf32> to vector<8xf32>
    %187 = vector.shape_cast %186 : vector<8xf32> to vector<8x1xf32>
    %cst_75 = arith.constant 3.200000e+01 : f32
    %188 = vector.broadcast %cst_75 : f32 to vector<8x1xf32>
    %189 = arith.divf %187, %188 : vector<8x1xf32>
    %190 = vector.broadcast %189 : vector<8x1xf32> to vector<8x32xf32>
    %191 = arith.subf %183, %190 : vector<8x32xf32>
    %192 = arith.mulf %191, %191 : vector<8x32xf32>
    %cst_76 = arith.constant dense<0.000000e+00> : vector<8xf32>
    %193 = vector.multi_reduction <add>, %192, %cst_76 [1] : vector<8x32xf32> to vector<8xf32>
    %194 = vector.shape_cast %193 : vector<8xf32> to vector<8x1xf32>
    %cst_77 = arith.constant 3.200000e+01 : f32
    %195 = vector.broadcast %cst_77 : f32 to vector<8x1xf32>
    %196 = arith.divf %194, %195 : vector<8x1xf32>
    %197 = vector.broadcast %189 : vector<8x1xf32> to vector<8x32xf32>
    %198 = arith.subf %183, %197 : vector<8x32xf32>
    %cst_78 = arith.constant 9.99999996E-13 : f32
    %199 = vector.broadcast %cst_78 : f32 to vector<8x1xf32>
    %200 = arith.addf %196, %199 : vector<8x1xf32>
    %201 = math.rsqrt %200 : vector<8x1xf32>
    %202 = vector.broadcast %201 : vector<8x1xf32> to vector<8x32xf32>
    %203 = arith.mulf %198, %202 : vector<8x32xf32>
    %204 = vector.broadcast %184 : vector<1x32xf32> to vector<8x32xf32>
    %205 = arith.mulf %203, %204 : vector<8x32xf32>
    %206 = vector.broadcast %185 : vector<1x32xf32> to vector<8x32xf32>
    %207 = arith.addf %205, %206 : vector<8x32xf32>
    %c1_79 = arith.constant 1 : index
    %c0_80 = arith.constant 0 : index
    %c0_81 = arith.constant 0 : index
    %208 = vector.load %arg12[%c1_79, %c0_80, %c0_81] : memref<2x32x128xf32, #tpu.memory_space<vmem>>, vector<1x32x128xf32>
    %209 = vector.shape_cast %208 : vector<1x32x128xf32> to vector<32x128xf32>
    %cst_82 = arith.constant dense<0.000000e+00> : vector<8x128xf32>
    %210 = tpu.matmul %207, %209, %cst_82 {dimension_numbers = #tpu.dot_dimension_numbers<[1], [0], [0], [1], [0, 0, 1, 1], [], []>, precision = #tpu.contract_precision<fp32>} : vector<8x32xf32>, vector<32x128xf32>, vector<8x128xf32> -> vector<8x128xf32>
    %211 = vector.extract_strided_slice %146 {offsets = [4, 0], sizes = [1, 128], strides = [1, 1]} : vector<8x128xf32> to vector<1x128xf32>
    %212 = vector.broadcast %211 : vector<1x128xf32> to vector<8x128xf32>
    %213 = arith.addf %210, %212 : vector<8x128xf32>
    %cst_83 = arith.constant 5.000000e-01 : f32
    %214 = vector.broadcast %cst_83 : f32 to vector<8x128xf32>
    %215 = arith.mulf %214, %213 : vector<8x128xf32>
    %cst_84 = arith.constant 4.471500e-02 : f32
    %216 = vector.broadcast %cst_84 : f32 to vector<8x128xf32>
    %217 = arith.mulf %216, %213 : vector<8x128xf32>
    %218 = arith.mulf %217, %213 : vector<8x128xf32>
    %219 = arith.mulf %218, %213 : vector<8x128xf32>
    %220 = arith.addf %213, %219 : vector<8x128xf32>
    %cst_85 = arith.constant 0.797884583 : f32
    %221 = vector.broadcast %cst_85 : f32 to vector<8x128xf32>
    %222 = arith.mulf %221, %220 : vector<8x128xf32>
    %223 = math.tanh %222 : vector<8x128xf32>
    %cst_86 = arith.constant 1.000000e+00 : f32
    %224 = vector.broadcast %cst_86 : f32 to vector<8x128xf32>
    %225 = arith.addf %224, %223 : vector<8x128xf32>
    %226 = arith.mulf %215, %225 : vector<8x128xf32>
    %c1_87 = arith.constant 1 : index
    %c0_88 = arith.constant 0 : index
    %c0_89 = arith.constant 0 : index
    %227 = vector.load %arg13[%c1_87, %c0_88, %c0_89] : memref<2x128x32xf32, #tpu.memory_space<vmem>>, vector<1x128x32xf32>
    %228 = vector.shape_cast %227 : vector<1x128x32xf32> to vector<128x32xf32>
    %cst_90 = arith.constant dense<0.000000e+00> : vector<8x32xf32>
    %229 = tpu.matmul %226, %228, %cst_90 {dimension_numbers = #tpu.dot_dimension_numbers<[1], [0], [0], [1], [0, 0, 1, 1], [], []>, precision = #tpu.contract_precision<fp32>} : vector<8x128xf32>, vector<128x32xf32>, vector<8x32xf32> -> vector<8x32xf32>
    %230 = vector.extract_strided_slice %146 {offsets = [5, 0], sizes = [1, 32], strides = [1, 1]} : vector<8x128xf32> to vector<1x32xf32>
    %231 = vector.broadcast %230 : vector<1x32xf32> to vector<8x32xf32>
    %232 = arith.addf %229, %231 : vector<8x32xf32>
    %233 = arith.addf %232, %207 : vector<8x32xf32>
    %234 = vector.extract_strided_slice %146 {offsets = [6, 0], sizes = [1, 32], strides = [1, 1]} : vector<8x128xf32> to vector<1x32xf32>
    %235 = vector.extract_strided_slice %146 {offsets = [7, 0], sizes = [1, 32], strides = [1, 1]} : vector<8x128xf32> to vector<1x32xf32>
    %cst_91 = arith.constant dense<0.000000e+00> : vector<8xf32>
    %236 = vector.multi_reduction <add>, %233, %cst_91 [1] : vector<8x32xf32> to vector<8xf32>
    %237 = vector.shape_cast %236 : vector<8xf32> to vector<8x1xf32>
    %cst_92 = arith.constant 3.200000e+01 : f32
    %238 = vector.broadcast %cst_92 : f32 to vector<8x1xf32>
    %239 = arith.divf %237, %238 : vector<8x1xf32>
    %240 = vector.broadcast %239 : vector<8x1xf32> to vector<8x32xf32>
    %241 = arith.subf %233, %240 : vector<8x32xf32>
    %242 = arith.mulf %241, %241 : vector<8x32xf32>
    %cst_93 = arith.constant dense<0.000000e+00> : vector<8xf32>
    %243 = vector.multi_reduction <add>, %242, %cst_93 [1] : vector<8x32xf32> to vector<8xf32>
    %244 = vector.shape_cast %243 : vector<8xf32> to vector<8x1xf32>
    %cst_94 = arith.constant 3.200000e+01 : f32
    %245 = vector.broadcast %cst_94 : f32 to vector<8x1xf32>
    %246 = arith.divf %244, %245 : vector<8x1xf32>
    %247 = vector.broadcast %239 : vector<8x1xf32> to vector<8x32xf32>
    %248 = arith.subf %233, %247 : vector<8x32xf32>
    %cst_95 = arith.constant 9.99999996E-13 : f32
    %249 = vector.broadcast %cst_95 : f32 to vector<8x1xf32>
    %250 = arith.addf %246, %249 : vector<8x1xf32>
    %251 = math.rsqrt %250 : vector<8x1xf32>
    %252 = vector.broadcast %251 : vector<8x1xf32> to vector<8x32xf32>
    %253 = arith.mulf %248, %252 : vector<8x32xf32>
    %254 = vector.broadcast %234 : vector<1x32xf32> to vector<8x32xf32>
    %255 = arith.mulf %253, %254 : vector<8x32xf32>
    %256 = vector.broadcast %235 : vector<1x32xf32> to vector<8x32xf32>
    %257 = arith.addf %255, %256 : vector<8x32xf32>
    %258 = vector.extract_strided_slice %257 {offsets = [0, 0], sizes = [1, 32], strides = [1, 1]} : vector<8x32xf32> to vector<1x32xf32>
    %c0_96 = arith.constant 0 : index
    %c0_97 = arith.constant 0 : index
    %259 = vector.load %arg8[%c0_96, %c0_97] : memref<32x32xf32, #tpu.memory_space<vmem>>, vector<32x32xf32>
    %cst_98 = arith.constant dense<0.000000e+00> : vector<1x32xf32>
    %260 = tpu.matmul %258, %259, %cst_98 {dimension_numbers = #tpu.dot_dimension_numbers<[1], [0], [0], [1], [0, 0, 1, 1], [], []>, precision = #tpu.contract_precision<fp32>} : vector<1x32xf32>, vector<32x32xf32>, vector<1x32xf32> -> vector<1x32xf32>
    %261 = vector.extract_strided_slice %2 {offsets = [2, 0], sizes = [1, 32], strides = [1, 1]} : vector<8x128xf32> to vector<1x32xf32>
    %262 = arith.addf %260, %261 : vector<1x32xf32>
    %263 = math.tanh %262 : vector<1x32xf32>
    %c0_99 = arith.constant 0 : index
    %c0_100 = arith.constant 0 : index
    %c0_101 = arith.constant 0 : index
    %264 = vector.load %arg3[%c0_99, %c0_100, %c0_101] : memref<1x1x32xf32, #tpu.memory_space<vmem>>, vector<1x1x32xf32>
    %265 = vector.shape_cast %264 : vector<1x1x32xf32> to vector<1x32xf32>
    %266 = arith.mulf %263, %265 : vector<1x32xf32>
    %c0_102 = arith.constant 0 : index
    %c0_103 = arith.constant 0 : index
    %267 = vector.load %arg9[%c0_102, %c0_103] : memref<32x128xf32, #tpu.memory_space<vmem>>, vector<32x128xf32>
    %cst_104 = arith.constant dense<0.000000e+00> : vector<1x128xf32>
    %268 = tpu.matmul %266, %267, %cst_104 {dimension_numbers = #tpu.dot_dimension_numbers<[1], [0], [0], [1], [0, 0, 1, 1], [], []>, precision = #tpu.contract_precision<fp32>} : vector<1x32xf32>, vector<32x128xf32>, vector<1x128xf32> -> vector<1x128xf32>
    %269 = vector.extract_strided_slice %2 {offsets = [3, 0], sizes = [1, 128], strides = [1, 1]} : vector<8x128xf32> to vector<1x128xf32>
    %270 = arith.addf %268, %269 : vector<1x128xf32>
    %271 = vector.shape_cast %270 : vector<1x128xf32> to vector<1x1x128xf32>
    %272 = vector.broadcast %271 : vector<1x1x128xf32> to vector<1x8x128xf32>
    %c0_105 = arith.constant 0 : index
    %c0_106 = arith.constant 0 : index
    %c0_107 = arith.constant 0 : index
    %273 = vector.load %arg15[%c0_105, %c0_106, %c0_107] : memref<1x8x128xf32, #tpu.memory_space<vmem>>, vector<1x8x128xf32>
    tpu.vector_store %arg15[%c0_105, %c0_106, %c0_107], %272 {strides = array<i32>} : memref<1x8x128xf32, #tpu.memory_space<vmem>>, vector<1x8x128xf32>,
    return
  }
  func.func @transform_0(%arg0: i32) -> (i32, i32, i32) {
    %c0_i32 = arith.constant 0 : i32
    %c0_i32_0 = arith.constant 0 : i32
    %c0_i32_1 = arith.constant 0 : i32
    return %arg0, %c0_i32, %c0_i32_0 : i32, i32, i32
  }
  func.func @transform_1(%arg0: i32) -> (i32, i32, i32) {
    %c0_i32 = arith.constant 0 : i32
    %c0_i32_0 = arith.constant 0 : i32
    %c0_i32_1 = arith.constant 0 : i32
    return %arg0, %c0_i32, %c0_i32_0 : i32, i32, i32
  }
  func.func @transform_2(%arg0: i32) -> (i32, i32, i32) {
    %c0_i32 = arith.constant 0 : i32
    %c0_i32_0 = arith.constant 0 : i32
    %c0_i32_1 = arith.constant 0 : i32
    return %arg0, %c0_i32, %c0_i32_0 : i32, i32, i32
  }
  func.func @transform_3(%arg0: i32) -> (i32, i32) {
    %c0_i32 = arith.constant 0 : i32
    %c0_i32_0 = arith.constant 0 : i32
    %c0_i32_1 = arith.constant 0 : i32
    return %c0_i32, %c0_i32_0 : i32, i32
  }
  func.func @transform_4(%arg0: i32) -> (i32, i32) {
    %c0_i32 = arith.constant 0 : i32
    %c0_i32_0 = arith.constant 0 : i32
    %c0_i32_1 = arith.constant 0 : i32
    return %c0_i32, %c0_i32_0 : i32, i32
  }
  func.func @transform_5(%arg0: i32) -> (i32, i32) {
    %c0_i32 = arith.constant 0 : i32
    %c0_i32_0 = arith.constant 0 : i32
    %c0_i32_1 = arith.constant 0 : i32
    return %c0_i32, %c0_i32_0 : i32, i32
  }
  func.func @transform_6(%arg0: i32) -> (i32, i32) {
    %c0_i32 = arith.constant 0 : i32
    %c0_i32_0 = arith.constant 0 : i32
    %c0_i32_1 = arith.constant 0 : i32
    return %c0_i32, %c0_i32_0 : i32, i32
  }
  func.func @transform_7(%arg0: i32) -> (i32, i32) {
    %c0_i32 = arith.constant 0 : i32
    %c0_i32_0 = arith.constant 0 : i32
    %c0_i32_1 = arith.constant 0 : i32
    return %c0_i32, %c0_i32_0 : i32, i32
  }
  func.func @transform_8(%arg0: i32) -> (i32, i32) {
    %c0_i32 = arith.constant 0 : i32
    %c0_i32_0 = arith.constant 0 : i32
    %c0_i32_1 = arith.constant 0 : i32
    return %c0_i32, %c0_i32_0 : i32, i32
  }
  func.func @transform_9(%arg0: i32) -> (i32, i32, i32) {
    %c0_i32 = arith.constant 0 : i32
    %c0_i32_0 = arith.constant 0 : i32
    %c0_i32_1 = arith.constant 0 : i32
    %c0_i32_2 = arith.constant 0 : i32
    return %c0_i32, %c0_i32_0, %c0_i32_1 : i32, i32, i32
  }
  func.func @transform_10(%arg0: i32) -> (i32, i32, i32) {
    %c0_i32 = arith.constant 0 : i32
    %c0_i32_0 = arith.constant 0 : i32
    %c0_i32_1 = arith.constant 0 : i32
    %c0_i32_2 = arith.constant 0 : i32
    return %c0_i32, %c0_i32_0, %c0_i32_1 : i32, i32, i32
  }
  func.func @transform_11(%arg0: i32) -> (i32, i32, i32) {
    %c0_i32 = arith.constant 0 : i32
    %c0_i32_0 = arith.constant 0 : i32
    %c0_i32_1 = arith.constant 0 : i32
    %c0_i32_2 = arith.constant 0 : i32
    return %c0_i32, %c0_i32_0, %c0_i32_1 : i32, i32, i32
  }
  func.func @transform_12(%arg0: i32) -> (i32, i32, i32) {
    %c0_i32 = arith.constant 0 : i32
    %c0_i32_0 = arith.constant 0 : i32
    %c0_i32_1 = arith.constant 0 : i32
    %c0_i32_2 = arith.constant 0 : i32
    return %c0_i32, %c0_i32_0, %c0_i32_1 : i32, i32, i32
  }
  func.func @transform_13(%arg0: i32) -> (i32, i32, i32) {
    %c0_i32 = arith.constant 0 : i32
    %c0_i32_0 = arith.constant 0 : i32
    %c0_i32_1 = arith.constant 0 : i32
    %c0_i32_2 = arith.constant 0 : i32
    return %c0_i32, %c0_i32_0, %c0_i32_1 : i32, i32, i32
  }
  func.func @transform_14(%arg0: i32) -> (i32, i32, i32) {
    %c0_i32 = arith.constant 0 : i32
    %c0_i32_0 = arith.constant 0 : i32
    %c0_i32_1 = arith.constant 0 : i32
    return %arg0, %c0_i32, %c0_i32_0 : i32, i32, i32
  }
}

</mosaic_0001>

<bundles_post_ra>
// kernel: tpu_custom_call.1
= control target key start
LH: loop header
LB: loop body
LE: loop exit
PB: predicated region body
PF: predicated region fallthrough
CT: control target
= control target key end

     0   :  { %s6410_s0 = inlined_call_operand.vmem [shape: f32[2,8,32], index: 0, kind: input, shape index: {}]   ;;  %s6411_s1 = inlined_call_operand.vmem [shape: f32[2,1,8], index: 1, kind: input, shape index: {}]   ;;  %s6412_s2 = inlined_call_operand.vmem [shape: f32[2,1,32], index: 2, kind: input, shape index: {}]   ;;  %s6413_s3 = inlined_call_operand.vmem [shape: f32[32,8], index: 3, kind: input, shape index: {}]   ;;  %s6414_s4 = inlined_call_operand.vmem [shape: f32[8,32], index: 4, kind: input, shape index: {}]   ;;  %s6415_s5 = inlined_call_operand.vmem [shape: f32[32,32], index: 5, kind: input, shape index: {}]   ;;  %s6416_s6 = inlined_call_operand.vmem [shape: f32[8,128], index: 6, kind: input, shape index: {}]   ;;  %s6417_s7 = inlined_call_operand.vmem [shape: f32[32,32], index: 7, kind: input, shape index: {}]   ;;  %s6418_s8 = inlined_call_operand.vmem [shape: f32[32,128], index: 8, kind: input, shape index: {}]   ;;  %s6419_s9 = inlined_call_operand.vmem [shape: f32[2,32,128], index: 9, kind: input, shape index: {}]   ;;  %s6420_s10 = inlined_call_operand.vmem [shape: f32[2,32,32], index: 10, kind: input, shape index: {}]   ;;  %s6421_s11 = inlined_call_operand.vmem [shape: f32[2,32,128], index: 11, kind: input, shape index: {}]   ;;  %s6422_s12 = inlined_call_operand.vmem [shape: f32[2,128,32], index: 12, kind: input, shape index: {}]   ;;  %s6423_s13 = inlined_call_operand.vmem [shape: f32[2,8,128], index: 13, kind: input, shape index: {}]   ;;  %s6424_s14 = inlined_call_operand.hbm [shape: f32[2,8,128], index: 14, kind: output, shape index: {}]  }
   0x1   :  { %6443 = sst [smem:[#allocation9_spill]] %s6410_s0 }
   0x2   :  { %6444 = sst [smem:[#allocation10_spill]] %s6411_s1 }
   0x3   :  { %6445 = sst [smem:[#allocation11_spill]] %s6412_s2 }
   0x4   :  { %6446 = sst [smem:[#allocation12_spill]] %s6413_s3 }
   0x5   :  { %19 = vsyncpa [#allocation3], 0 }
   0x6   :  { %21 = vsyncpa [#allocation3 + $0x1], 0  ;;  %s5306_s29 = smov 0   ;;  %s5308_s30 = smov 0  }
   0x7   :  { %s5310_s15 = smov 0   ;;  %s5312_s16 = smov 0  }
   0x8 LB: > { %s5327_s17 = sadd.s32 4294967295, %s5226_s16   ;;  %s5024_s18 = sadd.s32 4294967294, %s5226_s16   ;;  %s5226_s16 = sphi %s5312_s16, %s6478_s16   ;;  %s5222_s15 = sphi %s5310_s15, %s6477_s15   ;;  %s5218_s30 = sphi %s5308_s30, %s6476_s30   ;;  %s5214_s29 = sphi %s5306_s29, %s6475_s29  }
   0x9   : > { %s5331_s19 = sadd.s32 1, %s5226_s16   ;;  %s343_s20 = sadd.s32 1, %s5222_s15 }
   0xa   : > { %s340_s21 = ssub.s32 %s5226_s16, %s5331_s19  ;;  %p353_p0 = scmp.ne.s32.totalorder %s5222_s15, %s5218_s30 }
   0xb   : > { %p341_p1 = scmp.eq.s32.totalorder %s340_s21, 0  ;;  %p354_p2 = scmp.eq.s32.totalorder %s5327_s17, 1 }
   0xc   : > { %p359_p3 = scmp.ne.s32.totalorder %s5218_s30, %s5214_s29  ;;  %p360_p4 = scmp.eq.s32.totalorder %s5024_s18, 1 }
   0xd   : > { %s5342_s22 = scalar_select %p341_p1, %s5222_s15, %s343_s20  }
   0xe   : > { %p5344_p5 = por %p354_p2, %p353_p0  ;;  %p5348_p6 = por %p360_p4, %p359_p3 }
   0xf   : > { %6447 = sst [smem:[#allocation5_spill]] %s5342_s22  ;;  %p5027_p7 = scmp.ge.s32.totalorder %s5226_s16, 1 }
  0x10   : > { %p430_p8 = scmp.lt.s32.totalorder %s5226_s16, 3 }
  0x12   : > { %p431_p9 = pnand %p5027_p7, %p430_p8 }
  0x14   : > { %434 = sbr.rel (%p431_p9) target bundleno = 4928 (0x1340), region = 76 }
  0x19   : > { %p481_p10 = scmp.lt.s32.totalorder %s5327_s17, 1  ;;  %s6450_s1 = sld [smem:[#allocation10_spill]]  ;;  %vm503_vm0 = vcmask 261120   ;;  %v5228_v2 = vmov 32.0   ;;  %v541_v14 = vld [vmem:[%s6419_s9 + $0x18] sm:$0xff]  ;;  %v540_v16 = vld [vmem:[%s6419_s9 + $0x10] sm:$0xff] }
  0x1a   : > { %s6451_s0 = sld [smem:[#allocation9_spill]]  ;;  %5106 = vrcp.f32 %v5228_v2  ;;  %v558_v15 = vand.u32 4294901760, %v541_v14  ;;  %v560_v18 = vand.u32 4294901760, %v540_v16  ;;  %v539_v19 = vld [vmem:[%s6419_s9 + $0x8] sm:$0xff]  ;;  %v538_v23 = vld [vmem:[%s6419_s9] sm:$0xff]  ;;  %vm732_vm5 = vcmask 64512  }
  0x1b   : > { %s5356_s25 = scalar_select %p481_p10, %s5327_s17, 1  ;;  %v562_v22 = vand.u32 4294901760, %v539_v19  ;;  %v564_v27 = vand.u32 4294901760, %v538_v23  ;;  %v492_v45 = vld [vmem:[%s6416_s6] sm:$0xff] }
  0x1c   : > { %v588_v17 = vsub.f32 %v541_v14, %v558_v15  ;;  %659 = vmatpush.msra.mxu3 %v558_v15  ;;  %559 = vmatpush.msra.mxu0 %v558_v15  ;;  %v594_v21 = vsub.f32 %v540_v16, %v560_v18  ;;  %v533_v48 = vperm.slane %v492_v45, 0  ;;  %v535_v51 = vperm.slane %v492_v45, 1  ;;  %s6452_s3 = sld [smem:[#allocation12_spill]]  ;;  %v537_v61 = vld [vmem:[%s6423_s13] sm:$0xff]  ;;  %s6468_s20 = smov 96  }
  0x1d   : > { %s5029_s26 = sshll.u32 %s5356_s25, 3  ;;  %v600_v26 = vsub.f32 %v539_v19, %v562_v22  ;;  %v606_v31 = vsub.f32 %v538_v23, %v564_v27  ;;  %v542_v63 = vperm.slane %v537_v61, 0  ;;  %s6473_s2 = sld [smem:[#allocation11_spill]] }
  0x1e   : > { %v589_v20 = vand.u32 4294901760, %v588_v17  ;;  %630 = vmatpush.msra.mxu2 %v588_v17  ;;  %661 = vmatpush.msra.mxu3 %v560_v18  ;;  %v595_v25 = vand.u32 4294901760, %v594_v21  ;;  %s5060_s28 = sshll.u32 %s5327_s17, 3  ;;  %s5184_s21 = scalar_lea.hbm %s6424_s14, 16 }
  0x1f   : > { %s5363_s18 = scalar_lea.vmem %s6450_s1, %s5356_s25  ;;  %561 = vmatpush.msra.mxu0 %v560_v18  ;;  %v601_v30 = vand.u32 4294901760, %v600_v26  ;;  %v607_v34 = vand.u32 4294901760, %v606_v31 }
  0x20   : > { %s484_s22 = scalar_lea.vmem %s6451_s0, %s5029_s26  ;;  %v5107_v3 = vpop.eup %5106  ;;  %v590_v24 = vsub.f32 %v588_v17, %v589_v20  ;;  %633 = vmatpush.msra.mxu2 %v594_v21  ;;  %663 = vmatpush.msra.mxu3 %v562_v22  ;;  %v596_v29 = vsub.f32 %v594_v21, %v595_v25  ;;  %s6425_s26 = smov 64  }
  0x21   : > { %v491_v0 = vld [vmem:[%s484_s22] sm:$0xff]  ;;  %v508_v4 = vmul.f32 32.0, %v5107_v3  ;;  %vm512_vm1 = vweird.f32 %v5107_v3  ;;  %563 = vmatpush.msra.mxu0 %v562_v22  ;;  %v602_v33 = vsub.f32 %v600_v26, %v601_v30  ;;  %v608_v36 = vsub.f32 %v606_v31, %v607_v34  ;;  %s6426_s22 = smov 96  }
  0x22   : > { %v504_v1 = vsel %vm503_vm0, %v491_v0, 0.0  ;;  %v591_v28 = vand.u32 4294901760, %v590_v24  ;;  %636 = vmatpush.msra.mxu2 %v600_v26  ;;  %665 = vmatpush.msra.mxu3 %v564_v27  ;;  %v597_v32 = vand.u32 4294901760, %v596_v29  ;;  %v494_v60 = vld [vmem:[%s6452_s3] sm:$0xff]  ;;  %v496_v16 = vld [vmem:[%s6452_s3 + $0x10] sm:$0xff] }
  0x23   : > { %505 = vadd.xlane.f32.xlu0 %v504_v1  ;;  %v509_v5 = vsub.f32 1.0, %v508_v4  ;;  %565 = vmatpush.msra.mxu0 %v564_v27  ;;  %v603_v35 = vand.u32 4294901760, %v602_v33  ;;  %v609_v37 = vand.u32 4294901760, %v608_v36  ;;  %v734_v62 = vsel %vm732_vm5, %v494_v60, 0 }
  0x24   : > { %592 = vmatpush.msra.mxu1 %v591_v28  ;;  %639 = vmatpush.msra.mxu2 %v606_v31  ;;  %v497_v28 = vld [vmem:[%s6452_s3 + $0x18] sm:$0xff] }
  0x25   : > { %v510_v6 = vmul.f32 %v5107_v3, %v509_v5  ;;  %688 = vmatpush.msrb.mxu0 %v589_v20  ;;  %v743_v33 = vsel %vm732_vm5, %v497_v28, 0 }
  0x26   : > { %598 = vmatpush.msra.mxu1 %v597_v32 }
  0x27   : > { %v511_v7 = vadd.f32 %v5107_v3, %v510_v6  ;;  %692 = vmatpush.msrb.mxu0 %v595_v25 }
  0x28   : > { %604 = vmatpush.msra.mxu1 %v603_v35 }
  0x29   : > { %v5369_v8 = vsel %vm512_vm1, %v5107_v3, %v511_v7  ;;  %696 = vmatpush.msrb.mxu0 %v601_v30  ;;  %v495_v3 = vld [vmem:[%s6452_s3 + $0x8] sm:$0xff] }
  0x2a   : > { %610 = vmatpush.msra.mxu1 %v609_v37  ;;  %v737_v7 = vsel %vm732_vm5, %v495_v3, 0  ;;  %v5457_v37 = vand.u32 4294901760, %v743_v33 }
  0x2b   : > { %700 = vmatpush.msrb.mxu0 %v607_v34 }
  0x2c   : > { %719 = vmatpush.msrb.mxu1 %v558_v15 }
  0x2e   : > { %721 = vmatpush.msrb.mxu1 %v560_v18 }
  0x30   : > { %723 = vmatpush.msrb.mxu1 %v562_v22  ;;  %v740_v22 = vsel %vm732_vm5, %v496_v16, 0 }
  0x31   : > { %v5438_v26 = vand.u32 4294901760, %v740_v22 }
  0x32   : > { %725 = vmatpush.msrb.mxu1 %v564_v27 }
  0x33   : > { %v5447_v31 = vsub.f32 %v740_v22, %v5438_v26 }
  0x35   : > { %v5455_v36 = vand.u32 4294901760, %v5447_v31 }
  0x96   : > { %v506_v9 = vpop.xlane.xlu0 %505 }
  0x97   : > { %v514_v10 = vmul.f32 %v5369_v8, %v506_v9 }
  0x99   : > { %v5372_v11 = vsub.f32 %v491_v0, %v514_v10  ;;  %v5405_v0 = vand.u32 4294901760, %v734_v62 }
  0x9b   : > { %v516_v12 = vmul.f32 %v5372_v11, %v5372_v11  ;;  %v5411_v5 = vsub.f32 %v734_v62, %v5405_v0 }
  0x9d   : > { %v517_v13 = vsel %vm503_vm0, %v516_v12, 0.0  ;;  %v5415_v12 = vand.u32 4294901760, %v5411_v5 }
  0x9e   : > { %518 = vadd.xlane.f32.xlu0 %v517_v13  ;;  %v5417_v13 = vand.u32 4294901760, %v737_v7 }
  0x9f   : > { %v765_v19 = vsub.f32 %v5411_v5, %v5415_v12 }
  0xa0   : > { %v5425_v20 = vsub.f32 %v737_v7, %v5417_v13 }
  0xa1   : > { %v5433_v24 = vand.u32 4294901760, %v765_v19 }
  0xa2   : > { %v5436_v25 = vand.u32 4294901760, %v5425_v20 }
  0xa4   : > { %v773_v30 = vsub.f32 %v5425_v20, %v5436_v25 }
  0xa6   : > { %v5452_v35 = vand.u32 4294901760, %v773_v30 }
 0x111   : > { %v519_v38 = vpop.xlane.xlu0 %518 }
 0x112   : > { %v520_v39 = vmul.f32 %v519_v38, %v5369_v8 }
 0x114   : > { %v521_v40 = vadd.f32 1e-12, %v520_v39  ;;  %v781_v39 = vsub.f32 %v5447_v31, %v5455_v36 }
 0x116   : > { %5108 = vrsqrt.f32 %v521_v40  ;;  %vm528_vm3 = vweird.f32 %v521_v40 }
 0x11c   : > { %v5109_v41 = vpop.eup %5108 }
 0x11d   : > { %v523_v42 = vmul.f32 %v5109_v41, %v521_v40  ;;  %vm529_vm2 = vweird.f32 %v5109_v41  ;;  %v5464_v40 = vsub.f32 %v743_v33, %v5457_v37 }
 0x11e   : > { %vm530_vm4 = vmor %vm528_vm3, %vm529_vm2 }
 0x11f   : > { %v524_v43 = vmul.f32 %v5109_v41, %v523_v42  ;;  %v5471_v42 = vand.u32 4294901760, %v5464_v40 }
 0x121   : > { %v525_v44 = vmul.f32 0.5, %v524_v43  ;;  %v789_v43 = vsub.f32 %v5464_v40, %v5471_v42 }
 0x123   : > { %v526_v46 = vsub.f32 1.5, %v525_v44  ;;  %v5479_v44 = vand.u32 4294901760, %v789_v43 }
 0x125   : > { %v527_v47 = vmul.f32 %v5109_v41, %v526_v46 }
 0x127   : > { %v531_v49 = vsel %vm530_vm4, %v5109_v41, %v527_v47  ;;  %v5468_v41 = vand.u32 4294901760, %v781_v39 }
 0x128   : > { %v532_v50 = vmul.f32 %v531_v49, %v5372_v11 }
 0x12a   : > { %v534_v52 = vmul.f32 %v533_v48, %v532_v50 }
 0x12c   : > { %v5394_v53 = vadd.f32 %v535_v51, %v534_v52 }
 0x12e   : > { %v544_v54 = vsel %vm503_vm0, %v5394_v53, 0 }
 0x12f   : > { %v566_v55 = vand.u32 4294901760, %v544_v54 }
 0x131   : > { %612 = vmatmul.f32.vlgmr.msra.gmra.mxu1 %v566_v55  ;;  %v567_v56 = vsub.f32 %v544_v54, %v566_v55 }
 0x133   : > { %642 = vmatmul.f32.vlgmr.msra.gmra.mxu2 %v567_v56  ;;  %v568_v57 = vand.u32 4294901760, %v567_v56 }
 0x135   : > { %669 = vmatmul.f32.vlgmr.msra.gmra.mxu3 %v568_v57  ;;  %v569_v58 = vsub.f32 %v567_v56, %v568_v57 }
 0x137   : > { %v570_v59 = vand.u32 4294901760, %v569_v58 }
 0x139   : > { %571 = vmatmul.f32.vlgmr.msra.gmra.mxu0 %v570_v59  ;;  %727 = vmatmul.f32.vlgmr.msrb.gmra.mxu1 %v566_v55 }
 0x141   : > { %702 = vmatmul.f32.vlgmr.msrb.gmra.mxu0 %v566_v55 }
 0x1ae   : > { %v613_v1 = vpop.f32.mrf.mxu1 }
 0x1b6   : > { %v572_v2 = vpop.f32.mrf.mxu0  ;;  %v643_v9 = vpop.f32.mrf.mxu2 }
 0x1b7   : > { %v573_v4 = vadd.f32 %v572_v2, %v542_v63  ;;  %v728_v18 = vpop.f32.mrf.mxu1 }
 0x1b8   : > { %v670_v11 = vpop.f32.mrf.mxu3 }
 0x1b9   : > { %v614_v6 = vadd.f32 %v613_v1, %v573_v4 }
 0x1bb   : > { %v644_v10 = vadd.f32 %v643_v9, %v614_v6 }
 0x1bd   : > { %v671_v14 = vadd.f32 %v670_v11, %v644_v10  ;;  %v5498_v11 = vld [vmem:[%s6415_s5] sm:$0xff] }
 0x1be   : > { %v703_v15 = vpop.f32.mrf.mxu0 }
 0x1bf   : > { %v704_v17 = vadd.f32 %v703_v15, %v671_v14 }
 0x1c1   : > { %v5427_v21 = vadd.f32 %v728_v18, %v704_v17 }
 0x1c3   : > { %v731_v23 = vmul.f32 0.35355338, %v5427_v21  ;;  %992 = vrot.lane.b32.xlu1 %v5427_v21, %s6426_s22  ;;  %s4942_s22 = scalar_lea.hbm %s6424_s14, %s5060_s28 }
 0x1c4   : > { %s4946_s0 = sshll.u32 %s4942_s22, 4  ;;  %s4947_s0 = int_to_ptr.hbm [resolvable:$true] %s4946_s0 }
 0x1c5   : > { %v760_v27 = vand.u32 4294901760, %v731_v23  ;;  %s5178_s1 = sshra.s32 %s4947_s0, 4  ;;  %s5179_s1 = int_to_ptr.hbm [resolvable:$true] %s5178_s1 }
 0x1c6   : > { %p5185_p0 = scmp.lt.s32.totalorder %s5179_s1, %s6424_s14 }
 0x1c7   : > { %761 = vmatpush.msrb.mxu2 %v760_v27  ;;  %888 = vmatpush.msra.mxu1 %v760_v27  ;;  %v811_v29 = vsub.f32 %v731_v23, %v760_v27 }
 0x1c8   : > { %767 = vmatmul.f32.vlgmr.msrb.gmra.mxu2 %v5433_v24  ;;  %892 = vmatmul.f32.vlgmr.msra.gmra.mxu1 %v5415_v12 }
 0x1c9   : > { %850 = vmatpush.msra.mxu0 %v811_v29  ;;  %v812_v32 = vand.u32 4294901760, %v811_v29 }
 0x1ca   : > { %853 = vmatmul.f32.vlgmr.msra.gmra.mxu0 %v5411_v5 }
 0x1cb   : > { %932 = vmatpush.msra.mxu2 %v812_v32  ;;  %v813_v34 = vsub.f32 %v811_v29, %v812_v32  ;;  %v5508_v32 = vld [vmem:[%s6415_s5 + $0x8] sm:$0xff] }
 0x1cd   : > { %v814_v38 = vand.u32 4294901760, %v813_v34 }
 0x1cf   : > { %815 = vmatpush.msrb.mxu3 %v814_v38 }
 0x1d0   : > { %775 = vmatmul.f32.gmra.mxu2 %v5452_v35  ;;  %817 = vmatmul.f32.vlgmr.msrb.gmra.mxu3 %v5405_v0 }
 0x1d1   : > { %966 = vmatpush.msra.mxu3 %v760_v27  ;;  %898 = vmatmul.f32.gmra.mxu1 %v5436_v25 }
 0x1d2   : > { %858 = vmatmul.f32.gmra.mxu0 %v5425_v20 }
 0x1d8   : > { %783 = vmatmul.f32.gmra.mxu2 %v5468_v41  ;;  %821 = vmatmul.f32.gmra.mxu3 %v5417_v13 }
 0x1d9   : > { %904 = vmatmul.f32.gmra.mxu1 %v5455_v36 }
 0x1da   : > { %863 = vmatmul.f32.gmra.mxu0 %v5447_v31 }
 0x1e0   : > { %791 = vmatmul.f32.gmra.mxu2 %v5479_v44  ;;  %825 = vmatmul.f32.gmra.mxu3 %v5438_v26 }
 0x1e1   : > { %910 = vmatmul.f32.gmra.mxu1 %v5471_v42 }
 0x1e2   : > { %868 = vmatmul.f32.gmra.mxu0 %v5464_v40 }
 0x1e8   : > { %829 = vmatmul.f32.gmra.mxu3 %v5457_v37  ;;  %934 = vmatmul.f32.vlgmr.msra.gmra.mxu2 %v5405_v0 }
 0x1f0   : > { %938 = vmatmul.f32.gmra.mxu2 %v5417_v13  ;;  %968 = vmatmul.f32.vlgmr.msra.gmra.mxu3 %v5405_v0 }
 0x1f8   : > { %942 = vmatmul.f32.gmra.mxu2 %v5438_v26  ;;  %972 = vmatmul.f32.gmra.mxu3 %v5417_v13 }
 0x200   : > { %946 = vmatmul.f32.gmra.mxu2 %v5457_v37  ;;  %976 = vmatmul.f32.gmra.mxu3 %v5438_v26 }
 0x208   : > { %980 = vmatmul.f32.gmra.mxu3 %v5457_v37 }
 0x235   : > { %v993_v45 = vpop.permute.xlu1 %992 }
 0x236   : > { %v1006_v46 = vsel %vm503_vm0, %v993_v45, 0 }
 0x237   : > { %v1023_v47 = vand.u32 4294901760, %v1006_v46 }
 0x239   : > { %v1074_v48 = vsub.f32 %v1006_v46, %v1023_v47  ;;  %1024 = vmatpush.xpose.msrb.mxu0 %v1023_v47  ;;  %1151 = vmatpush.xpose.msrb.mxu3 %v1023_v47 }
 0x23b   : > { %v1075_v49 = vand.u32 4294901760, %v1074_v48  ;;  %1113 = vmatpush.xpose.msrb.mxu2 %v1074_v48 }
 0x23d   : > { %v1076_v50 = vsub.f32 %v1074_v48, %v1075_v49  ;;  %1195 = vmatpush.xpose.msra.mxu0 %v1075_v49 }
 0x23f   : > { %v1077_v51 = vand.u32 4294901760, %v1076_v50 }
 0x241   : > { %1078 = vmatpush.xpose.msrb.mxu1 %v1077_v51 }
 0x245   : > { %1229 = vmatpush.xpose.msra.mxu1 %v1023_v47  ;;  %v893_v61 = vpop.f32.mrf.mxu1 }
 0x247   : > { %v854_v58 = vpop.f32.mrf.mxu0 }
 0x24b   : > { %v768_v52 = vpop.f32.mrf.mxu2 }
 0x24e   : > { %v899_v7 = vpop.f32.mrf.mxu1 }
 0x24f   : > { %v859_v3 = vpop.f32.mrf.mxu0 }
 0x253   : > { %v776_v54 = vpop.f32.mrf.mxu2  ;;  %v818_v55 = vpop.f32.mrf.mxu3 }
 0x254   : > { %v819_v62 = vadd.f32 %v818_v55, %v768_v52  ;;  %v5516_v55 = vld [vmem:[%s6415_s5 + $0x10] sm:$0xff] }
 0x256   : > { %v855_v2 = vadd.f32 %v854_v58, %v819_v62  ;;  %v905_v29 = vpop.f32.mrf.mxu1 }
 0x257   : > { %v864_v18 = vpop.f32.mrf.mxu0 }
 0x258   : > { %v894_v4 = vadd.f32 %v893_v61, %v855_v2 }
 0x25b   : > { %v784_v56 = vpop.f32.mrf.mxu2  ;;  %v822_v57 = vpop.f32.mrf.mxu3 }
 0x25c   : > { %v823_v6 = vadd.f32 %v822_v57, %v776_v54 }
 0x25e   : > { %v860_v15 = vadd.f32 %v859_v3, %v823_v6  ;;  %v911_v61 = vpop.f32.mrf.mxu1 }
 0x25f   : > { %v869_v50 = vpop.f32.mrf.mxu0 }
 0x260   : > { %v900_v19 = vadd.f32 %v899_v7, %v860_v15 }
 0x263   : > { %v792_v59 = vpop.f32.mrf.mxu2  ;;  %v826_v60 = vpop.f32.mrf.mxu3 }
 0x264   : > { %v827_v22 = vadd.f32 %v826_v60, %v784_v56 }
 0x266   : > { %v865_v34 = vadd.f32 %v864_v18, %v827_v22 }
 0x268   : > { %v906_v47 = vadd.f32 %v905_v29, %v865_v34 }
 0x26b   : > { %v830_v63 = vpop.f32.mrf.mxu3  ;;  %v935_v1 = vpop.f32.mrf.mxu2 }
 0x26c   : > { %v936_v9 = vadd.f32 %v935_v1, %v894_v4  ;;  %v831_v48 = vadd.f32 %v830_v63, %v792_v59 }
 0x26e   : > { %v870_v58 = vadd.f32 %v869_v50, %v831_v48 }
 0x270   : > { %v912_v2 = vadd.f32 %v911_v61, %v870_v58 }
 0x273   : > { %v939_v10 = vpop.f32.mrf.mxu2  ;;  %v969_v14 = vpop.f32.mrf.mxu3 }
 0x274   : > { %v970_v16 = vadd.f32 %v969_v14, %v936_v9  ;;  %v940_v28 = vadd.f32 %v939_v10, %v900_v19  ;;  %v5523_v9 = vld [vmem:[%s6415_s5 + $0x18] sm:$0xff] }
 0x276   : > { %v984_v17 = vmul.f32 %v970_v16, %v5498_v11 }
 0x278   : > { %v995_v23 = vsel %vm503_vm0, %v984_v17, 0 }
 0x279   : > { %v5502_v27 = vand.u32 4294901760, %v995_v23 }
 0x27b   : > { %v1026_v30 = vsub.f32 %v995_v23, %v5502_v27  ;;  %v973_v33 = vpop.f32.mrf.mxu3  ;;  %1080 = vmatmul.f32.vlgmr.msrb.gmra.mxu1 %v5502_v27  ;;  %v943_v39 = vpop.f32.mrf.mxu2 }
 0x27c   : > { %v974_v38 = vadd.f32 %v973_v33, %v940_v28  ;;  %v944_v54 = vadd.f32 %v943_v39, %v906_v47 }
 0x27d   : > { %1116 = vmatmul.f32.vlgmr.msrb.gmra.mxu2 %v1026_v30  ;;  %v1027_v43 = vand.u32 4294901760, %v1026_v30 }
 0x27e   : > { %v985_v45 = vmul.f32 %v974_v38, %v5508_v32 }
 0x27f   : > { %1155 = vmatmul.f32.vlgmr.msrb.gmra.mxu3 %v1027_v43  ;;  %v1028_v46 = vsub.f32 %v1026_v30, %v1027_v43 }
 0x280   : > { %v998_v49 = vsel %vm503_vm0, %v985_v45, 0 }
 0x281   : > { %v1033_v51 = vand.u32 4294901760, %v998_v49  ;;  %v1029_v52 = vand.u32 4294901760, %v1028_v46  ;;  %v5105_v46 = vld [vmem:[%s5363_s18] ss:$0 sm:$0xff] }
 0x283   : > { %v977_v56 = vpop.f32.mrf.mxu3  ;;  %1030 = vmatmul.f32.vlgmr.msrb.gmra.mxu0 %v1029_v52  ;;  %1084 = vmatmul.f32.gmra.mxu1 %v1033_v51  ;;  %v1034_v57 = vsub.f32 %v998_v49, %v1033_v51  ;;  %v947_v63 = vpop.f32.mrf.mxu2 }
 0x284   : > { %v978_v60 = vadd.f32 %v977_v56, %v944_v54  ;;  %v948_v7 = vadd.f32 %v947_v63, %v912_v2 }
 0x285   : > { %1121 = vmatmul.f32.gmra.mxu2 %v1034_v57  ;;  %v1035_v59 = vand.u32 4294901760, %v1034_v57 }
 0x286   : > { %v986_v62 = vmul.f32 %v978_v60, %v5516_v55 }
 0x287   : > { %1161 = vmatmul.f32.gmra.mxu3 %v1035_v59  ;;  %v1036_v1 = vsub.f32 %v1034_v57, %v1035_v59 }
 0x288   : > { %v1001_v3 = vsel %vm503_vm0, %v986_v62, 0 }
 0x289   : > { %v1041_v4 = vand.u32 4294901760, %v1001_v3  ;;  %v1037_v6 = vand.u32 4294901760, %v1036_v1 }
 0x28b   : > { %v981_v10 = vpop.f32.mrf.mxu3  ;;  %1038 = vmatmul.f32.gmra.mxu0 %v1037_v6  ;;  %1088 = vmatmul.f32.gmra.mxu1 %v1041_v4  ;;  %v1042_v14 = vsub.f32 %v1001_v3, %v1041_v4 }
 0x28c   : > { %v982_v15 = vadd.f32 %v981_v10, %v948_v7 }
 0x28d   : > { %1126 = vmatmul.f32.gmra.mxu2 %v1042_v14  ;;  %v1043_v16 = vand.u32 4294901760, %v1042_v14 }
 0x28e   : > { %v987_v17 = vmul.f32 %v982_v15, %v5523_v9 }
 0x28f   : > { %1167 = vmatmul.f32.gmra.mxu3 %v1043_v16  ;;  %v1044_v18 = vsub.f32 %v1042_v14, %v1043_v16 }
 0x290   : > { %v1004_v19 = vsel %vm503_vm0, %v987_v17, 0 }
 0x291   : > { %v1049_v22 = vand.u32 4294901760, %v1004_v19  ;;  %v1045_v23 = vand.u32 4294901760, %v1044_v18 }
 0x293   : > { %1046 = vmatmul.f32.gmra.mxu0 %v1045_v23  ;;  %1092 = vmatmul.f32.gmra.mxu1 %v1049_v22  ;;  %v1050_v28 = vsub.f32 %v1004_v19, %v1049_v22 }
 0x295   : > { %1131 = vmatmul.f32.gmra.mxu2 %v1050_v28  ;;  %v1051_v29 = vand.u32 4294901760, %v1050_v28 }
 0x297   : > { %1173 = vmatmul.f32.gmra.mxu3 %v1051_v29  ;;  %v1052_v30 = vsub.f32 %v1050_v28, %v1051_v29 }
 0x299   : > { %v1053_v33 = vand.u32 4294901760, %v1052_v30 }
 0x29b   : > { %1054 = vmatmul.f32.gmra.mxu0 %v1053_v33  ;;  %1231 = vmatmul.f32.vlgmr.msra.gmra.mxu1 %v5502_v27 }
 0x2a3   : > { %1197 = vmatmul.f32.vlgmr.msra.gmra.mxu0 %v5502_v27  ;;  %1235 = vmatmul.f32.gmra.mxu1 %v1033_v51 }
 0x2ab   : > { %1201 = vmatmul.f32.gmra.mxu0 %v1033_v51  ;;  %1239 = vmatmul.f32.gmra.mxu1 %v1041_v4 }
 0x2b3   : > { %1205 = vmatmul.f32.gmra.mxu0 %v1041_v4  ;;  %1243 = vmatmul.f32.gmra.mxu1 %v1049_v22 }
 0x2bb   : > { %1209 = vmatmul.f32.gmra.mxu0 %v1049_v22 }
 0x2f8   : > { %v1081_v34 = vpop.f32.mrf.mxu1 }
 0x300   : > { %v1031_v38 = vpop.f32.mrf.mxu0  ;;  %v1085_v39 = vpop.f32.mrf.mxu1 }
 0x301   : > { %v1032_v49 = vadd.f32 %v5105_v46, %v1031_v38  ;;  %v1117_v50 = vpop.f32.mrf.mxu2 }
 0x302   : > { %v1156_v54 = vpop.f32.mrf.mxu3 }
 0x303   : > { %v1082_v52 = vadd.f32 %v1081_v34, %v1032_v49 }
 0x305   : > { %v1118_v27 = vadd.f32 %v1117_v50, %v1082_v52 }
 0x307   : > { %v1157_v60 = vadd.f32 %v1156_v54, %v1118_v27 }
 0x308   : > { %v1039_v43 = vpop.f32.mrf.mxu0  ;;  %v1089_v45 = vpop.f32.mrf.mxu1 }
 0x309   : > { %v1040_v57 = vadd.f32 %v5105_v46, %v1039_v43  ;;  %v1122_v58 = vpop.f32.mrf.mxu2 }
 0x30a   : > { %v1162_v63 = vpop.f32.mrf.mxu3 }
 0x30b   : > { %v1086_v61 = vadd.f32 %v1085_v39, %v1040_v57 }
 0x30d   : > { %v1123_v1 = vadd.f32 %v1122_v58, %v1086_v61 }
 0x30f   : > { %v1163_v7 = vadd.f32 %v1162_v63, %v1123_v1 }
 0x310   : > { %v1047_v47 = vpop.f32.mrf.mxu0  ;;  %v1093_v48 = vpop.f32.mrf.mxu1 }
 0x311   : > { %v1048_v2 = vadd.f32 %v5105_v46, %v1047_v47  ;;  %v1127_v14 = vpop.f32.mrf.mxu2 }
 0x312   : > { %v1168_v22 = vpop.f32.mrf.mxu3 }
 0x313   : > { %v1090_v10 = vadd.f32 %v1089_v45, %v1048_v2 }
 0x315   : > { %v1128_v17 = vadd.f32 %v1127_v14, %v1090_v10 }
 0x317   : > { %v1169_v28 = vadd.f32 %v1168_v22, %v1128_v17 }
 0x318   : > { %v1055_v56 = vpop.f32.mrf.mxu0  ;;  %v1232_v51 = vpop.f32.mrf.mxu1 }
 0x319   : > { %v1056_v18 = vadd.f32 %v5105_v46, %v1055_v56  ;;  %v1132_v38 = vpop.f32.mrf.mxu2 }
 0x31a   : > { %v1174_v47 = vpop.f32.mrf.mxu3 }
 0x31b   : > { %v1094_v29 = vadd.f32 %v1093_v48, %v1056_v18 }
 0x31d   : > { %v1133_v39 = vadd.f32 %v1132_v38, %v1094_v29 }
 0x31f   : > { %v1175_v49 = vadd.f32 %v1174_v47, %v1133_v39 }
 0x320   : > { %v1198_v59 = vpop.f32.mrf.mxu0  ;;  %v1236_v6 = vpop.f32.mrf.mxu1 }
 0x321   : > { %v1199_v62 = vadd.f32 %v1198_v59, %v1157_v60 }
 0x323   : > { %v1233_v3 = vadd.f32 %v1232_v51, %v1199_v62 }
 0x325   : > { %v1247_v4 = vsel %vm732_vm5, %v1233_v3, -inf }
 0x326   : > { %1248 = vmax.xlane.f32.xlu1 %v1247_v4 }
 0x328   : > { %v1202_v15 = vpop.f32.mrf.mxu0  ;;  %v1240_v30 = vpop.f32.mrf.mxu1 }
 0x329   : > { %v1203_v16 = vadd.f32 %v1202_v15, %v1163_v7 }
 0x32b   : > { %v1237_v19 = vadd.f32 %v1236_v6, %v1203_v16 }
 0x32d   : > { %v1250_v23 = vsel %vm732_vm5, %v1237_v19, -inf }
 0x32e   : > { %1251 = vmax.xlane.f32.xlu2 %v1250_v23 }
 0x330   : > { %v1206_v33 = vpop.f32.mrf.mxu0  ;;  %v1244_v52 = vpop.f32.mrf.mxu1 }
 0x331   : > { %v1207_v34 = vadd.f32 %v1206_v33, %v1169_v28 }
 0x333   : > { %v1241_v43 = vadd.f32 %v1240_v30, %v1207_v34 }
 0x335   : > { %v1253_v45 = vsel %vm732_vm5, %v1241_v43, -inf }
 0x336   : > { %1254 = vmax.xlane.f32.xlu2 %v1253_v45 }
 0x338   : > { %v1210_v50 = vpop.f32.mrf.mxu0 }
 0x339   : > { %v1211_v46 = vadd.f32 %v1210_v50, %v1175_v49 }
 0x33b   : > { %v1245_v54 = vadd.f32 %v1244_v52, %v1211_v46 }
 0x33d   : > { %v1256_v56 = vsel %vm732_vm5, %v1245_v54, -inf }
 0x33e   : > { %1257 = vmax.xlane.f32.xlu0 %v1256_v56 }
 0x399   : > { %v1249_v27 = vpop.xlane.xlu1 %1248 }
 0x39a   : > { %v1259_v48 = vsub.f32 %v1233_v3, %v1249_v27 }
 0x39c   : > { %v1263_v57 = vmul.f32 1.442695, %v1259_v48 }
 0x39e   : > { %5110 = vpow2.f32 %v1263_v57 }
 0x3a1   : > { %v1252_v51 = vpop.xlane.xlu2 %1251 }
 0x3a2   : > { %v1260_v58 = vsub.f32 %v1237_v19, %v1252_v51 }
 0x3a4   : > { %v5111_v60 = vpop.eup %5110  ;;  %v1265_v61 = vmul.f32 1.442695, %v1260_v58 }
 0x3a5   : > { %v1271_v59 = vsel %vm732_vm5, %v5111_v60, 0.0 }
 0x3a6   : > { %5112 = vpow2.f32 %v1265_v61  ;;  %1272 = vadd.xlane.f32.xlu2 %v1271_v59 }
 0x3a9   : > { %v1255_v62 = vpop.xlane.xlu2 %1254 }
 0x3aa   : > { %v1261_v63 = vsub.f32 %v1241_v43, %v1255_v62 }
 0x3ac   : > { %v5113_v1 = vpop.eup %5112  ;;  %v1267_v2 = vmul.f32 1.442695, %v1261_v63 }
 0x3ad   : > { %v1274_v4 = vsel %vm732_vm5, %v5113_v1, 0.0 }
 0x3ae   : > { %5114 = vpow2.f32 %v1267_v2  ;;  %1275 = vadd.xlane.f32.xlu0 %v1274_v4 }
 0x3b1   : > { %v1258_v6 = vpop.xlane.xlu0 %1257 }
 0x3b2   : > { %v1262_v3 = vsub.f32 %v1245_v54, %v1258_v6 }
 0x3b4   : > { %v5115_v7 = vpop.eup %5114  ;;  %v1269_v10 = vmul.f32 1.442695, %v1262_v3 }
 0x3b5   : > { %v1277_v14 = vsel %vm732_vm5, %v5115_v7, 0.0 }
 0x3b6   : > { %5116 = vpow2.f32 %v1269_v10  ;;  %1278 = vadd.xlane.f32.xlu0 %v1277_v14 }
 0x3bc   : > { %v5117_v15 = vpop.eup %5116 }
 0x3bd   : > { %v1280_v16 = vsel %vm732_vm5, %v5117_v15, 0.0 }
 0x3be   : > { %1291 = vrot.lane.b32.xlu2 %v5427_v21, %s6425_s26  ;;  %1281 = vadd.xlane.f32.xlu0 %v1280_v16  ;;  %s490_s26 = scalar_lea.vmem %s6473_s2, %s5356_s25  ;;  %s478_s25 = sand.u32 1, %s5218_s30  }
 0x3bf   : > { %s5028_s27 = sshll.u32 %s478_s25, 3  ;;  %s4932_s17 = scalar_lea.sflag [#allocation3], %s478_s25 }
 0x3c0   : > { %s5180_s2 = scalar_lea.hbm %s5179_s1, 8 }
 0x3c1   : > { %p5181_p11 = scmp.ne.s32.totalorder %s5179_s1, %s5180_s2  ;;  %p5186_p1 = scmp.lt.s32.totalorder %s5184_s21, %s5180_s2 }
 0x3c3   : > { %p5182_p12 = pnand %p5181_p11, %p5344_p5  ;;  %p5187_p2 = por %p5186_p1, %p5185_p0 }
 0x3c5   : > { %p5183_p13 = pneg %p5182_p12 }
 0x3c7   : > { %p5188_p3 = pnand %p5187_p2, %p5183_p13 }
 0x419   : > { %v1273_v17 = vpop.xlane.xlu2 %1272 }
 0x41a   : > { %5118 = vrcp.f32 %v1273_v17 }
 0x420   : > { %v5119_v18 = vpop.eup %5118 }
 0x421   : > { %v1287_v19 = vmul.f32 %v5119_v18, %v5111_v60  ;;  %v1292_v22 = vpop.permute.xlu2 %1291  ;;  %v1276_v23 = vpop.xlane.xlu0 %1275 }
 0x422   : > { %v1321_v28 = vand.u32 4294901760, %v1292_v22  ;;  %5120 = vrcp.f32 %v1276_v23 }
 0x423   : > { %v1295_v29 = vsel %vm732_vm5, %v1287_v19, 0 }
 0x424   : > { %v1372_v30 = vsub.f32 %v1292_v22, %v1321_v28  ;;  %1322 = vmatpush.msra.mxu2 %v1321_v28  ;;  %1449 = vmatpush.msrb.mxu1 %v1321_v28  ;;  %v1323_v33 = vand.u32 4294901760, %v1295_v29 }
 0x426   : > { %v1373_v34 = vand.u32 4294901760, %v1372_v30  ;;  %1411 = vmatpush.msrb.mxu0 %v1372_v30  ;;  %v1324_v38 = vsub.f32 %v1295_v29, %v1323_v33 }
 0x428   : > { %v5121_v39 = vpop.eup %5120  ;;  %v1374_v21 = vsub.f32 %v1372_v30, %v1373_v34  ;;  %1414 = vmatmul.f32.vlgmr.msrb.gmra.mxu0 %v1324_v38  ;;  %1493 = vmatpush.msrb.mxu2 %v1373_v34  ;;  %v1325_v43 = vand.u32 4294901760, %v1324_v38 }
 0x429   : > { %v1279_v45 = vpop.xlane.xlu0 %1278  ;;  %v1288_v47 = vmul.f32 %v5121_v39, %v5113_v1 }
 0x42a   : > { %v1375_v49 = vand.u32 4294901760, %v1374_v21  ;;  %5122 = vrcp.f32 %v1279_v45  ;;  %1453 = vmatmul.f32.vlgmr.msrb.gmra.mxu1 %v1325_v43  ;;  %v1326_v50 = vsub.f32 %v1324_v38, %v1325_v43 }
 0x42b   : > { %v1298_v46 = vsel %vm732_vm5, %v1288_v47, 0 }
 0x42c   : > { %1376 = vmatpush.msra.mxu3 %v1375_v49  ;;  %v1327_v52 = vand.u32 4294901760, %v1326_v50  ;;  %v1331_v54 = vand.u32 4294901760, %v1298_v46 }
 0x42d   : > { %1378 = vmatmul.f32.vlgmr.msra.gmra.mxu3 %v1323_v33 }
 0x42e   : > { %1527 = vmatpush.msrb.mxu3 %v1321_v28  ;;  %1328 = vmatmul.f32.vlgmr.msra.gmra.mxu2 %v1327_v52  ;;  %v1332_v56 = vsub.f32 %v1298_v46, %v1331_v54 }
 0x430   : > { %v5123_v27 = vpop.eup %5122  ;;  %1419 = vmatmul.f32.gmra.mxu0 %v1332_v56  ;;  %v1333_v48 = vand.u32 4294901760, %v1332_v56 }
 0x431   : > { %v1282_v57 = vpop.xlane.xlu0 %1281  ;;  %v1289_v51 = vmul.f32 %v5123_v27, %v5115_v7 }
 0x432   : > { %5124 = vrcp.f32 %v1282_v57  ;;  %1459 = vmatmul.f32.gmra.mxu1 %v1333_v48  ;;  %v1334_v58 = vsub.f32 %v1332_v56, %v1333_v48 }
 0x433   : > { %v1301_v60 = vsel %vm732_vm5, %v1289_v51, 0 }
 0x434   : > { %v1335_v61 = vand.u32 4294901760, %v1334_v58  ;;  %v1339_v59 = vand.u32 4294901760, %v1301_v60 }
 0x435   : > { %1382 = vmatmul.f32.gmra.mxu3 %v1331_v54 }
 0x436   : > { %1336 = vmatmul.f32.gmra.mxu2 %v1335_v61  ;;  %v1340_v62 = vsub.f32 %v1301_v60, %v1339_v59 }
 0x438   : > { %v5125_v63 = vpop.eup %5124  ;;  %1424 = vmatmul.f32.gmra.mxu0 %v1340_v62  ;;  %v1341_v1 = vand.u32 4294901760, %v1340_v62 }
 0x439   : > { %v1290_v2 = vmul.f32 %v5125_v63, %v5117_v15 }
 0x43a   : > { %1465 = vmatmul.f32.gmra.mxu1 %v1341_v1  ;;  %v1342_v4 = vsub.f32 %v1340_v62, %v1341_v1 }
 0x43b   : > { %v1304_v6 = vsel %vm732_vm5, %v1290_v2, 0 }
 0x43c   : > { %v1343_v3 = vand.u32 4294901760, %v1342_v4  ;;  %v1347_v7 = vand.u32 4294901760, %v1304_v6 }
 0x43d   : > { %1386 = vmatmul.f32.gmra.mxu3 %v1339_v59 }
 0x43e   : > { %1344 = vmatmul.f32.gmra.mxu2 %v1343_v3  ;;  %v1348_v10 = vsub.f32 %v1304_v6, %v1347_v7 }
 0x440   : > { %1429 = vmatmul.f32.gmra.mxu0 %v1348_v10  ;;  %v1349_v14 = vand.u32 4294901760, %v1348_v10 }
 0x442   : > { %1471 = vmatmul.f32.gmra.mxu1 %v1349_v14  ;;  %v1350_v16 = vsub.f32 %v1348_v10, %v1349_v14 }
 0x444   : > { %v1351_v17 = vand.u32 4294901760, %v1350_v16 }
 0x445   : > { %1390 = vmatmul.f32.gmra.mxu3 %v1347_v7 }
 0x446   : > { %1352 = vmatmul.f32.gmra.mxu2 %v1351_v17 }
 0x44d   : > { %1529 = vmatmul.f32.vlgmr.msrb.gmra.mxu3 %v1323_v33 }
 0x44e   : > { %1495 = vmatmul.f32.vlgmr.msrb.gmra.mxu2 %v1323_v33 }
 0x455   : > { %1533 = vmatmul.f32.gmra.mxu3 %v1331_v54 }
 0x456   : > { %1499 = vmatmul.f32.gmra.mxu2 %v1331_v54 }
 0x45d   : > { %1537 = vmatmul.f32.gmra.mxu3 %v1339_v59 }
 0x45e   : > { %1503 = vmatmul.f32.gmra.mxu2 %v1339_v59  ;;  %v498_v59 = vld [vmem:[%s6414_s4] sm:$0xff] }
 0x45f   : > { %v1550_v6 = vsel %vm503_vm0, %v498_v59, 0  ;;  %v1740_v59 = vld [vmem:[%s6420_s10 + $0x18] sm:$0xff] }
 0x460   : > { %v5549_v17 = vand.u32 4294901760, %v1550_v6 }
 0x462   : > { %6453 = vst [vmem:[#allocation6_spill] sm:$0xff] %v5549_v17 }
 0x465   : > { %1541 = vmatmul.f32.gmra.mxu3 %v1347_v7 }
 0x466   : > { %1507 = vmatmul.f32.gmra.mxu2 %v1347_v7 }
 0x4a5   : > { %v1415_v29 = vpop.f32.mrf.mxu0 }
 0x4a7   : > { %v1454_v34 = vpop.f32.mrf.mxu1 }
 0x4ad   : > { %v1420_v39 = vpop.f32.mrf.mxu0 }
 0x4af   : > { %v1460_v33 = vpop.f32.mrf.mxu1 }
 0x4b0   : > { %v1379_v15 = vpop.f32.mrf.mxu3 }
 0x4b1   : > { %v1329_v18 = vpop.f32.mrf.mxu2 }
 0x4b2   : > { %v1380_v47 = vadd.f32 %v1379_v15, %v1329_v18 }
 0x4b4   : > { %v1416_v56 = vadd.f32 %v1415_v29, %v1380_v47 }
 0x4b5   : > { %v1425_v46 = vpop.f32.mrf.mxu0 }
 0x4b6   : > { %v1455_v58 = vadd.f32 %v1454_v34, %v1416_v56 }
 0x4b7   : > { %v1466_v48 = vpop.f32.mrf.mxu1 }
 0x4b8   : > { %v1383_v19 = vpop.f32.mrf.mxu3 }
 0x4b9   : > { %v1337_v22 = vpop.f32.mrf.mxu2 }
 0x4ba   : > { %v1384_v45 = vadd.f32 %v1383_v19, %v1337_v22 }
 0x4bc   : > { %v1421_v54 = vadd.f32 %v1420_v39, %v1384_v45 }
 0x4bd   : > { %v1430_v4 = vpop.f32.mrf.mxu0 }
 0x4be   : > { %v1461_v57 = vadd.f32 %v1460_v33, %v1421_v54 }
 0x4bf   : > { %v1472_v15 = vpop.f32.mrf.mxu1 }
 0x4c0   : > { %v1387_v23 = vpop.f32.mrf.mxu3 }
 0x4c1   : > { %v1345_v28 = vpop.f32.mrf.mxu2 }
 0x4c2   : > { %v1388_v49 = vadd.f32 %v1387_v23, %v1345_v28 }
 0x4c4   : > { %v1426_v27 = vadd.f32 %v1425_v46, %v1388_v49 }
 0x4c6   : > { %v1467_v61 = vadd.f32 %v1466_v48, %v1426_v27 }
 0x4c8   : > { %v1391_v30 = vpop.f32.mrf.mxu3 }
 0x4c9   : > { %v1353_v38 = vpop.f32.mrf.mxu2 }
 0x4ca   : > { %v1392_v51 = vadd.f32 %v1391_v30, %v1353_v38  ;;  %v5554_v30 = vsub.f32 %v1550_v6, %v5549_v17 }
 0x4cc   : > { %v1431_v3 = vadd.f32 %v1430_v4, %v1392_v51  ;;  %6454 = vst [vmem:[#allocation7_spill] sm:$0xff] %v5554_v30  ;;  %v1738_v4 = vld [vmem:[%s6420_s10 + $0x8] sm:$0xff] }
 0x4ce   : > { %v1473_v19 = vadd.f32 %v1472_v15, %v1431_v3 }
 0x4d0   : > { %v1530_v21 = vpop.f32.mrf.mxu3 }
 0x4d1   : > { %v1496_v43 = vpop.f32.mrf.mxu2 }
 0x4d2   : > { %v1497_v1 = vadd.f32 %v1496_v43, %v1455_v58  ;;  %v5558_v43 = vand.u32 4294901760, %v5554_v30 }
 0x4d4   : > { %v1531_v14 = vadd.f32 %v1530_v21, %v1497_v1  ;;  %6455 = vst [vmem:[#allocation8_spill] sm:$0xff] %v5558_v43 }
 0x4d6   : > { %v1545_v23 = vmul.f32 %v1531_v14, %v5498_v11  ;;  %v1575_v11 = vsub.f32 %v5554_v30, %v5558_v43 }
 0x4d8   : > { %v1534_v50 = vpop.f32.mrf.mxu3 }
 0x4d9   : > { %v1500_v52 = vpop.f32.mrf.mxu2 }
 0x4da   : > { %v1501_v60 = vadd.f32 %v1500_v52, %v1461_v57 }
 0x4dc   : > { %v1535_v7 = vadd.f32 %v1534_v50, %v1501_v60 }
 0x4de   : > { %v1546_v18 = vmul.f32 %v1535_v7, %v5508_v32  ;;  %v1761_v7 = vand.u32 4294901760, %v1738_v4 }
 0x4e0   : > { %v1538_v62 = vpop.f32.mrf.mxu3  ;;  %v1568_v39 = vand.u32 4294901760, %v1546_v18  ;;  %v1799_v15 = vsub.f32 %v1738_v4, %v1761_v7 }
 0x4e1   : > { %v1504_v63 = vpop.f32.mrf.mxu2 }
 0x4e2   : > { %v1505_v2 = vadd.f32 %v1504_v63, %v1467_v61  ;;  %v1606_v45 = vsub.f32 %v1546_v18, %v1568_v39  ;;  %v1739_v63 = vld [vmem:[%s6420_s10 + $0x10] sm:$0xff] }
 0x4e4   : > { %v1539_v10 = vadd.f32 %v1538_v62, %v1505_v2  ;;  %v1607_v52 = vand.u32 4294901760, %v1606_v45  ;;  %v1757_v62 = vand.u32 4294901760, %v1740_v59  ;;  %v1759_v2 = vand.u32 4294901760, %v1739_v63 }
 0x4e6   : > { %v1547_v16 = vmul.f32 %v1539_v10, %v5516_v55  ;;  %v1570_v55 = vand.u32 4294901760, %v1545_v23  ;;  %v1608_v57 = vsub.f32 %v1606_v45, %v1607_v52  ;;  %v1787_v1 = vsub.f32 %v1740_v59, %v1757_v62  ;;  %1858 = vmatpush.msra.mxu3 %v1757_v62  ;;  %v1737_v10 = vld [vmem:[%s6420_s10] sm:$0xff] }
 0x4e7   : > { %v1793_v3 = vsub.f32 %v1739_v63, %v1759_v2  ;;  %v1763_v18 = vand.u32 4294901760, %v1737_v10 }
 0x4e8   : > { %v1566_v29 = vand.u32 4294901760, %v1547_v16  ;;  %v1542_v34 = vpop.f32.mrf.mxu3  ;;  %v1612_v50 = vsub.f32 %v1545_v23, %v1570_v55  ;;  %v1609_v60 = vand.u32 4294901760, %v1608_v57  ;;  %v1788_v6 = vand.u32 4294901760, %v1787_v1  ;;  %1829 = vmatpush.msra.mxu2 %v1787_v1  ;;  %1860 = vmatpush.msra.mxu3 %v1759_v2 }
 0x4e9   : > { %v1508_v22 = vpop.f32.mrf.mxu2  ;;  %v1800_v23 = vand.u32 4294901760, %v1799_v15 }
 0x4ea   : > { %v1509_v28 = vadd.f32 %v1508_v22, %v1473_v19  ;;  %v1600_v33 = vsub.f32 %v1547_v16, %v1566_v29  ;;  %v1613_v27 = vand.u32 4294901760, %v1612_v50  ;;  %v1789_v14 = vsub.f32 %v1787_v1, %v1788_v6  ;;  %1832 = vmatpush.msra.mxu2 %v1793_v3  ;;  %1862 = vmatpush.msra.mxu3 %v1761_v7 }
 0x4eb   : > { %v1794_v16 = vand.u32 4294901760, %v1793_v3 }
 0x4ec   : > { %v1543_v38 = vadd.f32 %v1542_v34, %v1509_v28  ;;  %v1601_v49 = vand.u32 4294901760, %v1600_v33  ;;  %v1614_v58 = vsub.f32 %v1612_v50, %v1613_v27  ;;  %v1790_v19 = vand.u32 4294901760, %v1789_v14  ;;  %1835 = vmatpush.msra.mxu2 %v1799_v15  ;;  %1864 = vmatpush.msra.mxu3 %v1763_v18 }
 0x4ed   : > { %v1795_v22 = vsub.f32 %v1793_v3, %v1794_v16  ;;  %v1805_v28 = vsub.f32 %v1737_v10, %v1763_v18  ;;  %v1801_v34 = vsub.f32 %v1799_v15, %v1800_v23 }
 0x4ee   : > { %v1548_v21 = vmul.f32 %v1543_v38, %v5523_v9  ;;  %v5562_v9 = vand.u32 4294901760, %v1575_v11  ;;  %v1602_v56 = vsub.f32 %v1600_v33, %v1601_v49  ;;  %v1615_v61 = vand.u32 4294901760, %v1614_v58 }
 0x4ef   : > { %v1806_v38 = vand.u32 4294901760, %v1805_v28  ;;  %1838 = vmatpush.msra.mxu2 %v1805_v28 }
 0x4f0   : > { %v1564_v32 = vand.u32 4294901760, %v1548_v21  ;;  %v1603_v51 = vand.u32 4294901760, %v1602_v56 }
 0x4f2   : > { %1565 = vmatpush.msra.mxu0 %v1564_v32  ;;  %v1594_v47 = vsub.f32 %v1548_v21, %v1564_v32  ;;  %v1807_v21 = vsub.f32 %v1805_v28, %v1806_v38 }
 0x4f4   : > { %1567 = vmatpush.msra.mxu0 %v1566_v29  ;;  %v1595_v46 = vand.u32 4294901760, %v1594_v47 }
 0x4f6   : > { %1569 = vmatpush.msra.mxu0 %v1568_v39  ;;  %v1596_v54 = vsub.f32 %v1594_v47, %v1595_v46 }
 0x4f8   : > { %1571 = vmatpush.msra.mxu0 %v1570_v55  ;;  %v1597_v48 = vand.u32 4294901760, %v1596_v54 }
 0x4f9   : > { %1577 = vmatmul.f32.vlgmr.msra.gmra.mxu0 %v5562_v9 }
 0x4fa   : > { %1636 = vmatpush.msrb.mxu0 %v1594_v47  ;;  %1598 = vmatpush.msra.mxu1 %v1597_v48 }
 0x4fc   : > { %1639 = vmatpush.msrb.mxu0 %v1600_v33  ;;  %1604 = vmatpush.msra.mxu1 %v1603_v51 }
 0x4fe   : > { %1642 = vmatpush.msrb.mxu0 %v1606_v45  ;;  %1610 = vmatpush.msra.mxu1 %v1609_v60 }
 0x500   : > { %1645 = vmatpush.msrb.mxu0 %v1612_v50  ;;  %1616 = vmatpush.msra.mxu1 %v1615_v61  ;;  %v5586_v61 = vld [vmem:[%s6423_s13] sm:$0xff] }
 0x501   : > { %1618 = vmatmul.f32.vlgmr.msra.gmra.mxu1 %v5549_v17  ;;  %1648 = vmatmul.f32.vlgmr.msrb.gmra.mxu0 %v5554_v30  ;;  %v1741_v59 = vperm.slane %v5586_v61, 1 }
 0x502   : > { %1694 = vmatpush.msra.mxu0 %v1595_v46  ;;  %1665 = vmatpush.msrb.mxu1 %v1564_v32 }
 0x504   : > { %1698 = vmatpush.msra.mxu0 %v1601_v49  ;;  %1667 = vmatpush.msrb.mxu1 %v1566_v29 }
 0x506   : > { %1702 = vmatpush.msra.mxu0 %v1607_v52  ;;  %1669 = vmatpush.msrb.mxu1 %v1568_v39 }
 0x508   : > { %1706 = vmatpush.msra.mxu0 %v1613_v27  ;;  %1671 = vmatpush.msrb.mxu1 %v1570_v55 }
 0x509   : > { %1675 = vmatmul.f32.vlgmr.msrb.gmra.mxu1 %v5558_v43  ;;  %1708 = vmatmul.f32.vlgmr.msra.gmra.mxu0 %v5549_v17 }
 0x50a   : > { %1725 = vmatpush.msra.mxu1 %v1564_v32  ;;  %1758 = vmatpush.msrb.mxu0 %v1757_v62 }
 0x50c   : > { %1727 = vmatpush.msra.mxu1 %v1566_v29  ;;  %1760 = vmatpush.msrb.mxu0 %v1759_v2  ;;  %v1796_v29 = vand.u32 4294901760, %v1795_v22 }
 0x50e   : > { %1729 = vmatpush.msra.mxu1 %v1568_v39  ;;  %1762 = vmatpush.msrb.mxu0 %v1761_v7  ;;  %v1802_v39 = vand.u32 4294901760, %v1801_v34 }
 0x510   : > { %1731 = vmatpush.msra.mxu1 %v1570_v55  ;;  %1764 = vmatpush.msrb.mxu0 %v1763_v18  ;;  %v1808_v55 = vand.u32 4294901760, %v1807_v21 }
 0x511   : > { %1733 = vmatmul.f32.vlgmr.msra.gmra.mxu1 %v5549_v17 }
 0x512   : > { %1791 = vmatpush.msrb.mxu1 %v1790_v19  ;;  %1887 = vmatpush.msra.mxu0 %v1788_v6 }
 0x514   : > { %1797 = vmatpush.msrb.mxu1 %v1796_v29  ;;  %1891 = vmatpush.msra.mxu0 %v1794_v16 }
 0x516   : > { %1803 = vmatpush.msrb.mxu1 %v1802_v39  ;;  %1895 = vmatpush.msra.mxu0 %v1800_v23 }
 0x518   : > { %1809 = vmatpush.msrb.mxu1 %v1808_v55  ;;  %1899 = vmatpush.msra.mxu0 %v1806_v38  ;;  %v1960_v38 = vld [vmem:[%s6421_s11 + $0x18] sm:$0xff] }
 0x519   : > { %v1977_v39 = vand.u32 4294901760, %v1960_v38 }
 0x51a   : > { %1918 = vmatpush.msra.mxu1 %v1757_v62 }
 0x51b   : > { %v2007_v21 = vsub.f32 %v1960_v38, %v1977_v39  ;;  %1978 = vmatpush.msrb.mxu2 %v1977_v39 }
 0x51c   : > { %1920 = vmatpush.msra.mxu1 %v1759_v2 }
 0x51e   : > { %1922 = vmatpush.msra.mxu1 %v1761_v7 }
 0x520   : > { %1924 = vmatpush.msra.mxu1 %v1763_v18 }
 0x576   : > { %v1578_v33 = vpop.f32.mrf.mxu0 }
 0x57e   : > { %v1619_v32 = vpop.f32.mrf.mxu1  ;;  %v1649_v45 = vpop.f32.mrf.mxu0 }
 0x57f   : > { %v1620_v47 = vadd.f32 %v1619_v32, %v1578_v33  ;;  %v1958_v33 = vld [vmem:[%s6421_s11 + $0x8] sm:$0xff]  ;;  %v2008_v32 = vand.u32 4294901760, %v2007_v21 }
 0x581   : > { %v1650_v49 = vadd.f32 %v1649_v45, %v1620_v47  ;;  %v1981_v47 = vand.u32 4294901760, %v1958_v33 }
 0x586   : > { %v1676_v11 = vpop.f32.mrf.mxu1  ;;  %v1709_v46 = vpop.f32.mrf.mxu0 }
 0x587   : > { %v1677_v50 = vadd.f32 %v1676_v11, %v1650_v49  ;;  %v1957_v11 = vld [vmem:[%s6421_s11] sm:$0xff]  ;;  %v2009_v49 = vsub.f32 %v2007_v21, %v2008_v32 }
 0x589   : > { %v1710_v52 = vadd.f32 %v1709_v46, %v1677_v50  ;;  %v2019_v46 = vsub.f32 %v1958_v33, %v1981_v47 }
 0x58e   : > { %v1734_v54 = vpop.f32.mrf.mxu1 }
 0x58f   : > { %v1735_v56 = vadd.f32 %v1734_v54, %v1710_v52  ;;  %v1983_v52 = vand.u32 4294901760, %v1957_v11  ;;  %v2010_v54 = vand.u32 4294901760, %v2009_v49 }
 0x591   : > { %v1743_v27 = vsel %vm503_vm0, %v1735_v56, 0  ;;  %2011 = vmatpush.msrb.mxu3 %v2010_v54 }
 0x592   : > { %v1765_v48 = vand.u32 4294901760, %v1743_v27 }
 0x594   : > { %v1766_v57 = vsub.f32 %v1743_v27, %v1765_v48  ;;  %1811 = vmatmul.f32.vlgmr.msrb.gmra.mxu1 %v1765_v48  ;;  %v2020_v27 = vand.u32 4294901760, %v2019_v46 }
 0x595   : > { %2078 = vmatpush.msrb.mxu1 %v1977_v39 }
 0x596   : > { %1841 = vmatmul.f32.vlgmr.msra.gmra.mxu2 %v1766_v57  ;;  %v1767_v51 = vand.u32 4294901760, %v1766_v57 }
 0x598   : > { %1868 = vmatmul.f32.vlgmr.msra.gmra.mxu3 %v1767_v51  ;;  %v1768_v58 = vsub.f32 %v1766_v57, %v1767_v51  ;;  %v2021_v51 = vsub.f32 %v2019_v46, %v2020_v27 }
 0x59a   : > { %v1769_v60 = vand.u32 4294901760, %v1768_v58 }
 0x59c   : > { %1770 = vmatmul.f32.vlgmr.msrb.gmra.mxu0 %v1769_v60  ;;  %1926 = vmatmul.f32.vlgmr.msra.gmra.mxu1 %v1765_v48  ;;  %v2022_v60 = vand.u32 4294901760, %v2021_v51 }
 0x59d   : > { %2049 = vmatpush.msrb.mxu0 %v2007_v21 }
 0x5a4   : > { %1901 = vmatmul.f32.vlgmr.msra.gmra.mxu0 %v1765_v48  ;;  %v2025_v48 = vsub.f32 %v1957_v11, %v1983_v52 }
 0x5a6   : > { %v2026_v58 = vand.u32 4294901760, %v2025_v48 }
 0x611   : > { %v1812_v62 = vpop.f32.mrf.mxu1 }
 0x619   : > { %v1771_v63 = vpop.f32.mrf.mxu0  ;;  %v1842_v4 = vpop.f32.mrf.mxu2 }
 0x61a   : > { %v1772_v1 = vadd.f32 %v1771_v63, %v1741_v59  ;;  %v1927_v16 = vpop.f32.mrf.mxu1  ;;  %v2027_v59 = vsub.f32 %v2025_v48, %v2026_v58 }
 0x61b   : > { %v1869_v3 = vpop.f32.mrf.mxu3 }
 0x61c   : > { %v1813_v2 = vadd.f32 %v1812_v62, %v1772_v1  ;;  %v2028_v62 = vand.u32 4294901760, %v2027_v59 }
 0x61e   : > { %v1843_v6 = vadd.f32 %v1842_v4, %v1813_v2 }
 0x620   : > { %v1870_v7 = vadd.f32 %v1869_v3, %v1843_v6 }
 0x621   : > { %v1902_v10 = vpop.f32.mrf.mxu0 }
 0x622   : > { %v1903_v14 = vadd.f32 %v1902_v10, %v1870_v7  ;;  %v2174_v10 = vld [vmem:[%s6422_s12 + $0x78] sm:$0xff] }
 0x624   : > { %v1928_v15 = vadd.f32 %v1927_v16, %v1903_v14  ;;  %v2173_v14 = vld [vmem:[%s6422_s12 + $0x70] sm:$0xff]  ;;  %v2172_v16 = vld [vmem:[%s6422_s12 + $0x68] sm:$0xff] }
 0x626   : > { %v1930_v18 = vadd.f32 %v1928_v15, %v5394_v53  ;;  %v1959_v53 = vld [vmem:[%s6421_s11 + $0x10] sm:$0xff]  ;;  %v5619_v15 = vand.u32 4294901760, %v2174_v10 }
 0x627   : > { %v1979_v55 = vand.u32 4294901760, %v1959_v53 }
 0x628   : > { %v1931_v19 = vsel %vm503_vm0, %v1930_v18, 0.0 }
 0x629   : > { %1932 = vadd.xlane.f32.xlu0 %v1931_v19  ;;  %v2013_v45 = vsub.f32 %v1959_v53, %v1979_v55  ;;  %2080 = vmatpush.msrb.mxu1 %v1979_v55  ;;  %v5623_v19 = vand.u32 4294901760, %v2172_v16 }
 0x62a   : > { %1980 = vmatpush.msrb.mxu2 %v1979_v55 }
 0x62b   : > { %v2014_v50 = vand.u32 4294901760, %v2013_v45  ;;  %2052 = vmatpush.msrb.mxu0 %v2013_v45  ;;  %2082 = vmatpush.msrb.mxu1 %v1981_v47 }
 0x62c   : > { %1982 = vmatpush.msrb.mxu2 %v1981_v47 }
 0x62d   : > { %v2015_v56 = vsub.f32 %v2013_v45, %v2014_v50  ;;  %2055 = vmatpush.msrb.mxu0 %v2019_v46  ;;  %2084 = vmatpush.msrb.mxu1 %v1983_v52 }
 0x62e   : > { %1984 = vmatpush.msrb.mxu2 %v1983_v52 }
 0x62f   : > { %v2016_v57 = vand.u32 4294901760, %v2015_v56  ;;  %2058 = vmatpush.msrb.mxu0 %v2025_v48 }
 0x630   : > { %2107 = vmatpush.msra.mxu2 %v2008_v32  ;;  %v1955_v32 = vperm.slane %v5586_v61, 3 }
 0x631   : > { %2017 = vmatpush.msrb.mxu3 %v2016_v57  ;;  %2177 = vmatpush.msra.mxu0 %v5619_v15 }
 0x632   : > { %2111 = vmatpush.msra.mxu2 %v2014_v50 }
 0x633   : > { %2023 = vmatpush.msrb.mxu3 %v2022_v60  ;;  %v2171_v60 = vld [vmem:[%s6422_s12 + $0x60] sm:$0xff] }
 0x634   : > { %2115 = vmatpush.msra.mxu2 %v2020_v27  ;;  %v5665_v59 = vand.u32 4294901760, %v2171_v60 }
 0x635   : > { %2029 = vmatpush.msrb.mxu3 %v2028_v62  ;;  %v2170_v62 = vld [vmem:[%s6422_s12 + $0x58] sm:$0xff] }
 0x636   : > { %2119 = vmatpush.msra.mxu2 %v2026_v58 }
 0x637   : > { %2138 = vmatpush.msra.mxu3 %v1977_v39  ;;  %v1953_v39 = vperm.slane %v5586_v61, 2 }
 0x639   : > { %2140 = vmatpush.msra.mxu3 %v1979_v55 }
 0x63b   : > { %2142 = vmatpush.msra.mxu3 %v1981_v47 }
 0x63d   : > { %2144 = vmatpush.msra.mxu3 %v1983_v52 }
 0x69c   : > { %v1933_v22 = vpop.xlane.xlu0 %1932 }
 0x69d   : > { %v1934_v23 = vmul.f32 %v1933_v22, %v5369_v8 }
 0x69f   : > { %v5592_v28 = vsub.f32 %v1930_v18, %v1934_v23  ;;  %v5621_v18 = vand.u32 4294901760, %v2173_v14  ;;  %v5626_v23 = vsub.f32 %v2174_v10, %v5619_v15 }
 0x6a1   : > { %v1936_v29 = vmul.f32 %v5592_v28, %v5592_v28  ;;  %v6438_v53 = vand.u32 4294901760, %v5626_v23  ;;  %2179 = vmatpush.msra.mxu0 %v5621_v18 }
 0x6a3   : > { %v1937_v34 = vsel %vm503_vm0, %v1936_v29, 0.0  ;;  %v5629_v29 = vsub.f32 %v2173_v14, %v5621_v18  ;;  %v2220_v47 = vsub.f32 %v5626_v23, %v6438_v53  ;;  %2181 = vmatpush.msra.mxu0 %v5623_v19 }
 0x6a4   : > { %1938 = vadd.xlane.f32.xlu2 %v1937_v34  ;;  %v5632_v34 = vsub.f32 %v2172_v16, %v5623_v19 }
 0x6a5   : > { %v6437_v21 = vand.u32 4294901760, %v5629_v29  ;;  %v2221_v46 = vand.u32 4294901760, %v2220_v47  ;;  %2183 = vmatpush.msra.mxu0 %v5665_v59 }
 0x6a6   : > { %v6436_v55 = vand.u32 4294901760, %v5632_v34 }
 0x6a7   : > { %v2226_v11 = vsub.f32 %v5629_v29, %v6437_v21  ;;  %2222 = vmatpush.msra.mxu1 %v2221_v46 }
 0x6a8   : > { %v2232_v49 = vsub.f32 %v5632_v34, %v6436_v55 }
 0x6a9   : > { %v2227_v52 = vand.u32 4294901760, %v2226_v11  ;;  %v2166_v11 = vld [vmem:[%s6422_s12 + $0x38] sm:$0xff] }
 0x6ab   : > { %2228 = vmatpush.msra.mxu1 %v2227_v52  ;;  %v5726_v52 = vand.u32 4294901760, %v2166_v11 }
 0x717   : > { %v1939_v63 = vpop.xlane.xlu2 %1938 }
 0x718   : > { %v1940_v1 = vmul.f32 %v1939_v63, %v5369_v8  ;;  %v5671_v63 = vsub.f32 %v2171_v60, %v5665_v59  ;;  %v2164_v60 = vld [vmem:[%s6422_s12 + $0x28] sm:$0xff] }
 0x71a   : > { %v1941_v2 = vadd.f32 1e-12, %v1940_v1  ;;  %v5673_v1 = vand.u32 4294901760, %v2170_v62 }
 0x71c   : > { %5126 = vrsqrt.f32 %v1941_v2  ;;  %vm1948_vm7 = vweird.f32 %v1941_v2  ;;  %2185 = vmatpush.msra.mxu0 %v5673_v1 }
 0x722   : > { %v5127_v4 = vpop.eup %5126 }
 0x723   : > { %v1943_v6 = vmul.f32 %v5127_v4, %v1941_v2  ;;  %vm1949_vm6 = vweird.f32 %v5127_v4  ;;  %v2169_v2 = vld [vmem:[%s6422_s12 + $0x50] sm:$0xff] }
 0x724   : > { %vm1950_vm8 = vmor %vm1948_vm7, %vm1949_vm6 }
 0x725   : > { %v1944_v3 = vmul.f32 %v5127_v4, %v1943_v6  ;;  %v5682_v6 = vsub.f32 %v2170_v62, %v5673_v1 }
 0x727   : > { %v1945_v7 = vmul.f32 0.5, %v1944_v3  ;;  %v5684_v3 = vand.u32 4294901760, %v2169_v2  ;;  %v6433_v14 = vand.u32 4294901760, %v5682_v6 }
 0x729   : > { %v1946_v22 = vsub.f32 1.5, %v1945_v7  ;;  %v2168_v7 = vld [vmem:[%s6422_s12 + $0x48] sm:$0xff]  ;;  %v5697_v16 = vsub.f32 %v2169_v2, %v5684_v3  ;;  %2187 = vmatpush.msra.mxu0 %v5684_v3 }
 0x72b   : > { %v1947_v38 = vmul.f32 %v5127_v4, %v1946_v22  ;;  %v5699_v22 = vand.u32 4294901760, %v2168_v7 }
 0x72d   : > { %v1951_v33 = vsel %vm1950_vm8, %v5127_v4, %v1947_v38  ;;  %v6434_v4 = vand.u32 4294901760, %v5671_v63  ;;  %v2167_v38 = vld [vmem:[%s6422_s12 + $0x40] sm:$0xff]  ;;  %2189 = vmatpush.msra.mxu0 %v5699_v22 }
 0x72e   : > { %v1952_v45 = vmul.f32 %v1951_v33, %v5592_v28  ;;  %v2233_v28 = vand.u32 4294901760, %v2232_v49  ;;  %v2244_v33 = vsub.f32 %v5682_v6, %v6433_v14  ;;  %v5716_v47 = vand.u32 4294901760, %v2167_v38 }
 0x72f   : > { %v2238_v10 = vsub.f32 %v5671_v63, %v6434_v4 }
 0x730   : > { %v1954_v50 = vmul.f32 %v1953_v39, %v1952_v45  ;;  %2234 = vmatpush.msra.mxu1 %v2233_v28  ;;  %v5712_v45 = vsub.f32 %v2168_v7, %v5699_v22  ;;  %v2245_v49 = vand.u32 4294901760, %v2244_v33  ;;  %v5730_v28 = vsub.f32 %v2167_v38, %v5716_v47  ;;  %2191 = vmatpush.msra.mxu0 %v5716_v47 }
 0x731   : > { %v2239_v39 = vand.u32 4294901760, %v2238_v10  ;;  %v5755_v10 = vand.u32 4294901760, %v2164_v60 }
 0x732   : > { %v5652_v54 = vadd.f32 %v1955_v32, %v1954_v50  ;;  %v6431_v32 = vand.u32 4294901760, %v5697_v16  ;;  %v6430_v46 = vand.u32 4294901760, %v5712_v45  ;;  %2193 = vmatpush.msra.mxu0 %v5726_v52 }
 0x733   : > { %2240 = vmatpush.msra.mxu1 %v2239_v39  ;;  %v2163_v39 = vld [vmem:[%s6422_s12 + $0x20] sm:$0xff] }
 0x734   : > { %v1963_v56 = vsel %vm503_vm0, %v5652_v54, 0  ;;  %v2250_v50 = vsub.f32 %v5697_v16, %v6431_v32 }
 0x735   : > { %v1985_v27 = vand.u32 4294901760, %v1963_v56  ;;  %2246 = vmatpush.msra.mxu1 %v2245_v49  ;;  %v5771_v49 = vsub.f32 %v2164_v60, %v5755_v10 }
 0x737   : > { %2031 = vmatmul.f32.vlgmr.msrb.gmra.mxu3 %v1985_v27  ;;  %v1986_v48 = vsub.f32 %v1963_v56, %v1985_v27  ;;  %v2165_v56 = vld [vmem:[%s6422_s12 + $0x30] sm:$0xff]  ;;  %v6432_v60 = vand.u32 4294901760, %v5771_v49 }
 0x738   : > { %2373 = vmatpush.msrb.mxu3 %v5619_v15 }
 0x739   : > { %2061 = vmatmul.f32.vlgmr.msrb.gmra.mxu0 %v1986_v48  ;;  %v1987_v57 = vand.u32 4294901760, %v1986_v48 }
 0x73a   : > { %2375 = vmatpush.msrb.mxu3 %v5621_v18 }
 0x73b   : > { %2088 = vmatmul.f32.vlgmr.msrb.gmra.mxu1 %v1987_v57  ;;  %v1988_v51 = vsub.f32 %v1986_v48, %v1987_v57  ;;  %v2256_v48 = vsub.f32 %v5712_v45, %v6430_v46  ;;  %v5741_v57 = vsub.f32 %v2166_v11, %v5726_v52 }
 0x73c   : > { %2377 = vmatpush.msrb.mxu3 %v5623_v19 }
 0x73d   : > { %v1989_v58 = vand.u32 4294901760, %v1988_v51  ;;  %v5743_v51 = vand.u32 4294901760, %v2165_v56  ;;  %v2257_v62 = vand.u32 4294901760, %v2256_v48  ;;  %v6427_v2 = vand.u32 4294901760, %v5741_v57 }
 0x73e   : > { %2379 = vmatpush.msrb.mxu3 %v5665_v59 }
 0x73f   : > { %1990 = vmatmul.f32.vlgmr.msrb.gmra.mxu2 %v1989_v58  ;;  %2146 = vmatmul.f32.vlgmr.msra.gmra.mxu3 %v1985_v27  ;;  %v6428_v58 = vand.u32 4294901760, %v5730_v28  ;;  %v5753_v7 = vsub.f32 %v2165_v56, %v5743_v51  ;;  %v2268_v33 = vsub.f32 %v5741_v57, %v6427_v2 }
 0x740   : > { %2320 = vmatpush.msrb.mxu2 %v5626_v23  ;;  %2381 = vmatpush.msrb.mxu3 %v5673_v1 }
 0x741   : > { %v2262_v38 = vsub.f32 %v5730_v28, %v6428_v58  ;;  %2195 = vmatpush.msra.mxu0 %v5743_v51  ;;  %v6429_v11 = vand.u32 4294901760, %v5753_v7  ;;  %v2269_v48 = vand.u32 4294901760, %v2268_v33  ;;  %v2161_v58 = vld [vmem:[%s6422_s12 + $0x10] sm:$0xff] }
 0x742   : > { %2323 = vmatpush.msrb.mxu2 %v5629_v29  ;;  %2383 = vmatpush.msrb.mxu3 %v5684_v3 }
 0x743   : > { %v2263_v56 = vand.u32 4294901760, %v2262_v38  ;;  %2197 = vmatpush.msra.mxu0 %v5755_v10 }
 0x744   : > { %2326 = vmatpush.msrb.mxu2 %v5632_v34  ;;  %2385 = vmatpush.msrb.mxu3 %v5699_v22 }
 0x746   : > { %2329 = vmatpush.msrb.mxu2 %v5671_v63  ;;  %2387 = vmatpush.msrb.mxu3 %v5716_v47 }
 0x747   : > { %2121 = vmatmul.f32.vlgmr.msra.gmra.mxu2 %v1985_v27  ;;  %v2251_v27 = vand.u32 4294901760, %v2250_v50  ;;  %v5773_v50 = vand.u32 4294901760, %v2163_v39 }
 0x748   : > { %2332 = vmatpush.msrb.mxu2 %v5682_v6  ;;  %2389 = vmatpush.msrb.mxu3 %v5726_v52 }
 0x749   : > { %2252 = vmatpush.msra.mxu1 %v2251_v27  ;;  %v2162_v27 = vld [vmem:[%s6422_s12 + $0x18] sm:$0xff]  ;;  %v5786_v2 = vsub.f32 %v2163_v39, %v5773_v50  ;;  %2199 = vmatpush.msra.mxu0 %v5773_v50  ;;  %v5799_v39 = vand.u32 4294901760, %v2161_v58 }
 0x74a   : > { %2335 = vmatpush.msrb.mxu2 %v5697_v16  ;;  %2391 = vmatpush.msrb.mxu3 %v5743_v51  ;;  %v5789_v38 = vand.u32 4294901760, %v2162_v27 }
 0x74b   : > { %2258 = vmatpush.msra.mxu1 %v2257_v62  ;;  %v2274_v62 = vsub.f32 %v5753_v7, %v6429_v11  ;;  %v2280_v11 = vsub.f32 %v5771_v49, %v6432_v60  ;;  %v6435_v46 = vand.u32 4294901760, %v5786_v2  ;;  %v5814_v14 = vsub.f32 %v2161_v58, %v5799_v39 }
 0x74c   : > { %2338 = vmatpush.msrb.mxu2 %v5712_v45  ;;  %2393 = vmatpush.msrb.mxu3 %v5755_v10 }
 0x74d   : > { %2264 = vmatpush.msra.mxu1 %v2263_v56  ;;  %v2275_v33 = vand.u32 4294901760, %v2274_v62  ;;  %v5804_v56 = vsub.f32 %v2162_v27, %v5789_v38  ;;  %v2160_v62 = vld [vmem:[%s6422_s12 + $0x8] sm:$0xff]  ;;  %2201 = vmatpush.msra.mxu0 %v5789_v38  ;;  %v2281_v32 = vand.u32 4294901760, %v2280_v11  ;;  %v2286_v60 = vsub.f32 %v5786_v2, %v6435_v46  ;;  %v2159_v11 = vld [vmem:[%s6422_s12] sm:$0xff] }
 0x74e   : > { %2341 = vmatpush.msrb.mxu2 %v5730_v28  ;;  %2395 = vmatpush.msrb.mxu3 %v5773_v50  ;;  %v5816_v4 = vand.u32 4294901760, %v2160_v62  ;;  %v2297_v46 = vand.u32 4294901760, %v5814_v14  ;;  %v5827_v55 = vand.u32 4294901760, %v2159_v11 }
 0x74f   : > { %2270 = vmatpush.msra.mxu1 %v2269_v48  ;;  %v2291_v27 = vand.u32 4294901760, %v5804_v56  ;;  %2203 = vmatpush.msra.mxu0 %v5799_v39  ;;  %v2287_v48 = vand.u32 4294901760, %v2286_v60 }
 0x750   : > { %2344 = vmatpush.msrb.mxu2 %v5741_v57  ;;  %2397 = vmatpush.msrb.mxu3 %v5789_v38  ;;  %v2302_v58 = vsub.f32 %v2160_v62, %v5816_v4  ;;  %v2298_v21 = vsub.f32 %v5814_v14, %v2297_v46  ;;  %v2308_v60 = vsub.f32 %v2159_v11, %v5827_v55 }
 0x751   : > { %2276 = vmatpush.msra.mxu1 %v2275_v33  ;;  %v2292_v33 = vsub.f32 %v5804_v56, %v2291_v27  ;;  %2205 = vmatpush.msra.mxu0 %v5816_v4 }
 0x752   : > { %2347 = vmatpush.msrb.mxu2 %v5753_v7  ;;  %2399 = vmatpush.msrb.mxu3 %v5799_v39  ;;  %v2303_v53 = vand.u32 4294901760, %v2302_v58  ;;  %v2299_v43 = vand.u32 4294901760, %v2298_v21  ;;  %v6459_v21 = vand.u32 4294901760, %v5671_v63 }
 0x753   : > { %2282 = vmatpush.msra.mxu1 %v2281_v32  ;;  %v2293_v62 = vand.u32 4294901760, %v2292_v33  ;;  %2207 = vmatpush.msra.mxu0 %v5827_v55  ;;  %v2309_v32 = vand.u32 4294901760, %v2308_v60  ;;  %v6458_v33 = vand.u32 4294901760, %v5632_v34  ;;  %v6467_v34 = vand.u32 4294901760, %v5786_v2 }
 0x754   : > { %2350 = vmatpush.msrb.mxu2 %v5771_v49  ;;  %2401 = vmatpush.msrb.mxu3 %v5816_v4  ;;  %v2304_v30 = vsub.f32 %v2302_v58, %v2303_v53 }
 0x755   : > { %2288 = vmatpush.msra.mxu1 %v2287_v48  ;;  %v2310_v11 = vsub.f32 %v2308_v60, %v2309_v32 }
 0x756   : > { %2353 = vmatpush.msrb.mxu2 %v5786_v2  ;;  %2403 = vmatpush.msrb.mxu3 %v5827_v55  ;;  %v2305_v17 = vand.u32 4294901760, %v2304_v30  ;;  %v6461_v30 = vand.u32 4294901760, %v5697_v16 }
 0x757   : > { %2294 = vmatpush.msra.mxu1 %v2293_v62  ;;  %v2311_v48 = vand.u32 4294901760, %v2310_v11 }
 0x758   : > { %2356 = vmatpush.msrb.mxu2 %v5804_v56  ;;  %v6456_v56 = vand.u32 4294901760, %v5626_v23  ;;  %v6460_v23 = vand.u32 4294901760, %v5682_v6 }
 0x759   : > { %2300 = vmatpush.msra.mxu1 %v2299_v43  ;;  %v6462_v43 = vand.u32 4294901760, %v5712_v45 }
 0x75a   : > { %2359 = vmatpush.msrb.mxu2 %v5814_v14  ;;  %2414 = vmatpush.msrb.mxu0 %v6456_v56  ;;  %v6457_v14 = vand.u32 4294901760, %v5629_v29  ;;  %v1961_v29 = vperm.slane %v5586_v61, 4 }
 0x75b   : > { %2306 = vmatpush.msra.mxu1 %v2305_v17  ;;  %v6463_v17 = vand.u32 4294901760, %v5730_v28 }
 0x75c   : > { %2362 = vmatpush.msrb.mxu2 %v2302_v58  ;;  %2418 = vmatpush.msrb.mxu0 %v6457_v14 }
 0x75d   : > { %2312 = vmatpush.msra.mxu1 %v2311_v48 }
 0x75e   : > { %2365 = vmatpush.msrb.mxu2 %v2308_v60  ;;  %2422 = vmatpush.msrb.mxu0 %v6458_v33 }
 0x75f   : > { %2481 = vmatpush.msrb.mxu1 %v5619_v15  ;;  %v6464_v15 = vand.u32 4294901760, %v5741_v57 }
 0x760   : > { %2426 = vmatpush.msrb.mxu0 %v6459_v21 }
 0x761   : > { %2483 = vmatpush.msrb.mxu1 %v5621_v18  ;;  %v6465_v18 = vand.u32 4294901760, %v5753_v7 }
 0x762   : > { %2430 = vmatpush.msrb.mxu0 %v6460_v23 }
 0x763   : > { %2485 = vmatpush.msrb.mxu1 %v5623_v19  ;;  %v6466_v19 = vand.u32 4294901760, %v5771_v49 }
 0x764   : > { %2434 = vmatpush.msrb.mxu0 %v6461_v30 }
 0x765   : > { %2487 = vmatpush.msrb.mxu1 %v5665_v59 }
 0x766   : > { %2438 = vmatpush.msrb.mxu0 %v6462_v43 }
 0x767   : > { %2489 = vmatpush.msrb.mxu1 %v5673_v1 }
 0x768   : > { %2442 = vmatpush.msrb.mxu0 %v6463_v17 }
 0x769   : > { %2491 = vmatpush.msrb.mxu1 %v5684_v3 }
 0x76a   : > { %2446 = vmatpush.msrb.mxu0 %v6464_v15 }
 0x76b   : > { %2493 = vmatpush.msrb.mxu1 %v5699_v22 }
 0x76c   : > { %2450 = vmatpush.msrb.mxu0 %v6465_v18 }
 0x76d   : > { %2495 = vmatpush.msrb.mxu1 %v5716_v47 }
 0x76e   : > { %2454 = vmatpush.msrb.mxu0 %v6466_v19 }
 0x76f   : > { %2497 = vmatpush.msrb.mxu1 %v5726_v52 }
 0x770   : > { %2458 = vmatpush.msrb.mxu0 %v6467_v34 }
 0x771   : > { %2499 = vmatpush.msrb.mxu1 %v5743_v51 }
 0x772   : > { %2462 = vmatpush.msrb.mxu0 %v2291_v27 }
 0x773   : > { %2501 = vmatpush.msrb.mxu1 %v5755_v10 }
 0x774   : > { %2466 = vmatpush.msrb.mxu0 %v2297_v46 }
 0x775   : > { %2503 = vmatpush.msrb.mxu1 %v5773_v50 }
 0x776   : > { %2470 = vmatpush.msrb.mxu0 %v2303_v53 }
 0x777   : > { %2505 = vmatpush.msrb.mxu1 %v5789_v38 }
 0x778   : > { %2474 = vmatpush.msrb.mxu0 %v2309_v32 }
 0x779   : > { %2507 = vmatpush.msrb.mxu1 %v5799_v39 }
 0x77b   : > { %2509 = vmatpush.msrb.mxu1 %v5816_v4 }
 0x77d   : > { %2511 = vmatpush.msrb.mxu1 %v5827_v55  ;;  %v2175_v55 = vperm.slane %v5586_v61, 5 }
 0x7b6   : > { %v2062_v3 = vpop.f32.mrf.mxu0 }
 0x7b8   : > { %v2089_v22 = vpop.f32.mrf.mxu1 }
 0x7ba   : > { %v2032_v59 = vpop.f32.mrf.mxu3 }
 0x7c2   : > { %v1991_v63 = vpop.f32.mrf.mxu2  ;;  %v2147_v28 = vpop.f32.mrf.mxu3 }
 0x7c3   : > { %v1992_v1 = vadd.f32 %v1991_v63, %v1961_v29 }
 0x7c5   : > { %v2033_v6 = vadd.f32 %v2032_v59, %v1992_v1  ;;  %v5034_v1 = vld [vmem:[%s6419_s9 + $0x38] sm:$0xff] }
 0x7c7   : > { %v2063_v16 = vadd.f32 %v2062_v3, %v2033_v6  ;;  %v2567_v6 = vand.u32 4294901760, %v5034_v1 }
 0x7c9   : > { %v2090_v45 = vadd.f32 %v2089_v22, %v2063_v16  ;;  %v5891_v3 = vsub.f32 %v5034_v1, %v2567_v6  ;;  %2568 = vmatpush.msra.mxu2 %v2567_v6  ;;  %v5032_v22 = vld [vmem:[%s6419_s9 + $0x28] sm:$0xff] }
 0x7ca   : > { %v2122_v47 = vpop.f32.mrf.mxu2 }
 0x7cb   : > { %v2123_v52 = vadd.f32 %v2122_v47, %v2090_v45  ;;  %v2598_v45 = vand.u32 4294901760, %v5891_v3 }
 0x7cd   : > { %v2148_v57 = vadd.f32 %v2147_v28, %v2123_v52  ;;  %v2571_v52 = vand.u32 4294901760, %v5032_v22  ;;  %v5031_v28 = vld [vmem:[%s6419_s9 + $0x20] sm:$0xff] }
 0x7cf   : > { %v2151_v46 = vmul.f32 0.044715, %v2148_v57  ;;  %v2150_v49 = vmul.f32 0.5, %v2148_v57 }
 0x7d1   : > { %v2152_v53 = vmul.f32 %v2151_v46, %v2148_v57 }
 0x7d3   : > { %v2153_v51 = vmul.f32 %v2152_v53, %v2148_v57  ;;  %v2609_v53 = vsub.f32 %v5032_v22, %v2571_v52 }
 0x7d5   : > { %v2154_v2 = vadd.f32 %v2153_v51, %v2148_v57  ;;  %v2599_v57 = vsub.f32 %v5891_v3, %v2598_v45  ;;  %v2573_v51 = vand.u32 4294901760, %v5031_v28 }
 0x7d7   : > { %v2155_v7 = vmul.f32 0.7978846, %v2154_v2  ;;  %v2600_v2 = vand.u32 4294901760, %v2599_v57 }
 0x7d9   : > { %5128 = vtanh.f32 %v2155_v7  ;;  %2601 = vmatpush.msra.mxu3 %v2600_v2 }
 0x7df   : > { %v5129_v10 = vpop.eup %5128 }
 0x7e0   : > { %v2157_v50 = vadd.f32 1.0, %v5129_v10  ;;  %v2610_v10 = vand.u32 4294901760, %v2609_v53 }
 0x7e2   : > { %v2158_v38 = vmul.f32 %v2157_v50, %v2150_v49  ;;  %v2615_v49 = vsub.f32 %v5031_v28, %v2573_v51 }
 0x7e4   : > { %v2208_v27 = vand.u32 4294901760, %v2158_v38 }
 0x7e6   : > { %2314 = vmatmul.f32.vlgmr.msra.gmra.mxu1 %v2208_v27  ;;  %v2209_v58 = vsub.f32 %v2158_v38, %v2208_v27  ;;  %v2611_v38 = vsub.f32 %v2609_v53, %v2610_v10 }
 0x7e8   : > { %2368 = vmatmul.f32.vlgmr.msrb.gmra.mxu2 %v2209_v58  ;;  %v2210_v39 = vand.u32 4294901760, %v2209_v58 }
 0x7ea   : > { %2407 = vmatmul.f32.vlgmr.msrb.gmra.mxu3 %v2210_v39  ;;  %v2211_v60 = vsub.f32 %v2209_v58, %v2210_v39  ;;  %v2612_v58 = vand.u32 4294901760, %v2611_v38 }
 0x7ec   : > { %v2212_v4 = vand.u32 4294901760, %v2211_v60 }
 0x7ee   : > { %2213 = vmatmul.f32.vlgmr.msra.gmra.mxu0 %v2212_v4  ;;  %2513 = vmatmul.f32.vlgmr.msrb.gmra.mxu1 %v2208_v27 }
 0x7f6   : > { %2476 = vmatmul.f32.vlgmr.msrb.gmra.mxu0 %v2208_v27  ;;  %v2616_v27 = vand.u32 4294901760, %v2615_v49 }
 0x7f8   : > { %v2617_v39 = vsub.f32 %v2615_v49, %v2616_v27 }
 0x7fa   : > { %v2618_v60 = vand.u32 4294901760, %v2617_v39 }
 0x863   : > { %v2315_v62 = vpop.f32.mrf.mxu1 }
 0x86b   : > { %v2214_v32 = vpop.f32.mrf.mxu0  ;;  %v2369_v14 = vpop.f32.mrf.mxu2 }
 0x86c   : > { %v2215_v56 = vadd.f32 %v2214_v32, %v2175_v55  ;;  %v2514_v43 = vpop.f32.mrf.mxu1 }
 0x86d   : > { %v2408_v33 = vpop.f32.mrf.mxu3 }
 0x86e   : > { %v2316_v11 = vadd.f32 %v2315_v62, %v2215_v56 }
 0x870   : > { %v2370_v48 = vadd.f32 %v2369_v14, %v2316_v11 }
 0x872   : > { %v2409_v21 = vadd.f32 %v2408_v33, %v2370_v48 }
 0x873   : > { %v2477_v23 = vpop.f32.mrf.mxu0 }
 0x874   : > { %v2478_v30 = vadd.f32 %v2477_v23, %v2409_v21  ;;  %v2540_v21 = vperm.slane %v5586_v61, 6 }
 0x876   : > { %v2515_v17 = vadd.f32 %v2514_v43, %v2478_v30  ;;  %v2542_v30 = vperm.slane %v5586_v61, 7 }
 0x878   : > { %v2517_v15 = vadd.f32 %v2515_v17, %v5652_v54  ;;  %v5033_v54 = vld [vmem:[%s6419_s9 + $0x30] sm:$0xff] }
 0x879   : > { %v2569_v16 = vand.u32 4294901760, %v5033_v54 }
 0x87a   : > { %v2518_v18 = vsel %vm503_vm0, %v2517_v15, 0.0 }
 0x87b   : > { %2519 = vadd.xlane.f32.xlu1 %v2518_v18  ;;  %v5897_v47 = vsub.f32 %v5033_v54, %v2569_v16  ;;  %2570 = vmatpush.msra.mxu2 %v2569_v16 }
 0x87d   : > { %v2604_v46 = vand.u32 4294901760, %v5897_v47  ;;  %2572 = vmatpush.msra.mxu2 %v2571_v52 }
 0x87f   : > { %v2605_v7 = vsub.f32 %v5897_v47, %v2604_v46  ;;  %2574 = vmatpush.msra.mxu2 %v2573_v51 }
 0x881   : > { %2639 = vmatpush.msrb.mxu2 %v5891_v3  ;;  %v2606_v50 = vand.u32 4294901760, %v2605_v7 }
 0x883   : > { %2642 = vmatpush.msrb.mxu2 %v5897_v47  ;;  %2607 = vmatpush.msra.mxu3 %v2606_v50 }
 0x885   : > { %2645 = vmatpush.msrb.mxu2 %v2609_v53  ;;  %2613 = vmatpush.msra.mxu3 %v2612_v58 }
 0x887   : > { %2648 = vmatpush.msrb.mxu2 %v2615_v49  ;;  %2619 = vmatpush.msra.mxu3 %v2618_v60 }
 0x889   : > { %2668 = vmatpush.msrb.mxu3 %v2567_v6 }
 0x88b   : > { %2670 = vmatpush.msrb.mxu3 %v2569_v16 }
 0x88d   : > { %2672 = vmatpush.msrb.mxu3 %v2571_v52 }
 0x88f   : > { %2674 = vmatpush.msrb.mxu3 %v2573_v51 }
 0x8ee   : > { %v2520_v19 = vpop.xlane.xlu1 %2519 }
 0x8ef   : > { %v2521_v29 = vmul.f32 %v2520_v19, %v5369_v8 }
 0x8f1   : > { %v2522_v34 = vsub.f32 %v2517_v15, %v2521_v29 }
 0x8f3   : > { %v2523_v59 = vmul.f32 %v2522_v34, %v2522_v34 }
 0x8f5   : > { %v2524_v63 = vsel %vm503_vm0, %v2523_v59, 0.0 }
 0x8f6   : > { %2525 = vadd.xlane.f32.xlu0 %v2524_v63 }
 0x969   : > { %v2526_v4 = vpop.xlane.xlu0 %2525 }
 0x96a   : > { %v2527_v55 = vmul.f32 %v2526_v4, %v5369_v8 }
 0x96c   : > { %v2528_v62 = vadd.f32 1e-12, %v2527_v55 }
 0x96e   : > { %5130 = vrsqrt.f32 %v2528_v62  ;;  %vm2535_vm10 = vweird.f32 %v2528_v62 }
 0x974   : > { %v5131_v32 = vpop.eup %5130 }
 0x975   : > { %v2530_v56 = vmul.f32 %v5131_v32, %v2528_v62  ;;  %vm2536_vm9 = vweird.f32 %v5131_v32 }
 0x976   : > { %vm2537_vm11 = vmor %vm2535_vm10, %vm2536_vm9 }
 0x977   : > { %v2531_v11 = vmul.f32 %v5131_v32, %v2530_v56 }
 0x979   : > { %v2532_v14 = vmul.f32 0.5, %v2531_v11 }
 0x97b   : > { %v2533_v48 = vsub.f32 1.5, %v2532_v14 }
 0x97d   : > { %v2534_v33 = vmul.f32 %v5131_v32, %v2533_v48 }
 0x97f   : > { %v2538_v23 = vsel %vm2537_vm11, %v5131_v32, %v2534_v33  ;;  %v5957_v33 = vld [vmem:[%s6415_s5] sm:$0xff] }
 0x980   : > { %v2539_v43 = vmul.f32 %v2538_v23, %v2522_v34  ;;  %v5921_v34 = vld [vmem:[%s6423_s13 + $0x8] sm:$0xff] }
 0x981   : > { %v2551_v54 = vperm.slane %v5921_v34, 0 }
 0x982   : > { %v2541_v17 = vmul.f32 %v2540_v21, %v2539_v43 }
 0x984   : > { %v5912_v15 = vadd.f32 %v2542_v30, %v2541_v17 }
 0x986   : > { %v2553_v18 = vsel %vm503_vm0, %v5912_v15, 0 }
 0x987   : > { %v2575_v19 = vand.u32 4294901760, %v2553_v18 }
 0x989   : > { %v2576_v29 = vsub.f32 %v2553_v18, %v2575_v19  ;;  %2621 = vmatmul.f32.vlgmr.msra.gmra.mxu3 %v2575_v19 }
 0x98a   : > { %2728 = vmatpush.msra.mxu3 %v2567_v6 }
 0x98b   : > { %v2577_v59 = vand.u32 4294901760, %v2576_v29 }
 0x98c   : > { %2730 = vmatpush.msra.mxu3 %v2569_v16 }
 0x98d   : > { %v2578_v63 = vsub.f32 %v2576_v29, %v2577_v59 }
 0x98e   : > { %2732 = vmatpush.msra.mxu3 %v2571_v52 }
 0x98f   : > { %v2579_v1 = vand.u32 4294901760, %v2578_v63 }
 0x990   : > { %2734 = vmatpush.msra.mxu3 %v2573_v51 }
 0x991   : > { %2580 = vmatmul.f32.vlgmr.msra.gmra.mxu2 %v2579_v1  ;;  %2678 = vmatmul.f32.vlgmr.msrb.gmra.mxu3 %v2577_v59 }
 0x992   : > { %2697 = vmatpush.msra.mxu2 %v2598_v45 }
 0x994   : > { %2701 = vmatpush.msra.mxu2 %v2604_v46 }
 0x996   : > { %2705 = vmatpush.msra.mxu2 %v2610_v10 }
 0x998   : > { %2709 = vmatpush.msra.mxu2 %v2616_v27 }
 0x999   : > { %2651 = vmatmul.f32.vlgmr.msrb.gmra.mxu2 %v2576_v29  ;;  %2736 = vmatmul.f32.vlgmr.msra.gmra.mxu3 %v2575_v19 }
 0x9a1   : > { %2711 = vmatmul.f32.vlgmr.msra.gmra.mxu2 %v2575_v19 }
 0xa0c   : > { %v2622_v61 = vpop.f32.mrf.mxu3 }
 0xa14   : > { %v2581_v6 = vpop.f32.mrf.mxu2  ;;  %v2679_v22 = vpop.f32.mrf.mxu3 }
 0xa15   : > { %v2582_v16 = vadd.f32 %v2581_v6, %v2551_v54 }
 0xa17   : > { %v2623_v3 = vadd.f32 %v2622_v61, %v2582_v16  ;;  %v5968_v16 = vld [vmem:[%s6415_s5 + $0x8] sm:$0xff] }
 0xa1c   : > { %v2652_v47 = vpop.f32.mrf.mxu2  ;;  %v2737_v46 = vpop.f32.mrf.mxu3 }
 0xa1d   : > { %v2653_v45 = vadd.f32 %v2652_v47, %v2623_v3 }
 0xa1f   : > { %v2680_v52 = vadd.f32 %v2679_v22, %v2653_v45 }
 0xa24   : > { %v2712_v28 = vpop.f32.mrf.mxu2 }
 0xa25   : > { %v2713_v57 = vadd.f32 %v2712_v28, %v2680_v52 }
 0xa27   : > { %v5924_v53 = vadd.f32 %v2737_v46, %v2713_v57 }
 0xa29   : > { %v2740_v51 = vmul.f32 0.35355338, %v5924_v53  ;;  %2985 = vrot.lane.b32.xlu1 %v5924_v53, %s6468_s20 }
 0xa2b   : > { %v2756_v2 = vand.u32 4294901760, %v2740_v51 }
 0xa2d   : > { %2757 = vmatpush.msrb.mxu2 %v2756_v2  ;;  %2884 = vmatpush.msra.mxu1 %v2756_v2  ;;  %v2807_v7 = vsub.f32 %v2740_v51, %v2756_v2 }
 0xa2e   : > { %2763 = vmatmul.f32.vlgmr.msrb.gmra.mxu2 %v5433_v24  ;;  %2888 = vmatmul.f32.vlgmr.msra.gmra.mxu1 %v5415_v12 }
 0xa2f   : > { %2846 = vmatpush.msra.mxu0 %v2807_v7  ;;  %v2808_v10 = vand.u32 4294901760, %v2807_v7 }
 0xa30   : > { %2849 = vmatmul.f32.vlgmr.msra.gmra.mxu0 %v5411_v5 }
 0xa31   : > { %2928 = vmatpush.msra.mxu2 %v2808_v10  ;;  %v2809_v49 = vsub.f32 %v2807_v7, %v2808_v10 }
 0xa33   : > { %v2810_v50 = vand.u32 4294901760, %v2809_v49 }
 0xa35   : > { %2811 = vmatpush.msrb.mxu3 %v2810_v50 }
 0xa36   : > { %2771 = vmatmul.f32.gmra.mxu2 %v5452_v35  ;;  %2813 = vmatmul.f32.vlgmr.msrb.gmra.mxu3 %v5405_v0 }
 0xa37   : > { %2962 = vmatpush.msra.mxu3 %v2756_v2  ;;  %2894 = vmatmul.f32.gmra.mxu1 %v5436_v25 }
 0xa38   : > { %2854 = vmatmul.f32.gmra.mxu0 %v5425_v20 }
 0xa3e   : > { %2779 = vmatmul.f32.gmra.mxu2 %v5468_v41  ;;  %2817 = vmatmul.f32.gmra.mxu3 %v5417_v13 }
 0xa3f   : > { %2900 = vmatmul.f32.gmra.mxu1 %v5455_v36 }
 0xa40   : > { %2859 = vmatmul.f32.gmra.mxu0 %v5447_v31 }
 0xa46   : > { %2787 = vmatmul.f32.gmra.mxu2 %v5479_v44  ;;  %2821 = vmatmul.f32.gmra.mxu3 %v5438_v26 }
 0xa47   : > { %2906 = vmatmul.f32.gmra.mxu1 %v5471_v42 }
 0xa48   : > { %2864 = vmatmul.f32.gmra.mxu0 %v5464_v40 }
 0xa4e   : > { %2825 = vmatmul.f32.gmra.mxu3 %v5457_v37  ;;  %2930 = vmatmul.f32.vlgmr.msra.gmra.mxu2 %v5405_v0 }
 0xa56   : > { %2934 = vmatmul.f32.gmra.mxu2 %v5417_v13  ;;  %2964 = vmatmul.f32.vlgmr.msra.gmra.mxu3 %v5405_v0 }
 0xa5e   : > { %2938 = vmatmul.f32.gmra.mxu2 %v5438_v26  ;;  %2968 = vmatmul.f32.gmra.mxu3 %v5417_v13 }
 0xa66   : > { %2942 = vmatmul.f32.gmra.mxu2 %v5457_v37  ;;  %2972 = vmatmul.f32.gmra.mxu3 %v5438_v26 }
 0xa6e   : > { %2976 = vmatmul.f32.gmra.mxu3 %v5457_v37 }
 0xa9b   : > { %v2986_v5 = vpop.permute.xlu1 %2985 }
 0xa9c   : > { %v2999_v12 = vsel %vm503_vm0, %v2986_v5, 0 }
 0xa9d   : > { %v3016_v20 = vand.u32 4294901760, %v2999_v12 }
 0xa9f   : > { %v3067_v24 = vsub.f32 %v2999_v12, %v3016_v20  ;;  %3017 = vmatpush.xpose.msrb.mxu0 %v3016_v20  ;;  %3144 = vmatpush.xpose.msrb.mxu3 %v3016_v20  ;;  %v5975_v12 = vld [vmem:[%s6415_s5 + $0x10] sm:$0xff] }
 0xaa1   : > { %v3068_v25 = vand.u32 4294901760, %v3067_v24  ;;  %3106 = vmatpush.xpose.msrb.mxu2 %v3067_v24 }
 0xaa3   : > { %v3069_v0 = vsub.f32 %v3067_v24, %v3068_v25  ;;  %3188 = vmatpush.xpose.msra.mxu0 %v3068_v25 }
 0xaa5   : > { %v3070_v31 = vand.u32 4294901760, %v3069_v0 }
 0xaa7   : > { %3071 = vmatpush.xpose.msrb.mxu1 %v3070_v31 }
 0xaab   : > { %3222 = vmatpush.xpose.msra.mxu1 %v3016_v20  ;;  %v2889_v44 = vpop.f32.mrf.mxu1 }
 0xaad   : > { %v2850_v37 = vpop.f32.mrf.mxu0 }
 0xab1   : > { %v2764_v13 = vpop.f32.mrf.mxu2 }
 0xab4   : > { %v2895_v62 = vpop.f32.mrf.mxu1 }
 0xab5   : > { %v2855_v60 = vpop.f32.mrf.mxu0 }
 0xab9   : > { %v2772_v35 = vpop.f32.mrf.mxu2  ;;  %v2814_v36 = vpop.f32.mrf.mxu3 }
 0xaba   : > { %v2815_v38 = vadd.f32 %v2814_v36, %v2764_v13 }
 0xabc   : > { %v2851_v39 = vadd.f32 %v2850_v37, %v2815_v38  ;;  %v2901_v29 = vpop.f32.mrf.mxu1 }
 0xabd   : > { %v2860_v23 = vpop.f32.mrf.mxu0 }
 0xabe   : > { %v2890_v4 = vadd.f32 %v2889_v44, %v2851_v39 }
 0xac1   : > { %v2780_v26 = vpop.f32.mrf.mxu2  ;;  %v2818_v40 = vpop.f32.mrf.mxu3 }
 0xac2   : > { %v2819_v55 = vadd.f32 %v2818_v40, %v2772_v35 }
 0xac4   : > { %v2856_v14 = vadd.f32 %v2855_v60, %v2819_v55  ;;  %v2907_v50 = vpop.f32.mrf.mxu1 }
 0xac5   : > { %v2865_v28 = vpop.f32.mrf.mxu0 }
 0xac6   : > { %v2896_v30 = vadd.f32 %v2895_v62, %v2856_v14 }
 0xac9   : > { %v2788_v41 = vpop.f32.mrf.mxu2  ;;  %v2822_v42 = vpop.f32.mrf.mxu3 }
 0xaca   : > { %v2823_v43 = vadd.f32 %v2822_v42, %v2780_v26  ;;  %v5982_v42 = vld [vmem:[%s6415_s5 + $0x18] sm:$0xff] }
 0xacc   : > { %v2861_v1 = vadd.f32 %v2860_v23, %v2823_v43 }
 0xace   : > { %v2902_v3 = vadd.f32 %v2901_v29, %v2861_v1 }
 0xad1   : > { %v2826_v27 = vpop.f32.mrf.mxu3  ;;  %v2931_v58 = vpop.f32.mrf.mxu2 }
 0xad2   : > { %v2932_v32 = vadd.f32 %v2931_v58, %v2890_v4  ;;  %v2827_v45 = vadd.f32 %v2826_v27, %v2788_v41 }
 0xad4   : > { %v2866_v10 = vadd.f32 %v2865_v28, %v2827_v45 }
 0xad6   : > { %v2908_v0 = vadd.f32 %v2907_v50, %v2866_v10 }
 0xad9   : > { %v2935_v56 = vpop.f32.mrf.mxu2  ;;  %v2965_v11 = vpop.f32.mrf.mxu3 }
 0xada   : > { %v2966_v48 = vadd.f32 %v2965_v11, %v2932_v32  ;;  %v2936_v19 = vadd.f32 %v2935_v56, %v2896_v30  ;;  %v5161_v30 = vld [vmem:[%s5363_s18] ss:$0 sm:$0xff]  ;;  %s6469_s18 = smov 64  }
 0xadc   : > { %v2980_v21 = vmul.f32 %v5957_v33, %v2966_v48 }
 0xade   : > { %v2988_v17 = vsel %vm503_vm0, %v2980_v21, 0 }
 0xadf   : > { %v5961_v18 = vand.u32 4294901760, %v2988_v17 }
 0xae1   : > { %v3019_v59 = vsub.f32 %v2988_v17, %v5961_v18  ;;  %v2969_v63 = vpop.f32.mrf.mxu3  ;;  %3073 = vmatmul.f32.vlgmr.msrb.gmra.mxu1 %v5961_v18  ;;  %v2939_v54 = vpop.f32.mrf.mxu2 }
 0xae2   : > { %v2970_v61 = vadd.f32 %v2969_v63, %v2936_v19  ;;  %v2940_v51 = vadd.f32 %v2939_v54, %v2902_v3 }
 0xae3   : > { %v3020_v6 = vand.u32 4294901760, %v3019_v59  ;;  %3109 = vmatmul.f32.vlgmr.msrb.gmra.mxu2 %v3019_v59 }
 0xae4   : > { %v2981_v22 = vmul.f32 %v5968_v16, %v2970_v61 }
 0xae5   : > { %v3021_v47 = vsub.f32 %v3019_v59, %v3020_v6  ;;  %3148 = vmatmul.f32.vlgmr.msrb.gmra.mxu3 %v3020_v6 }
 0xae6   : > { %v2991_v52 = vsel %vm503_vm0, %v2981_v22, 0 }
 0xae7   : > { %v3022_v57 = vand.u32 4294901760, %v3021_v47  ;;  %v3026_v46 = vand.u32 4294901760, %v2991_v52 }
 0xae9   : > { %v2973_v2 = vpop.f32.mrf.mxu3  ;;  %3023 = vmatmul.f32.vlgmr.msrb.gmra.mxu0 %v3022_v57  ;;  %3077 = vmatmul.f32.gmra.mxu1 %v3026_v46  ;;  %v3027_v7 = vsub.f32 %v2991_v52, %v3026_v46  ;;  %v2943_v24 = vpop.f32.mrf.mxu2 }
 0xaea   : > { %v2974_v49 = vadd.f32 %v2973_v2, %v2940_v51  ;;  %v2944_v36 = vadd.f32 %v2943_v24, %v2908_v0 }
 0xaeb   : > { %3114 = vmatmul.f32.gmra.mxu2 %v3027_v7  ;;  %v3028_v5 = vand.u32 4294901760, %v3027_v7 }
 0xaec   : > { %v2982_v20 = vmul.f32 %v5975_v12, %v2974_v49 }
 0xaed   : > { %3154 = vmatmul.f32.gmra.mxu3 %v3028_v5  ;;  %v3029_v25 = vsub.f32 %v3027_v7, %v3028_v5 }
 0xaee   : > { %v2994_v31 = vsel %vm503_vm0, %v2982_v20, 0 }
 0xaef   : > { %v3034_v13 = vand.u32 4294901760, %v2994_v31  ;;  %v3030_v35 = vand.u32 4294901760, %v3029_v25 }
 0xaf1   : > { %v2977_v26 = vpop.f32.mrf.mxu3  ;;  %3031 = vmatmul.f32.gmra.mxu0 %v3030_v35  ;;  %3081 = vmatmul.f32.gmra.mxu1 %v3034_v13  ;;  %v3035_v40 = vsub.f32 %v2994_v31, %v3034_v13 }
 0xaf2   : > { %v2978_v37 = vadd.f32 %v2977_v26, %v2944_v36 }
 0xaf3   : > { %3119 = vmatmul.f32.gmra.mxu2 %v3035_v40  ;;  %v3036_v41 = vand.u32 4294901760, %v3035_v40 }
 0xaf4   : > { %v2983_v44 = vmul.f32 %v5982_v42, %v2978_v37 }
 0xaf5   : > { %3160 = vmatmul.f32.gmra.mxu3 %v3036_v41  ;;  %v3037_v38 = vsub.f32 %v3035_v40, %v3036_v41 }
 0xaf6   : > { %v2997_v27 = vsel %vm503_vm0, %v2983_v44, 0 }
 0xaf7   : > { %v3042_v58 = vand.u32 4294901760, %v2997_v27  ;;  %v3038_v39 = vand.u32 4294901760, %v3037_v38 }
 0xaf9   : > { %3039 = vmatmul.f32.gmra.mxu0 %v3038_v39  ;;  %3085 = vmatmul.f32.gmra.mxu1 %v3042_v58  ;;  %v3043_v60 = vsub.f32 %v2997_v27, %v3042_v58 }
 0xafb   : > { %3124 = vmatmul.f32.gmra.mxu2 %v3043_v60  ;;  %v3044_v4 = vand.u32 4294901760, %v3043_v60 }
 0xafd   : > { %3166 = vmatmul.f32.gmra.mxu3 %v3044_v4  ;;  %v3045_v55 = vsub.f32 %v3043_v60, %v3044_v4 }
 0xaff   : > { %v3046_v62 = vand.u32 4294901760, %v3045_v55 }
 0xb01   : > { %3047 = vmatmul.f32.gmra.mxu0 %v3046_v62  ;;  %3224 = vmatmul.f32.vlgmr.msra.gmra.mxu1 %v5961_v18 }
 0xb09   : > { %3190 = vmatmul.f32.vlgmr.msra.gmra.mxu0 %v5961_v18  ;;  %3228 = vmatmul.f32.gmra.mxu1 %v3026_v46 }
 0xb11   : > { %3194 = vmatmul.f32.gmra.mxu0 %v3026_v46  ;;  %3232 = vmatmul.f32.gmra.mxu1 %v3034_v13 }
 0xb19   : > { %3198 = vmatmul.f32.gmra.mxu0 %v3034_v13  ;;  %3236 = vmatmul.f32.gmra.mxu1 %v3042_v58 }
 0xb21   : > { %3202 = vmatmul.f32.gmra.mxu0 %v3042_v58 }
 0xb5e   : > { %v3074_v32 = vpop.f32.mrf.mxu1 }
 0xb66   : > { %v3024_v56 = vpop.f32.mrf.mxu0  ;;  %v3078_v11 = vpop.f32.mrf.mxu1 }
 0xb67   : > { %v3025_v43 = vadd.f32 %v5161_v30, %v3024_v56  ;;  %v3110_v17 = vpop.f32.mrf.mxu2 }
 0xb68   : > { %v3149_v29 = vpop.f32.mrf.mxu3 }
 0xb69   : > { %v3075_v19 = vadd.f32 %v3074_v32, %v3025_v43 }
 0xb6b   : > { %v3111_v18 = vadd.f32 %v3110_v17, %v3075_v19 }
 0xb6d   : > { %v3150_v6 = vadd.f32 %v3149_v29, %v3111_v18 }
 0xb6e   : > { %v3032_v14 = vpop.f32.mrf.mxu0  ;;  %v3082_v48 = vpop.f32.mrf.mxu1 }
 0xb6f   : > { %v3033_v63 = vadd.f32 %v5161_v30, %v3032_v14  ;;  %v3115_v61 = vpop.f32.mrf.mxu2 }
 0xb70   : > { %v3155_v3 = vpop.f32.mrf.mxu3 }
 0xb71   : > { %v3079_v54 = vadd.f32 %v3078_v11, %v3033_v63 }
 0xb73   : > { %v3116_v45 = vadd.f32 %v3115_v61, %v3079_v54 }
 0xb75   : > { %v3156_v51 = vadd.f32 %v3155_v3, %v3116_v45 }
 0xb76   : > { %v3040_v21 = vpop.f32.mrf.mxu0  ;;  %v3086_v23 = vpop.f32.mrf.mxu1 }
 0xb77   : > { %v3041_v52 = vadd.f32 %v5161_v30, %v3040_v21  ;;  %v3120_v7 = vpop.f32.mrf.mxu2 }
 0xb78   : > { %v3161_v24 = vpop.f32.mrf.mxu3 }
 0xb79   : > { %v3083_v2 = vadd.f32 %v3082_v48, %v3041_v52 }
 0xb7b   : > { %v3121_v50 = vadd.f32 %v3120_v7, %v3083_v2 }
 0xb7d   : > { %v3162_v0 = vadd.f32 %v3161_v24, %v3121_v50 }
 0xb7e   : > { %v3048_v59 = vpop.f32.mrf.mxu0  ;;  %v3225_v1 = vpop.f32.mrf.mxu1 }
 0xb7f   : > { %v3049_v5 = vadd.f32 %v5161_v30, %v3048_v59  ;;  %v3125_v26 = vpop.f32.mrf.mxu2 }
 0xb80   : > { %v3167_v44 = vpop.f32.mrf.mxu3 }
 0xb81   : > { %v3087_v31 = vadd.f32 %v3086_v23, %v3049_v5 }
 0xb83   : > { %v3126_v40 = vadd.f32 %v3125_v26, %v3087_v31 }
 0xb85   : > { %v3168_v38 = vadd.f32 %v3167_v44, %v3126_v40 }
 0xb86   : > { %v3191_v22 = vpop.f32.mrf.mxu0  ;;  %v3229_v46 = vpop.f32.mrf.mxu1 }
 0xb87   : > { %v3192_v47 = vadd.f32 %v3191_v22, %v3150_v6 }
 0xb89   : > { %v3226_v28 = vadd.f32 %v3225_v1, %v3192_v47 }
 0xb8b   : > { %v3240_v57 = vsel %vm732_vm5, %v3226_v28, -inf }
 0xb8c   : > { %3241 = vmax.xlane.f32.xlu0 %v3240_v57 }
 0xb8e   : > { %v3195_v10 = vpop.f32.mrf.mxu0  ;;  %v3233_v13 = vpop.f32.mrf.mxu1 }
 0xb8f   : > { %v3196_v49 = vadd.f32 %v3195_v10, %v3156_v51 }
 0xb91   : > { %v3230_v20 = vadd.f32 %v3229_v46, %v3196_v49 }
 0xb93   : > { %v3243_v25 = vsel %vm732_vm5, %v3230_v20, -inf }
 0xb94   : > { %3244 = vmax.xlane.f32.xlu0 %v3243_v25 }
 0xb96   : > { %v3199_v35 = vpop.f32.mrf.mxu0  ;;  %v3237_v39 = vpop.f32.mrf.mxu1 }
 0xb97   : > { %v3200_v36 = vadd.f32 %v3199_v35, %v3162_v0 }
 0xb99   : > { %v3234_v37 = vadd.f32 %v3233_v13, %v3200_v36 }
 0xb9b   : > { %v3246_v41 = vsel %vm732_vm5, %v3234_v37, -inf }
 0xb9c   : > { %3247 = vmax.xlane.f32.xlu0 %v3246_v41 }
 0xb9e   : > { %v3203_v27 = vpop.f32.mrf.mxu0 }
 0xb9f   : > { %v3204_v58 = vadd.f32 %v3203_v27, %v3168_v38 }
 0xba1   : > { %v3238_v60 = vadd.f32 %v3237_v39, %v3204_v58 }
 0xba3   : > { %v3249_v4 = vsel %vm732_vm5, %v3238_v60, -inf }
 0xba4   : > { %3250 = vmax.xlane.f32.xlu1 %v3249_v4 }
 0xbff   : > { %v3242_v55 = vpop.xlane.xlu0 %3241 }
 0xc00   : > { %v3252_v62 = vsub.f32 %v3226_v28, %v3242_v55 }
 0xc02   : > { %v3256_v32 = vmul.f32 1.442695, %v3252_v62 }
 0xc04   : > { %5132 = vpow2.f32 %v3256_v32 }
 0xc07   : > { %v3245_v56 = vpop.xlane.xlu0 %3244 }
 0xc08   : > { %v3253_v11 = vsub.f32 %v3230_v20, %v3245_v56 }
 0xc0a   : > { %v5133_v14 = vpop.eup %5132  ;;  %v3258_v48 = vmul.f32 1.442695, %v3253_v11 }
 0xc0b   : > { %v3264_v21 = vsel %vm732_vm5, %v5133_v14, 0.0 }
 0xc0c   : > { %5134 = vpow2.f32 %v3258_v48  ;;  %3265 = vadd.xlane.f32.xlu0 %v3264_v21 }
 0xc0f   : > { %v3248_v23 = vpop.xlane.xlu0 %3247 }
 0xc10   : > { %v3254_v30 = vsub.f32 %v3234_v37, %v3248_v23 }
 0xc12   : > { %v5135_v43 = vpop.eup %5134  ;;  %v3260_v17 = vmul.f32 1.442695, %v3254_v30 }
 0xc13   : > { %v3267_v19 = vsel %vm732_vm5, %v5135_v43, 0.0 }
 0xc14   : > { %5136 = vpow2.f32 %v3260_v17  ;;  %3268 = vadd.xlane.f32.xlu2 %v3267_v19 }
 0xc17   : > { %v3251_v29 = vpop.xlane.xlu1 %3250 }
 0xc18   : > { %v3255_v59 = vsub.f32 %v3238_v60, %v3251_v29 }
 0xc1a   : > { %v5137_v18 = vpop.eup %5136  ;;  %v3262_v63 = vmul.f32 1.442695, %v3255_v59 }
 0xc1b   : > { %v3270_v1 = vsel %vm732_vm5, %v5137_v18, 0.0 }
 0xc1c   : > { %5138 = vpow2.f32 %v3262_v63  ;;  %3271 = vadd.xlane.f32.xlu2 %v3270_v1 }
 0xc20   : > { %3284 = vrot.lane.b32.xlu0 %v5924_v53, %s6469_s18  ;;  %s480_s18 = scalar_lea.vmem [#allocation2], %s5028_s27 }
 0xc22   : > { %v5139_v61 = vpop.eup %5138 }
 0xc23   : > { %v3273_v6 = vsel %vm732_vm5, %v5139_v61, 0.0 }
 0xc24   : > { %3274 = vadd.xlane.f32.xlu2 %v3273_v6 }
 0xc7f   : > { %v3266_v54 = vpop.xlane.xlu0 %3265 }
 0xc80   : > { %5140 = vrcp.f32 %v3266_v54 }
 0xc86   : > { %v5141_v22 = vpop.eup %5140 }
 0xc87   : > { %v3280_v47 = vmul.f32 %v5141_v22, %v5133_v14  ;;  %v3269_v3 = vpop.xlane.xlu2 %3268 }
 0xc88   : > { %5142 = vrcp.f32 %v3269_v3 }
 0xc89   : > { %v3288_v45 = vsel %vm732_vm5, %v3280_v47, 0 }
 0xc8a   : > { %v3316_v52 = vand.u32 4294901760, %v3288_v45 }
 0xc8c   : > { %v3317_v28 = vsub.f32 %v3288_v45, %v3316_v52 }
 0xc8e   : > { %v5143_v57 = vpop.eup %5142  ;;  %v3318_v46 = vand.u32 4294901760, %v3317_v28 }
 0xc8f   : > { %v3281_v51 = vmul.f32 %v5143_v57, %v5135_v43  ;;  %v3272_v2 = vpop.xlane.xlu2 %3271 }
 0xc90   : > { %5144 = vrcp.f32 %v3272_v2  ;;  %v3319_v53 = vsub.f32 %v3317_v28, %v3318_v46 }
 0xc91   : > { %v3291_v7 = vsel %vm732_vm5, %v3281_v51, 0 }
 0xc92   : > { %v3324_v10 = vand.u32 4294901760, %v3291_v7  ;;  %v3285_v49 = vpop.permute.xlu0 %3284  ;;  %v3320_v5 = vand.u32 4294901760, %v3319_v53 }
 0xc93   : > { %v3314_v50 = vand.u32 4294901760, %v3285_v49 }
 0xc94   : > { %v3325_v20 = vsub.f32 %v3291_v7, %v3324_v10 }
 0xc95   : > { %v3365_v24 = vsub.f32 %v3285_v49, %v3314_v50  ;;  %3315 = vmatpush.msra.mxu2 %v3314_v50  ;;  %3442 = vmatpush.msrb.mxu1 %v3314_v50 }
 0xc96   : > { %v5145_v25 = vpop.eup %5144  ;;  %3321 = vmatmul.f32.vlgmr.msra.gmra.mxu2 %v3320_v5  ;;  %3446 = vmatmul.f32.vlgmr.msrb.gmra.mxu1 %v3318_v46  ;;  %v3326_v0 = vand.u32 4294901760, %v3325_v20 }
 0xc97   : > { %v3282_v31 = vmul.f32 %v5145_v25, %v5137_v18  ;;  %v3366_v13 = vand.u32 4294901760, %v3365_v24  ;;  %3404 = vmatpush.msrb.mxu0 %v3365_v24  ;;  %v3275_v35 = vpop.xlane.xlu2 %3274 }
 0xc98   : > { %5146 = vrcp.f32 %v3275_v35  ;;  %3407 = vmatmul.f32.vlgmr.msrb.gmra.mxu0 %v3317_v28  ;;  %v3327_v36 = vsub.f32 %v3325_v20, %v3326_v0 }
 0xc99   : > { %v3294_v26 = vsel %vm732_vm5, %v3282_v31, 0  ;;  %v3367_v40 = vsub.f32 %v3365_v24, %v3366_v13  ;;  %3486 = vmatpush.msrb.mxu2 %v3366_v13 }
 0xc9a   : > { %v3332_v37 = vand.u32 4294901760, %v3294_v26  ;;  %v3328_v44 = vand.u32 4294901760, %v3327_v36 }
 0xc9b   : > { %v3368_v41 = vand.u32 4294901760, %v3367_v40 }
 0xc9c   : > { %v3333_v38 = vsub.f32 %v3294_v26, %v3332_v37 }
 0xc9d   : > { %3369 = vmatpush.msra.mxu3 %v3368_v41 }
 0xc9e   : > { %v5147_v27 = vpop.eup %5146  ;;  %3329 = vmatmul.f32.gmra.mxu2 %v3328_v44  ;;  %3371 = vmatmul.f32.vlgmr.msra.gmra.mxu3 %v3316_v52  ;;  %v3334_v58 = vand.u32 4294901760, %v3333_v38 }
 0xc9f   : > { %v3283_v39 = vmul.f32 %v5147_v27, %v5139_v61  ;;  %3452 = vmatmul.f32.gmra.mxu1 %v3326_v0  ;;  %3520 = vmatpush.msrb.mxu3 %v3314_v50 }
 0xca0   : > { %3412 = vmatmul.f32.gmra.mxu0 %v3325_v20  ;;  %v3335_v60 = vsub.f32 %v3333_v38, %v3334_v58 }
 0xca1   : > { %v3297_v4 = vsel %vm732_vm5, %v3283_v39, 0 }
 0xca2   : > { %v3340_v55 = vand.u32 4294901760, %v3297_v4  ;;  %v3336_v62 = vand.u32 4294901760, %v3335_v60 }
 0xca4   : > { %v3341_v32 = vsub.f32 %v3297_v4, %v3340_v55 }
 0xca6   : > { %3337 = vmatmul.f32.gmra.mxu2 %v3336_v62  ;;  %3375 = vmatmul.f32.gmra.mxu3 %v3324_v10  ;;  %v3342_v56 = vand.u32 4294901760, %v3341_v32 }
 0xca7   : > { %3458 = vmatmul.f32.gmra.mxu1 %v3334_v58 }
 0xca8   : > { %3417 = vmatmul.f32.gmra.mxu0 %v3333_v38  ;;  %v3343_v11 = vsub.f32 %v3341_v32, %v3342_v56 }
 0xcaa   : > { %v3344_v14 = vand.u32 4294901760, %v3343_v11 }
 0xcae   : > { %3345 = vmatmul.f32.gmra.mxu2 %v3344_v14  ;;  %3379 = vmatmul.f32.gmra.mxu3 %v3332_v37 }
 0xcaf   : > { %3464 = vmatmul.f32.gmra.mxu1 %v3342_v56 }
 0xcb0   : > { %3422 = vmatmul.f32.gmra.mxu0 %v3341_v32 }
 0xcb6   : > { %3383 = vmatmul.f32.gmra.mxu3 %v3340_v55  ;;  %3488 = vmatmul.f32.vlgmr.msrb.gmra.mxu2 %v3316_v52 }
 0xcbe   : > { %3492 = vmatmul.f32.gmra.mxu2 %v3324_v10  ;;  %3522 = vmatmul.f32.vlgmr.msrb.gmra.mxu3 %v3316_v52 }
 0xcc6   : > { %3496 = vmatmul.f32.gmra.mxu2 %v3332_v37  ;;  %3526 = vmatmul.f32.gmra.mxu3 %v3324_v10 }
 0xcce   : > { %3500 = vmatmul.f32.gmra.mxu2 %v3340_v55  ;;  %3530 = vmatmul.f32.gmra.mxu3 %v3332_v37 }
 0xcd6   : > { %3534 = vmatmul.f32.gmra.mxu3 %v3340_v55 }
 0xd13   : > { %v3447_v59 = vpop.f32.mrf.mxu1 }
 0xd15   : > { %v3408_v29 = vpop.f32.mrf.mxu0 }
 0xd19   : > { %v3322_v48 = vpop.f32.mrf.mxu2 }
 0xd1c   : > { %v3453_v61 = vpop.f32.mrf.mxu1 }
 0xd1d   : > { %v3413_v1 = vpop.f32.mrf.mxu0 }
 0xd21   : > { %v3330_v21 = vpop.f32.mrf.mxu2  ;;  %v3372_v23 = vpop.f32.mrf.mxu3 }
 0xd22   : > { %v3373_v45 = vadd.f32 %v3372_v23, %v3322_v48 }
 0xd24   : > { %v3459_v46 = vpop.f32.mrf.mxu1  ;;  %v3409_v2 = vadd.f32 %v3408_v29, %v3373_v45 }
 0xd25   : > { %v3418_v3 = vpop.f32.mrf.mxu0 }
 0xd26   : > { %v3448_v49 = vadd.f32 %v3447_v59, %v3409_v2  ;;  %v6470_v59 = vld [vmem:[#allocation6_spill] sm:$0xff] }
 0xd29   : > { %v3338_v30 = vpop.f32.mrf.mxu2  ;;  %v3376_v43 = vpop.f32.mrf.mxu3 }
 0xd2a   : > { %v3377_v22 = vadd.f32 %v3376_v43, %v3330_v21 }
 0xd2c   : > { %v3414_v28 = vadd.f32 %v3413_v1, %v3377_v22  ;;  %v3465_v26 = vpop.f32.mrf.mxu1  ;;  %v5036_v22 = vld [vmem:[%s6420_s10 + $0x28] sm:$0xff] }
 0xd2d   : > { %v3423_v20 = vpop.f32.mrf.mxu0  ;;  %v3752_v45 = vand.u32 4294901760, %v5036_v22 }
 0xd2e   : > { %v3454_v7 = vadd.f32 %v3453_v61, %v3414_v28  ;;  %v5037_v61 = vld [vmem:[%s6420_s10 + $0x30] sm:$0xff] }
 0xd31   : > { %v3346_v17 = vpop.f32.mrf.mxu2  ;;  %v3380_v19 = vpop.f32.mrf.mxu3 }
 0xd32   : > { %v3381_v47 = vadd.f32 %v3380_v19, %v3338_v30 }
 0xd34   : > { %v3419_v57 = vadd.f32 %v3418_v3, %v3381_v47 }
 0xd36   : > { %v3460_v10 = vadd.f32 %v3459_v46, %v3419_v57  ;;  %v3790_v57 = vsub.f32 %v5036_v22, %v3752_v45 }
 0xd39   : > { %v3384_v18 = vpop.f32.mrf.mxu3  ;;  %v3489_v63 = vpop.f32.mrf.mxu2 }
 0xd3a   : > { %v3385_v53 = vadd.f32 %v3384_v18, %v3346_v17  ;;  %v3490_v0 = vadd.f32 %v3489_v63, %v3448_v49  ;;  %v6471_v18 = vld [vmem:[#allocation7_spill] sm:$0xff] }
 0xd3b   : > { %v5038_v63 = vld [vmem:[%s6420_s10 + $0x38] sm:$0xff] }
 0xd3c   : > { %v3424_v25 = vadd.f32 %v3423_v20, %v3385_v53  ;;  %v3748_v1 = vand.u32 4294901760, %v5038_v63 }
 0xd3e   : > { %v3466_v41 = vadd.f32 %v3465_v26, %v3424_v25  ;;  %3849 = vmatpush.msra.mxu3 %v3748_v1 }
 0xd41   : > { %v3493_v6 = vpop.f32.mrf.mxu2  ;;  %v3523_v54 = vpop.f32.mrf.mxu3 }
 0xd42   : > { %v3494_v50 = vadd.f32 %v3493_v6, %v3454_v7  ;;  %v3524_v35 = vadd.f32 %v3523_v54, %v3490_v0  ;;  %v3778_v6 = vsub.f32 %v5038_v63, %v3748_v1  ;;  %v3750_v54 = vand.u32 4294901760, %v5037_v61 }
 0xd44   : > { %v3538_v44 = vmul.f32 %v5957_v33, %v3524_v35  ;;  %3820 = vmatpush.msra.mxu2 %v3778_v6  ;;  %v3784_v47 = vsub.f32 %v5037_v61, %v3750_v54  ;;  %v3779_v3 = vand.u32 4294901760, %v3778_v6  ;;  %3851 = vmatpush.msra.mxu3 %v3750_v54 }
 0xd46   : > { %v3560_v4 = vand.u32 4294901760, %v3538_v44  ;;  %3823 = vmatpush.msra.mxu2 %v3784_v47  ;;  %v3780_v28 = vsub.f32 %v3778_v6, %v3779_v3  ;;  %v3785_v46 = vand.u32 4294901760, %v3784_v47  ;;  %3853 = vmatpush.msra.mxu3 %v3752_v45  ;;  %v5040_v6 = vld [vmem:[%s6421_s11 + $0x28] sm:$0xff] }
 0xd48   : > { %v3602_v14 = vsub.f32 %v3538_v44, %v3560_v4  ;;  %v3781_v2 = vand.u32 4294901760, %v3780_v28  ;;  %3826 = vmatpush.msra.mxu2 %v3790_v57  ;;  %v3786_v53 = vsub.f32 %v3784_v47, %v3785_v46  ;;  %v3973_v47 = vand.u32 4294901760, %v5040_v6 }
 0xd49   : > { %v3527_v52 = vpop.f32.mrf.mxu3  ;;  %v3497_v51 = vpop.f32.mrf.mxu2 }
 0xd4a   : > { %v3498_v5 = vadd.f32 %v3497_v51, %v3460_v10  ;;  %v3528_v31 = vadd.f32 %v3527_v52, %v3494_v50  ;;  %v3603_v23 = vand.u32 4294901760, %v3602_v14  ;;  %v5035_v52 = vld [vmem:[%s6420_s10 + $0x20] sm:$0xff]  ;;  %v3791_v10 = vand.u32 4294901760, %v3790_v57 }
 0xd4b   : > { %v3754_v51 = vand.u32 4294901760, %v5035_v52  ;;  %v3787_v49 = vand.u32 4294901760, %v3786_v53  ;;  %v4011_v28 = vsub.f32 %v5040_v6, %v3973_v47 }
 0xd4c   : > { %v3539_v37 = vmul.f32 %v5968_v16, %v3528_v31  ;;  %v3604_v17 = vsub.f32 %v3602_v14, %v3603_v23  ;;  %v3792_v50 = vsub.f32 %v3790_v57, %v3791_v10 }
 0xd4d   : > { %v3796_v7 = vsub.f32 %v5035_v52, %v3754_v51  ;;  %3855 = vmatpush.msra.mxu3 %v3754_v51 }
 0xd4e   : > { %v3558_v39 = vand.u32 4294901760, %v3539_v37  ;;  %v3605_v29 = vand.u32 4294901760, %v3604_v17  ;;  %v3793_v20 = vand.u32 4294901760, %v3792_v50 }
 0xd4f   : > { %3829 = vmatpush.msra.mxu2 %v3796_v7 }
 0xd50   : > { %v3596_v56 = vsub.f32 %v3539_v37, %v3558_v39 }
 0xd51   : > { %v3531_v24 = vpop.f32.mrf.mxu3  ;;  %v3501_v40 = vpop.f32.mrf.mxu2 }
 0xd52   : > { %v3532_v13 = vadd.f32 %v3531_v24, %v3498_v5  ;;  %v3502_v38 = vadd.f32 %v3501_v40, %v3466_v41  ;;  %v3597_v16 = vand.u32 4294901760, %v3596_v56  ;;  %v3797_v5 = vand.u32 4294901760, %v3796_v7 }
 0xd54   : > { %v3540_v36 = vmul.f32 %v5975_v12, %v3532_v13  ;;  %v3598_v43 = vsub.f32 %v3596_v56, %v3597_v16  ;;  %v3798_v24 = vsub.f32 %v3796_v7, %v3797_v5 }
 0xd56   : > { %v3556_v27 = vand.u32 4294901760, %v3540_v36  ;;  %v3599_v19 = vand.u32 4294901760, %v3598_v43  ;;  %v3799_v25 = vand.u32 4294901760, %v3798_v24 }
 0xd58   : > { %v3590_v62 = vsub.f32 %v3540_v36, %v3556_v27 }
 0xd59   : > { %v3535_v58 = vpop.f32.mrf.mxu3 }
 0xd5a   : > { %v3536_v60 = vadd.f32 %v3535_v58, %v3502_v38  ;;  %v3591_v12 = vand.u32 4294901760, %v3590_v62 }
 0xd5c   : > { %v3541_v55 = vmul.f32 %v5982_v42, %v3536_v60  ;;  %v3592_v21 = vsub.f32 %v3590_v62, %v3591_v12 }
 0xd5e   : > { %v3554_v32 = vand.u32 4294901760, %v3541_v55  ;;  %v3593_v42 = vand.u32 4294901760, %v3592_v21 }
 0xd60   : > { %v3584_v11 = vsub.f32 %v3541_v55, %v3554_v32  ;;  %3555 = vmatpush.msra.mxu0 %v3554_v32 }
 0xd62   : > { %v3585_v48 = vand.u32 4294901760, %v3584_v11  ;;  %3557 = vmatpush.msra.mxu0 %v3556_v27 }
 0xd64   : > { %3559 = vmatpush.msra.mxu0 %v3558_v39  ;;  %v3586_v33 = vsub.f32 %v3584_v11, %v3585_v48 }
 0xd66   : > { %3561 = vmatpush.msra.mxu0 %v3560_v4  ;;  %v3587_v30 = vand.u32 4294901760, %v3586_v33 }
 0xd67   : > { %3567 = vmatmul.f32.vlgmr.msra.gmra.mxu0 %v5562_v9  ;;  %v6472_v9 = vld [vmem:[#allocation8_spill] sm:$0xff] }
 0xd68   : > { %3626 = vmatpush.msrb.mxu0 %v3584_v11  ;;  %3588 = vmatpush.msra.mxu1 %v3587_v30 }
 0xd6a   : > { %3629 = vmatpush.msrb.mxu0 %v3590_v62  ;;  %3594 = vmatpush.msra.mxu1 %v3593_v42  ;;  %v3732_v62 = vperm.slane %v5921_v34, 1 }
 0xd6c   : > { %3632 = vmatpush.msrb.mxu0 %v3596_v56  ;;  %3600 = vmatpush.msra.mxu1 %v3599_v19 }
 0xd6e   : > { %3635 = vmatpush.msrb.mxu0 %v3602_v14  ;;  %3606 = vmatpush.msra.mxu1 %v3605_v29 }
 0xd6f   : > { %3608 = vmatmul.f32.vlgmr.msra.gmra.mxu1 %v6470_v59  ;;  %3638 = vmatmul.f32.vlgmr.msrb.gmra.mxu0 %v6471_v18 }
 0xd70   : > { %3684 = vmatpush.msra.mxu0 %v3585_v48  ;;  %3655 = vmatpush.msrb.mxu1 %v3554_v32 }
 0xd72   : > { %3688 = vmatpush.msra.mxu0 %v3591_v12  ;;  %3657 = vmatpush.msrb.mxu1 %v3556_v27 }
 0xd74   : > { %3692 = vmatpush.msra.mxu0 %v3597_v16  ;;  %3659 = vmatpush.msrb.mxu1 %v3558_v39 }
 0xd76   : > { %3696 = vmatpush.msra.mxu0 %v3603_v23  ;;  %3661 = vmatpush.msrb.mxu1 %v3560_v4 }
 0xd77   : > { %3665 = vmatmul.f32.vlgmr.msrb.gmra.mxu1 %v6472_v9  ;;  %3698 = vmatmul.f32.vlgmr.msra.gmra.mxu0 %v6470_v59  ;;  %v5042_v9 = vld [vmem:[%s6421_s11 + $0x38] sm:$0xff] }
 0xd78   : > { %3715 = vmatpush.msra.mxu1 %v3554_v32  ;;  %3749 = vmatpush.msrb.mxu0 %v3748_v1  ;;  %v3969_v63 = vand.u32 4294901760, %v5042_v9 }
 0xd7a   : > { %3717 = vmatpush.msra.mxu1 %v3556_v27  ;;  %3751 = vmatpush.msrb.mxu0 %v3750_v54 }
 0xd7b   : > { %3970 = vmatpush.msrb.mxu2 %v3969_v63 }
 0xd7c   : > { %3719 = vmatpush.msra.mxu1 %v3558_v39  ;;  %3753 = vmatpush.msrb.mxu0 %v3752_v45 }
 0xd7e   : > { %3721 = vmatpush.msra.mxu1 %v3560_v4  ;;  %3755 = vmatpush.msrb.mxu0 %v3754_v51 }
 0xd7f   : > { %3723 = vmatmul.f32.vlgmr.msra.gmra.mxu1 %v6470_v59 }
 0xd80   : > { %3878 = vmatpush.msra.mxu0 %v3779_v3  ;;  %3782 = vmatpush.msrb.mxu1 %v3781_v2  ;;  %v5039_v3 = vld [vmem:[%s6421_s11 + $0x20] sm:$0xff]  ;;  %v4012_v2 = vand.u32 4294901760, %v4011_v28 }
 0xd81   : > { %v3975_v57 = vand.u32 4294901760, %v5039_v3 }
 0xd82   : > { %3882 = vmatpush.msra.mxu0 %v3785_v46  ;;  %3788 = vmatpush.msrb.mxu1 %v3787_v49 }
 0xd83   : > { %v4017_v53 = vsub.f32 %v5039_v3, %v3975_v57 }
 0xd84   : > { %3886 = vmatpush.msra.mxu0 %v3791_v10  ;;  %3794 = vmatpush.msrb.mxu1 %v3793_v20  ;;  %v4013_v10 = vsub.f32 %v4011_v28, %v4012_v2 }
 0xd85   : > { %v4018_v49 = vand.u32 4294901760, %v4017_v53 }
 0xd86   : > { %3890 = vmatpush.msra.mxu0 %v3797_v5  ;;  %3800 = vmatpush.msrb.mxu1 %v3799_v25  ;;  %v4014_v50 = vand.u32 4294901760, %v4013_v10 }
 0xd87   : > { %v4019_v5 = vsub.f32 %v4017_v53, %v4018_v49 }
 0xd88   : > { %3909 = vmatpush.msra.mxu1 %v3748_v1  ;;  %v3999_v1 = vsub.f32 %v5042_v9, %v3969_v63 }
 0xd89   : > { %v4020_v20 = vand.u32 4294901760, %v4019_v5 }
 0xd8a   : > { %3911 = vmatpush.msra.mxu1 %v3750_v54  ;;  %v4000_v54 = vand.u32 4294901760, %v3999_v1 }
 0xd8c   : > { %3913 = vmatpush.msra.mxu1 %v3752_v45  ;;  %v4001_v45 = vsub.f32 %v3999_v1, %v4000_v54 }
 0xd8e   : > { %3915 = vmatpush.msra.mxu1 %v3754_v51  ;;  %v4002_v46 = vand.u32 4294901760, %v4001_v45  ;;  %v5052_v45 = vld [vmem:[%s6422_s12 + $0xc8] sm:$0xff] }
 0xd90   : > { %4003 = vmatpush.msrb.mxu3 %v4002_v46  ;;  %v6142_v46 = vand.u32 4294901760, %v5052_v45 }
 0xd92   : > { %v6155_v10 = vsub.f32 %v5052_v45, %v6142_v46 }
 0xde4   : > { %v3568_v0 = vpop.f32.mrf.mxu0 }
 0xdec   : > { %v3609_v31 = vpop.f32.mrf.mxu1  ;;  %v3639_v13 = vpop.f32.mrf.mxu0 }
 0xded   : > { %v3610_v35 = vadd.f32 %v3609_v31, %v3568_v0 }
 0xdef   : > { %v3640_v26 = vadd.f32 %v3639_v13, %v3610_v35 }
 0xdf4   : > { %v3666_v36 = vpop.f32.mrf.mxu1  ;;  %v3699_v37 = vpop.f32.mrf.mxu0 }
 0xdf5   : > { %v3667_v40 = vadd.f32 %v3666_v36, %v3640_v26  ;;  %v5058_v26 = vld [vmem:[%s6422_s12 + $0xf8] sm:$0xff] }
 0xdf7   : > { %v3700_v41 = vadd.f32 %v3699_v37, %v3667_v40  ;;  %v5057_v40 = vld [vmem:[%s6422_s12 + $0xf0] sm:$0xff]  ;;  %v5056_v37 = vld [vmem:[%s6422_s12 + $0xe8] sm:$0xff] }
 0xdfc   : > { %v3724_v44 = vpop.f32.mrf.mxu1 }
 0xdfd   : > { %v3725_v38 = vadd.f32 %v3724_v44, %v3700_v41  ;;  %v6057_v41 = vand.u32 4294901760, %v5058_v26  ;;  %v6059_v44 = vand.u32 4294901760, %v5057_v40 }
 0xdff   : > { %v3734_v27 = vsel %vm503_vm0, %v3725_v38, 0  ;;  %v6061_v38 = vand.u32 4294901760, %v5056_v37 }
 0xe00   : > { %v3756_v58 = vand.u32 4294901760, %v3734_v27 }
 0xe02   : > { %v3757_v39 = vsub.f32 %v3734_v27, %v3756_v58  ;;  %3802 = vmatmul.f32.vlgmr.msrb.gmra.mxu1 %v3756_v58 }
 0xe03   : > { %4070 = vmatpush.msrb.mxu1 %v3969_v63 }
 0xe04   : > { %v3758_v60 = vand.u32 4294901760, %v3757_v39  ;;  %3832 = vmatmul.f32.vlgmr.msra.gmra.mxu2 %v3757_v39 }
 0xe06   : > { %v3759_v4 = vsub.f32 %v3757_v39, %v3758_v60  ;;  %3859 = vmatmul.f32.vlgmr.msra.gmra.mxu3 %v3758_v60  ;;  %v6067_v39 = vsub.f32 %v5057_v40, %v6059_v44  ;;  %v6070_v60 = vsub.f32 %v5056_v37, %v6061_v38  ;;  %v5048_v37 = vld [vmem:[%s6422_s12 + $0xa8] sm:$0xff] }
 0xe08   : > { %v3760_v55 = vand.u32 4294901760, %v3759_v4 }
 0xe0a   : > { %3761 = vmatmul.f32.vlgmr.msrb.gmra.mxu0 %v3760_v55  ;;  %3917 = vmatmul.f32.vlgmr.msra.gmra.mxu1 %v3756_v58  ;;  %v6076_v55 = vld [vmem:[%s6423_s13 + $0x8] sm:$0xff] }
 0xe0b   : > { %4041 = vmatpush.msrb.mxu0 %v3999_v1  ;;  %v5054_v1 = vld [vmem:[%s6422_s12 + $0xd8] sm:$0xff] }
 0xe0c   : > { %v6116_v6 = vand.u32 4294901760, %v5054_v1 }
 0xe12   : > { %3892 = vmatmul.f32.vlgmr.msra.gmra.mxu0 %v3756_v58  ;;  %v6064_v58 = vsub.f32 %v5058_v26, %v6057_v41 }
 0xe7f   : > { %v3803_v56 = vpop.f32.mrf.mxu1 }
 0xe87   : > { %v3762_v32 = vpop.f32.mrf.mxu0  ;;  %v3833_v14 = vpop.f32.mrf.mxu2 }
 0xe88   : > { %v3763_v11 = vadd.f32 %v3762_v32, %v3732_v62  ;;  %v3918_v30 = vpop.f32.mrf.mxu1  ;;  %v3944_v62 = vperm.slane %v6076_v55, 2  ;;  %v4212_v32 = vand.u32 4294901760, %v6064_v58 }
 0xe89   : > { %v3860_v16 = vpop.f32.mrf.mxu3 }
 0xe8a   : > { %v3804_v12 = vadd.f32 %v3803_v56, %v3763_v11  ;;  %v4218_v56 = vand.u32 4294901760, %v6067_v39  ;;  %v4224_v11 = vand.u32 4294901760, %v6070_v60 }
 0xe8c   : > { %v3834_v48 = vadd.f32 %v3833_v14, %v3804_v12  ;;  %v3946_v12 = vperm.slane %v6076_v55, 3 }
 0xe8e   : > { %v3861_v33 = vadd.f32 %v3860_v16, %v3834_v48  ;;  %v4213_v16 = vsub.f32 %v6064_v58, %v4212_v32 }
 0xe8f   : > { %v3893_v21 = vpop.f32.mrf.mxu0 }
 0xe90   : > { %v3894_v23 = vadd.f32 %v3893_v21, %v3861_v33  ;;  %v4219_v33 = vsub.f32 %v6067_v39, %v4218_v56  ;;  %v4225_v21 = vsub.f32 %v6070_v60, %v4224_v11 }
 0xe92   : > { %v3919_v43 = vadd.f32 %v3918_v30, %v3894_v23  ;;  %v4214_v30 = vand.u32 4294901760, %v4213_v16 }
 0xe94   : > { %v3921_v42 = vadd.f32 %v3919_v43, %v5912_v15  ;;  %v5041_v15 = vld [vmem:[%s6421_s11 + $0x30] sm:$0xff]  ;;  %v4220_v43 = vand.u32 4294901760, %v4219_v33 }
 0xe95   : > { %v3971_v61 = vand.u32 4294901760, %v5041_v15 }
 0xe96   : > { %v3922_v17 = vsel %vm503_vm0, %v3921_v42, 0.0 }
 0xe97   : > { %3923 = vadd.xlane.f32.xlu2 %v3922_v17  ;;  %v4005_v22 = vsub.f32 %v5041_v15, %v3971_v61  ;;  %4072 = vmatpush.msrb.mxu1 %v3971_v61  ;;  %v4226_v17 = vand.u32 4294901760, %v4225_v21 }
 0xe98   : > { %3972 = vmatpush.msrb.mxu2 %v3971_v61 }
 0xe99   : > { %v4006_v52 = vand.u32 4294901760, %v4005_v22  ;;  %4044 = vmatpush.msrb.mxu0 %v4005_v22  ;;  %4074 = vmatpush.msrb.mxu1 %v3973_v47 }
 0xe9a   : > { %3974 = vmatpush.msrb.mxu2 %v3973_v47 }
 0xe9b   : > { %v4007_v51 = vsub.f32 %v4005_v22, %v4006_v52  ;;  %4047 = vmatpush.msrb.mxu0 %v4011_v28  ;;  %4076 = vmatpush.msrb.mxu1 %v3975_v57 }
 0xe9c   : > { %3976 = vmatpush.msrb.mxu2 %v3975_v57 }
 0xe9d   : > { %v4008_v7 = vand.u32 4294901760, %v4007_v51  ;;  %4050 = vmatpush.msrb.mxu0 %v4017_v53  ;;  %4215 = vmatpush.msra.mxu1 %v4214_v30  ;;  %v5051_v51 = vld [vmem:[%s6422_s12 + $0xc0] sm:$0xff] }
 0xe9e   : > { %4099 = vmatpush.msra.mxu2 %v4000_v54  ;;  %v5053_v54 = vld [vmem:[%s6422_s12 + $0xd0] sm:$0xff] }
 0xe9f   : > { %4009 = vmatpush.msrb.mxu3 %v4008_v7  ;;  %4170 = vmatpush.msra.mxu0 %v6057_v41  ;;  %v6127_v3 = vand.u32 4294901760, %v5053_v54 }
 0xea0   : > { %4103 = vmatpush.msra.mxu2 %v4006_v52  ;;  %4221 = vmatpush.msra.mxu1 %v4220_v43  ;;  %v5046_v43 = vld [vmem:[%s6422_s12 + $0x98] sm:$0xff] }
 0xea1   : > { %4015 = vmatpush.msrb.mxu3 %v4014_v50  ;;  %4172 = vmatpush.msra.mxu0 %v6059_v44  ;;  %v5050_v50 = vld [vmem:[%s6422_s12 + $0xb8] sm:$0xff] }
 0xea2   : > { %4107 = vmatpush.msra.mxu2 %v4012_v2  ;;  %4227 = vmatpush.msra.mxu1 %v4226_v17 }
 0xea3   : > { %4021 = vmatpush.msrb.mxu3 %v4020_v20  ;;  %4174 = vmatpush.msra.mxu0 %v6061_v38 }
 0xea4   : > { %4111 = vmatpush.msra.mxu2 %v4018_v49  ;;  %v6159_v49 = vand.u32 4294901760, %v5051_v51 }
 0xea5   : > { %4130 = vmatpush.msra.mxu3 %v3969_v63  ;;  %v5055_v63 = vld [vmem:[%s6422_s12 + $0xe0] sm:$0xff] }
 0xea6   : > { %v6108_v15 = vand.u32 4294901760, %v5055_v63 }
 0xea7   : > { %4132 = vmatpush.msra.mxu3 %v3971_v61 }
 0xea8   : > { %v6114_v61 = vsub.f32 %v5055_v63, %v6108_v15  ;;  %4176 = vmatpush.msra.mxu0 %v6108_v15 }
 0xea9   : > { %4134 = vmatpush.msra.mxu3 %v3973_v47  ;;  %v6125_v47 = vsub.f32 %v5054_v1, %v6116_v6 }
 0xeaa   : > { %v4230_v22 = vand.u32 4294901760, %v6114_v61  ;;  %4178 = vmatpush.msra.mxu0 %v6116_v6 }
 0xeab   : > { %4136 = vmatpush.msra.mxu3 %v3975_v57  ;;  %v4236_v28 = vand.u32 4294901760, %v6125_v47  ;;  %v6140_v57 = vsub.f32 %v5053_v54, %v6127_v3 }
 0xeac   : > { %v4231_v52 = vsub.f32 %v6114_v61, %v4230_v22  ;;  %4180 = vmatpush.msra.mxu0 %v6127_v3 }
 0xead   : > { %v4237_v53 = vsub.f32 %v6125_v47, %v4236_v28  ;;  %v4242_v7 = vand.u32 4294901760, %v6140_v57 }
 0xeae   : > { %v4232_v2 = vand.u32 4294901760, %v4231_v52  ;;  %4182 = vmatpush.msra.mxu0 %v6142_v46  ;;  %v5044_v52 = vld [vmem:[%s6422_s12 + $0x88] sm:$0xff] }
 0xeaf   : > { %v4238_v5 = vand.u32 4294901760, %v4237_v53  ;;  %v4243_v20 = vsub.f32 %v6140_v57, %v4242_v7 }
 0xeb0   : > { %4233 = vmatpush.msra.mxu1 %v4232_v2  ;;  %4184 = vmatpush.msra.mxu0 %v6159_v49 }
 0xeb2   : > { %4239 = vmatpush.msra.mxu1 %v4238_v5 }
 0xf0a   : > { %v3924_v19 = vpop.xlane.xlu2 %3923 }
 0xf0b   : > { %v3925_v34 = vmul.f32 %v3924_v19, %v5369_v8 }
 0xf0d   : > { %v6030_v29 = vsub.f32 %v3921_v42, %v3925_v34 }
 0xf0f   : > { %v3927_v59 = vmul.f32 %v6030_v29, %v6030_v29 }
 0xf11   : > { %v3928_v18 = vsel %vm503_vm0, %v3927_v59, 0.0 }
 0xf12   : > { %3929 = vadd.xlane.f32.xlu0 %v3928_v18 }
 0xf85   : > { %v3930_v24 = vpop.xlane.xlu0 %3929 }
 0xf86   : > { %v3931_v25 = vmul.f32 %v3930_v24, %v5369_v8  ;;  %v4248_v24 = vand.u32 4294901760, %v6155_v10 }
 0xf88   : > { %v3932_v0 = vadd.f32 1e-12, %v3931_v25  ;;  %v6169_v25 = vand.u32 4294901760, %v5050_v50 }
 0xf8a   : > { %5148 = vrsqrt.f32 %v3932_v0  ;;  %vm3939_vm13 = vweird.f32 %v3932_v0  ;;  %4186 = vmatpush.msra.mxu0 %v6169_v25 }
 0xf90   : > { %v5149_v31 = vpop.eup %5148 }
 0xf91   : > { %v3934_v13 = vmul.f32 %v5149_v31, %v3932_v0  ;;  %vm3940_vm12 = vweird.f32 %v5149_v31  ;;  %v6173_v0 = vsub.f32 %v5051_v51, %v6159_v49 }
 0xf92   : > { %vm3941_vm14 = vmor %vm3939_vm13, %vm3940_vm12 }
 0xf93   : > { %v3935_v35 = vmul.f32 %v5149_v31, %v3934_v13  ;;  %v4244_v13 = vand.u32 4294901760, %v4243_v20  ;;  %v4254_v40 = vand.u32 4294901760, %v6173_v0  ;;  %v5043_v20 = vld [vmem:[%s6422_s12 + $0x80] sm:$0xff] }
 0xf95   : > { %v3936_v36 = vmul.f32 0.5, %v3935_v35  ;;  %v4249_v35 = vsub.f32 %v6155_v10, %v4248_v24  ;;  %4245 = vmatpush.msra.mxu1 %v4244_v13 }
 0xf97   : > { %v3937_v27 = vsub.f32 1.5, %v3936_v36  ;;  %v6184_v36 = vsub.f32 %v5050_v50, %v6169_v25  ;;  %v6259_v50 = vand.u32 4294901760, %v5044_v52 }
 0xf99   : > { %v3938_v4 = vmul.f32 %v5149_v31, %v3937_v27  ;;  %v4250_v27 = vand.u32 4294901760, %v4249_v35  ;;  %v4295_v35 = vsub.f32 %v5044_v52, %v6259_v50 }
 0xf9b   : > { %v3942_v14 = vsel %vm3941_vm14, %v5149_v31, %v3938_v4  ;;  %v5049_v31 = vld [vmem:[%s6422_s12 + $0xb0] sm:$0xff]  ;;  %v4260_v4 = vand.u32 4294901760, %v6184_v36  ;;  %4251 = vmatpush.msra.mxu1 %v4250_v27 }
 0xf9c   : > { %v3943_v48 = vmul.f32 %v3942_v14, %v6030_v29  ;;  %v6186_v26 = vand.u32 4294901760, %v5049_v31  ;;  %v4255_v14 = vsub.f32 %v6173_v0, %v4254_v40 }
 0xf9d   : > { %v4261_v16 = vsub.f32 %v6184_v36, %v4260_v4 }
 0xf9e   : > { %v3945_v23 = vmul.f32 %v3944_v62, %v3943_v48  ;;  %v6196_v62 = vsub.f32 %v5049_v31, %v6186_v26  ;;  %v5047_v48 = vld [vmem:[%s6422_s12 + $0xa0] sm:$0xff]  ;;  %4188 = vmatpush.msra.mxu0 %v6186_v26  ;;  %v4256_v30 = vand.u32 4294901760, %v4255_v14 }
 0xf9f   : > { %v4262_v17 = vand.u32 4294901760, %v4261_v16 }
 0xfa0   : > { %v6095_v42 = vadd.f32 %v3946_v12, %v3945_v23  ;;  %v6198_v12 = vand.u32 4294901760, %v5048_v37  ;;  %v4266_v33 = vand.u32 4294901760, %v6196_v62  ;;  %v6216_v23 = vand.u32 4294901760, %v5047_v48  ;;  %4257 = vmatpush.msra.mxu1 %v4256_v30 }
 0xfa2   : > { %v3955_v19 = vsel %vm503_vm0, %v6095_v42, 0  ;;  %v6214_v21 = vsub.f32 %v5048_v37, %v6198_v12  ;;  %4190 = vmatpush.msra.mxu0 %v6198_v12  ;;  %4263 = vmatpush.msra.mxu1 %v4262_v17  ;;  %v6270_v37 = vand.u32 4294901760, %v5043_v20 }
 0xfa3   : > { %v3977_v34 = vand.u32 4294901760, %v3955_v19 }
 0xfa4   : > { %4192 = vmatpush.msra.mxu0 %v6216_v23  ;;  %v4301_v16 = vsub.f32 %v5043_v20, %v6270_v37 }
 0xfa5   : > { %4023 = vmatmul.f32.vlgmr.msrb.gmra.mxu3 %v3977_v34  ;;  %v3978_v29 = vsub.f32 %v3955_v19, %v3977_v34  ;;  %v4267_v19 = vsub.f32 %v6196_v62, %v4266_v33 }
 0xfa6   : > { %4366 = vmatpush.msrb.mxu3 %v6057_v41 }
 0xfa7   : > { %4053 = vmatmul.f32.vlgmr.msrb.gmra.mxu0 %v3978_v29  ;;  %v3979_v59 = vand.u32 4294901760, %v3978_v29 }
 0xfa8   : > { %4368 = vmatpush.msrb.mxu3 %v6059_v44 }
 0xfa9   : > { %4080 = vmatmul.f32.vlgmr.msrb.gmra.mxu1 %v3979_v59  ;;  %v3980_v18 = vsub.f32 %v3978_v29, %v3979_v59  ;;  %v6229_v29 = vsub.f32 %v5047_v48, %v6216_v23  ;;  %v6232_v59 = vand.u32 4294901760, %v5046_v43  ;;  %v4296_v48 = vand.u32 4294901760, %v4295_v35 }
 0xfaa   : > { %4370 = vmatpush.msrb.mxu3 %v6061_v38 }
 0xfab   : > { %v3981_v9 = vand.u32 4294901760, %v3980_v18  ;;  %v5045_v18 = vld [vmem:[%s6422_s12 + $0x90] sm:$0xff]  ;;  %v4278_v1 = vand.u32 4294901760, %v6229_v29  ;;  %v6247_v45 = vsub.f32 %v5046_v43, %v6232_v59  ;;  %4194 = vmatpush.msra.mxu0 %v6232_v59  ;;  %v4297_v17 = vsub.f32 %v4295_v35, %v4296_v48 }
 0xfac   : > { %4372 = vmatpush.msrb.mxu3 %v6108_v15  ;;  %v6242_v54 = vand.u32 4294901760, %v5045_v18 }
 0xfad   : > { %3982 = vmatmul.f32.vlgmr.msrb.gmra.mxu2 %v3981_v9  ;;  %4138 = vmatmul.f32.vlgmr.msra.gmra.mxu3 %v3977_v34  ;;  %v4268_v9 = vand.u32 4294901760, %v4267_v19  ;;  %v4279_v2 = vsub.f32 %v6229_v29, %v4278_v1  ;;  %v4284_v5 = vand.u32 4294901760, %v6247_v45  ;;  %v4302_v19 = vand.u32 4294901760, %v4301_v16 }
 0xfae   : > { %4313 = vmatpush.msrb.mxu2 %v6064_v58  ;;  %4374 = vmatpush.msrb.mxu3 %v6116_v6  ;;  %v6257_v53 = vsub.f32 %v5045_v18, %v6242_v54  ;;  %v4298_v18 = vand.u32 4294901760, %v4297_v17 }
 0xfaf   : > { %4269 = vmatpush.msra.mxu1 %v4268_v9  ;;  %4196 = vmatpush.msra.mxu0 %v6242_v54  ;;  %v4280_v31 = vand.u32 4294901760, %v4279_v2  ;;  %v4285_v27 = vsub.f32 %v6247_v45, %v4284_v5  ;;  %v4303_v9 = vsub.f32 %v4301_v16, %v4302_v19 }
 0xfb0   : > { %4316 = vmatpush.msrb.mxu2 %v6067_v39  ;;  %4376 = vmatpush.msrb.mxu3 %v6127_v3  ;;  %v4290_v13 = vand.u32 4294901760, %v6257_v53 }
 0xfb1   : > { %4198 = vmatpush.msra.mxu0 %v6259_v50  ;;  %v4286_v30 = vand.u32 4294901760, %v4285_v27 }
 0xfb2   : > { %4319 = vmatpush.msrb.mxu2 %v6070_v60  ;;  %4378 = vmatpush.msrb.mxu3 %v6142_v46  ;;  %v4291_v14 = vsub.f32 %v6257_v53, %v4290_v13 }
 0xfb3   : > { %4200 = vmatpush.msra.mxu0 %v6270_v37 }
 0xfb4   : > { %4322 = vmatpush.msrb.mxu2 %v6114_v61  ;;  %4380 = vmatpush.msrb.mxu3 %v6159_v49  ;;  %v4292_v43 = vand.u32 4294901760, %v4291_v14  ;;  %v4538_v14 = vld [vmem:[%s6417_s7 + $0x8] sm:$0xff] }
 0xfb5   : > { %4113 = vmatmul.f32.vlgmr.msra.gmra.mxu2 %v3977_v34  ;;  %v4272_v34 = vand.u32 4294901760, %v6214_v21  ;;  %4407 = vmatpush.msrb.mxu0 %v4212_v32 }
 0xfb6   : > { %4325 = vmatpush.msrb.mxu2 %v6125_v47  ;;  %4382 = vmatpush.msrb.mxu3 %v6169_v25 }
 0xfb7   : > { %v4273_v63 = vsub.f32 %v6214_v21, %v4272_v34  ;;  %4411 = vmatpush.msrb.mxu0 %v4218_v56 }
 0xfb8   : > { %4328 = vmatpush.msrb.mxu2 %v6140_v57  ;;  %4384 = vmatpush.msrb.mxu3 %v6186_v26 }
 0xfb9   : > { %v4274_v51 = vand.u32 4294901760, %v4273_v63  ;;  %v4304_v63 = vand.u32 4294901760, %v4303_v9  ;;  %4415 = vmatpush.msrb.mxu0 %v4224_v11 }
 0xfba   : > { %4331 = vmatpush.msrb.mxu2 %v6155_v10  ;;  %4386 = vmatpush.msrb.mxu3 %v6198_v12 }
 0xfbb   : > { %4275 = vmatpush.msra.mxu1 %v4274_v51  ;;  %4419 = vmatpush.msrb.mxu0 %v4230_v22 }
 0xfbc   : > { %4334 = vmatpush.msrb.mxu2 %v6173_v0  ;;  %4388 = vmatpush.msrb.mxu3 %v6216_v23 }
 0xfbd   : > { %4281 = vmatpush.msra.mxu1 %v4280_v31  ;;  %4423 = vmatpush.msrb.mxu0 %v4236_v28 }
 0xfbe   : > { %4337 = vmatpush.msrb.mxu2 %v6184_v36  ;;  %4390 = vmatpush.msrb.mxu3 %v6232_v59 }
 0xfbf   : > { %4287 = vmatpush.msra.mxu1 %v4286_v30  ;;  %4427 = vmatpush.msrb.mxu0 %v4242_v7  ;;  %v4563_v30 = vand.u32 4294901760, %v4538_v14 }
 0xfc0   : > { %4340 = vmatpush.msrb.mxu2 %v6196_v62  ;;  %4392 = vmatpush.msrb.mxu3 %v6242_v54 }
 0xfc1   : > { %4293 = vmatpush.msra.mxu1 %v4292_v43  ;;  %4431 = vmatpush.msrb.mxu0 %v4248_v24  ;;  %v4537_v43 = vld [vmem:[%s6417_s7] sm:$0xff] }
 0xfc2   : > { %4343 = vmatpush.msrb.mxu2 %v6214_v21  ;;  %4394 = vmatpush.msrb.mxu3 %v6259_v50  ;;  %v4565_v9 = vand.u32 4294901760, %v4537_v43 }
 0xfc3   : > { %4299 = vmatpush.msra.mxu1 %v4298_v18  ;;  %4435 = vmatpush.msrb.mxu0 %v4254_v40  ;;  %v4601_v18 = vsub.f32 %v4538_v14, %v4563_v30 }
 0xfc4   : > { %4346 = vmatpush.msrb.mxu2 %v6229_v29  ;;  %4396 = vmatpush.msrb.mxu3 %v6270_v37 }
 0xfc5   : > { %4305 = vmatpush.msra.mxu1 %v4304_v63  ;;  %4439 = vmatpush.msrb.mxu0 %v4260_v4  ;;  %v4168_v4 = vperm.slane %v6076_v55, 5 }
 0xfc6   : > { %4349 = vmatpush.msrb.mxu2 %v6247_v45 }
 0xfc7   : > { %4474 = vmatpush.msrb.mxu1 %v6057_v41  ;;  %4443 = vmatpush.msrb.mxu0 %v4266_v33  ;;  %v3953_v41 = vperm.slane %v6076_v55, 4 }
 0xfc8   : > { %4352 = vmatpush.msrb.mxu2 %v6257_v53 }
 0xfc9   : > { %4476 = vmatpush.msrb.mxu1 %v6059_v44  ;;  %4447 = vmatpush.msrb.mxu0 %v4272_v34 }
 0xfca   : > { %4355 = vmatpush.msrb.mxu2 %v4295_v35 }
 0xfcb   : > { %4478 = vmatpush.msrb.mxu1 %v6061_v38  ;;  %4451 = vmatpush.msrb.mxu0 %v4278_v1 }
 0xfcc   : > { %4358 = vmatpush.msrb.mxu2 %v4301_v16 }
 0xfcd   : > { %4480 = vmatpush.msrb.mxu1 %v6108_v15  ;;  %4455 = vmatpush.msrb.mxu0 %v4284_v5 }
 0xfcf   : > { %4482 = vmatpush.msrb.mxu1 %v6116_v6  ;;  %4459 = vmatpush.msrb.mxu0 %v4290_v13  ;;  %v4540_v13 = vld [vmem:[%s6417_s7 + $0x18] sm:$0xff] }
 0xfd0   : > { %v4559_v35 = vand.u32 4294901760, %v4540_v13 }
 0xfd1   : > { %4484 = vmatpush.msrb.mxu1 %v6127_v3  ;;  %4463 = vmatpush.msrb.mxu0 %v4296_v48 }
 0xfd2   : > { %4560 = vmatpush.msra.mxu2 %v4559_v35 }
 0xfd3   : > { %4486 = vmatpush.msrb.mxu1 %v6142_v46  ;;  %4467 = vmatpush.msrb.mxu0 %v4302_v19 }
 0xfd5   : > { %4488 = vmatpush.msrb.mxu1 %v6159_v49 }
 0xfd7   : > { %4490 = vmatpush.msrb.mxu1 %v6169_v25 }
 0xfd9   : > { %4492 = vmatpush.msrb.mxu1 %v6186_v26 }
 0xfdb   : > { %4494 = vmatpush.msrb.mxu1 %v6198_v12 }
 0xfdd   : > { %4496 = vmatpush.msrb.mxu1 %v6216_v23 }
 0xfdf   : > { %4498 = vmatpush.msrb.mxu1 %v6232_v59 }
 0xfe1   : > { %4500 = vmatpush.msrb.mxu1 %v6242_v54 }
 0xfe3   : > { %4502 = vmatpush.msrb.mxu1 %v6259_v50 }
 0xfe5   : > { %4504 = vmatpush.msrb.mxu1 %v6270_v37  ;;  %v6334_v37 = vsub.f32 %v4540_v13, %v4559_v35 }
 0xfe7   : > { %v4590_v48 = vand.u32 4294901760, %v6334_v37 }
 0xfe9   : > { %v4591_v17 = vsub.f32 %v6334_v37, %v4590_v48 }
 0xfeb   : > { %v4592_v63 = vand.u32 4294901760, %v4591_v17 }
 0xfed   : > { %4593 = vmatpush.msra.mxu3 %v4592_v63 }
0x1024   : > { %v4054_v60 = vpop.f32.mrf.mxu0 }
0x1026   : > { %v4081_v56 = vpop.f32.mrf.mxu1 }
0x1028   : > { %v4024_v44 = vpop.f32.mrf.mxu3 }
0x1030   : > { %v3983_v38 = vpop.f32.mrf.mxu2  ;;  %v4139_v6 = vpop.f32.mrf.mxu3 }
0x1031   : > { %v3984_v58 = vadd.f32 %v3983_v38, %v3953_v41  ;;  %v4607_v38 = vsub.f32 %v4537_v43, %v4565_v9 }
0x1033   : > { %v4025_v39 = vadd.f32 %v4024_v44, %v3984_v58  ;;  %v4602_v44 = vand.u32 4294901760, %v4601_v18 }
0x1035   : > { %v4055_v32 = vadd.f32 %v4054_v60, %v4025_v39  ;;  %v4603_v39 = vsub.f32 %v4601_v18, %v4602_v44  ;;  %v4608_v60 = vand.u32 4294901760, %v4607_v38 }
0x1037   : > { %v4082_v11 = vadd.f32 %v4081_v56, %v4055_v32  ;;  %v4604_v32 = vand.u32 4294901760, %v4603_v39  ;;  %v4609_v56 = vsub.f32 %v4607_v38, %v4608_v60  ;;  %v4733_v39 = vld [vmem:[%s490_s26] sm:$0x1]  ;;  %s4944_s26 = sshll.u32 %s480_s18, 4  ;;  %s4945_s26 = int_to_ptr.vmem [resolvable:$true] %s4944_s26 }
0x1038   : > { %v4114_v15 = vpop.f32.mrf.mxu2 }
0x1039   : > { %v4115_v61 = vadd.f32 %v4114_v15, %v4082_v11  ;;  %v4610_v11 = vand.u32 4294901760, %v4609_v56 }
0x103b   : > { %v4140_v22 = vadd.f32 %v4139_v6, %v4115_v61 }
0x103d   : > { %v4143_v47 = vmul.f32 0.044715, %v4140_v22  ;;  %v4142_v10 = vmul.f32 0.5, %v4140_v22 }
0x103f   : > { %v4144_v3 = vmul.f32 %v4143_v47, %v4140_v22 }
0x1041   : > { %v4145_v28 = vmul.f32 %v4144_v3, %v4140_v22 }
0x1043   : > { %v4146_v57 = vadd.f32 %v4145_v28, %v4140_v22 }
0x1045   : > { %v4147_v46 = vmul.f32 0.7978846, %v4146_v57 }
0x1047   : > { %5150 = vtanh.f32 %v4147_v46 }
0x104d   : > { %v5151_v7 = vpop.eup %5150 }
0x104e   : > { %v4149_v49 = vadd.f32 1.0, %v5151_v7  ;;  %v4533_v7 = vperm.slane %v6076_v55, 6 }
0x1050   : > { %v4150_v24 = vmul.f32 %v4149_v49, %v4142_v10 }
0x1052   : > { %v4201_v25 = vand.u32 4294901760, %v4150_v24 }
0x1054   : > { %4307 = vmatmul.f32.vlgmr.msra.gmra.mxu1 %v4201_v25  ;;  %v4202_v0 = vsub.f32 %v4150_v24, %v4201_v25 }
0x1056   : > { %4361 = vmatmul.f32.vlgmr.msrb.gmra.mxu2 %v4202_v0  ;;  %v4203_v36 = vand.u32 4294901760, %v4202_v0 }
0x1058   : > { %4400 = vmatmul.f32.vlgmr.msrb.gmra.mxu3 %v4203_v36  ;;  %v4204_v26 = vsub.f32 %v4202_v0, %v4203_v36 }
0x105a   : > { %v4205_v40 = vand.u32 4294901760, %v4204_v26 }
0x105c   : > { %4206 = vmatmul.f32.vlgmr.msra.gmra.mxu0 %v4205_v40  ;;  %4506 = vmatmul.f32.vlgmr.msrb.gmra.mxu1 %v4201_v25 }
0x1064   : > { %4469 = vmatmul.f32.vlgmr.msrb.gmra.mxu0 %v4201_v25 }
0x10d1   : > { %v4308_v62 = vpop.f32.mrf.mxu1 }
0x10d9   : > { %v4207_v12 = vpop.f32.mrf.mxu0  ;;  %v4362_v23 = vpop.f32.mrf.mxu2 }
0x10da   : > { %v4208_v33 = vadd.f32 %v4207_v12, %v4168_v4  ;;  %v4507_v45 = vpop.f32.mrf.mxu1 }
0x10db   : > { %v4401_v29 = vpop.f32.mrf.mxu3 }
0x10dc   : > { %v4309_v21 = vadd.f32 %v4308_v62, %v4208_v33  ;;  %v4737_v33 = vld [vmem:[%s6418_s8 + $0x10] sm:$0xff] }
0x10de   : > { %v4363_v34 = vadd.f32 %v4362_v23, %v4309_v21  ;;  %v4758_v23 = vand.u32 4294901760, %v4737_v33 }
0x10e0   : > { %v4402_v59 = vadd.f32 %v4401_v29, %v4363_v34  ;;  %v4736_v34 = vld [vmem:[%s6418_s8 + $0x8] sm:$0xff] }
0x10e1   : > { %v4470_v1 = vpop.f32.mrf.mxu0 }
0x10e2   : > { %v4471_v54 = vadd.f32 %v4470_v1, %v4402_v59  ;;  %v4792_v59 = vsub.f32 %v4737_v33, %v4758_v23  ;;  %v4760_v1 = vand.u32 4294901760, %v4736_v34 }
0x10e4   : > { %v4508_v52 = vadd.f32 %v4507_v45, %v4471_v54  ;;  %v4735_v54 = vld [vmem:[%s6418_s8] sm:$0xff] }
0x10e6   : > { %v4510_v51 = vadd.f32 %v4508_v52, %v6095_v42  ;;  %v4539_v42 = vld [vmem:[%s6417_s7 + $0x10] sm:$0xff]  ;;  %v4793_v52 = vand.u32 4294901760, %v4792_v59 }
0x10e7   : > { %v4561_v27 = vand.u32 4294901760, %v4539_v42 }
0x10e8   : > { %v4511_v2 = vsel %vm503_vm0, %v4510_v51, 0.0 }
0x10e9   : > { %4512 = vadd.xlane.f32.xlu2 %v4511_v2  ;;  %v6340_v16 = vsub.f32 %v4539_v42, %v4561_v27  ;;  %4562 = vmatpush.msra.mxu2 %v4561_v27  ;;  %v4762_v2 = vand.u32 4294901760, %v4735_v54 }
0x10eb   : > { %v4596_v19 = vand.u32 4294901760, %v6340_v16  ;;  %4564 = vmatpush.msra.mxu2 %v4563_v30 }
0x10ed   : > { %v4597_v41 = vsub.f32 %v6340_v16, %v4596_v19  ;;  %4566 = vmatpush.msra.mxu2 %v4565_v9 }
0x10ef   : > { %4631 = vmatpush.msrb.mxu2 %v6334_v37  ;;  %v4598_v58 = vand.u32 4294901760, %v4597_v41 }
0x10f1   : > { %4634 = vmatpush.msrb.mxu2 %v6340_v16  ;;  %4599 = vmatpush.msra.mxu3 %v4598_v58  ;;  %v5163_v16 = vld [vmem:[%s6416_s6] sm:$0xff] }
0x10f3   : > { %4637 = vmatpush.msrb.mxu2 %v4601_v18  ;;  %4605 = vmatpush.msra.mxu3 %v4604_v32 }
0x10f5   : > { %4640 = vmatpush.msrb.mxu2 %v4607_v38  ;;  %4611 = vmatpush.msra.mxu3 %v4610_v11 }
0x10f7   : > { %4660 = vmatpush.msrb.mxu3 %v4559_v35 }
0x10f9   : > { %4662 = vmatpush.msrb.mxu3 %v4561_v27 }
0x10fb   : > { %4664 = vmatpush.msrb.mxu3 %v4563_v30 }
0x10fd   : > { %4666 = vmatpush.msrb.mxu3 %v4565_v9 }
0x115c   : > { %v4513_v53 = vpop.xlane.xlu2 %4512 }
0x115d   : > { %v4514_v50 = vmul.f32 %v4513_v53, %v5369_v8 }
0x115f   : > { %v4515_v5 = vsub.f32 %v4510_v51, %v4514_v50  ;;  %v4798_v51 = vsub.f32 %v4736_v34, %v4760_v1  ;;  %v4794_v50 = vsub.f32 %v4792_v59, %v4793_v52 }
0x1161   : > { %v4516_v20 = vmul.f32 %v4515_v5, %v4515_v5 }
0x1163   : > { %v4517_v31 = vsel %vm503_vm0, %v4516_v20, 0.0  ;;  %v4804_v20 = vsub.f32 %v4735_v54, %v4762_v2 }
0x1164   : > { %4518 = vadd.xlane.f32.xlu1 %v4517_v31  ;;  %v4795_v31 = vand.u32 4294901760, %v4794_v50 }
0x11d7   : > { %v4519_v15 = vpop.xlane.xlu1 %4518 }
0x11d8   : > { %v4520_v61 = vmul.f32 %v4519_v15, %v5369_v8  ;;  %v4535_v8 = vperm.slane %v6076_v55, 7  ;;  %v4738_v55 = vld [vmem:[%s6418_s8 + $0x18] sm:$0xff] }
0x11d9   : > { %v4756_v12 = vand.u32 4294901760, %v4738_v55 }
0x11da   : > { %v4521_v6 = vadd.f32 1e-12, %v4520_v61 }
0x11db   : > { %v4786_v21 = vsub.f32 %v4738_v55, %v4756_v12  ;;  %4857 = vmatpush.msra.mxu1 %v4756_v12 }
0x11dc   : > { %5152 = vrsqrt.f32 %v4521_v6  ;;  %vm4528_vm1 = vweird.f32 %v4521_v6 }
0x11dd   : > { %v4787_v29 = vand.u32 4294901760, %v4786_v21  ;;  %4828 = vmatpush.msra.mxu0 %v4786_v21  ;;  %4859 = vmatpush.msra.mxu1 %v4758_v23 }
0x11df   : > { %v4788_v45 = vsub.f32 %v4786_v21, %v4787_v29  ;;  %4831 = vmatpush.msra.mxu0 %v4792_v59  ;;  %4861 = vmatpush.msra.mxu1 %v4760_v1 }
0x11e1   : > { %v4789_v53 = vand.u32 4294901760, %v4788_v45  ;;  %4834 = vmatpush.msra.mxu0 %v4798_v51  ;;  %4863 = vmatpush.msra.mxu1 %v4762_v2 }
0x11e2   : > { %v5153_v22 = vpop.eup %5152 }
0x11e3   : > { %v4523_v47 = vmul.f32 %v5153_v22, %v4521_v6  ;;  %vm4529_vm15 = vweird.f32 %v5153_v22  ;;  %4837 = vmatpush.msra.mxu0 %v4804_v20 }
0x11e4   : > { %vm4530_vm2 = vmor %vm4528_vm1, %vm4529_vm15 }
0x11e5   : > { %v4524_v3 = vmul.f32 %v5153_v22, %v4523_v47  ;;  %v4739_v47 = vrot.slane %v5163_v16, 3 }
0x11e7   : > { %v4525_v28 = vmul.f32 0.5, %v4524_v3 }
0x11e9   : > { %v4526_v57 = vsub.f32 1.5, %v4525_v28 }
0x11eb   : > { %v4527_v46 = vmul.f32 %v5153_v22, %v4526_v57 }
0x11ed   : > { %v4531_v10 = vsel %vm4530_vm2, %v5153_v22, %v4527_v46 }
0x11ee   : > { %v4532_v49 = vmul.f32 %v4531_v10, %v4515_v5  ;;  %v4799_v5 = vand.u32 4294901760, %v4798_v51 }
0x11f0   : > { %v4534_v24 = vmul.f32 %v4533_v7, %v4532_v49  ;;  %v4800_v13 = vsub.f32 %v4798_v51, %v4799_v5 }
0x11f2   : > { %v4536_v25 = vadd.f32 %v4535_v8, %v4534_v24  ;;  %v4801_v42 = vand.u32 4294901760, %v4800_v13 }
0x11f4   : > { %v4545_v0 = vsel %vm503_vm0, %v4536_v25, 0 }
0x11f5   : > { %v4567_v36 = vand.u32 4294901760, %v4545_v0 }
0x11f7   : > { %v4568_v26 = vsub.f32 %v4545_v0, %v4567_v36  ;;  %4613 = vmatmul.f32.vlgmr.msra.gmra.mxu3 %v4567_v36 }
0x11f8   : > { %4720 = vmatpush.msra.mxu3 %v4559_v35  ;;  %v4805_v35 = vand.u32 4294901760, %v4804_v20 }
0x11f9   : > { %v4569_v40 = vand.u32 4294901760, %v4568_v26 }
0x11fa   : > { %4722 = vmatpush.msra.mxu3 %v4561_v27  ;;  %v4806_v37 = vsub.f32 %v4804_v20, %v4805_v35 }
0x11fb   : > { %v4570_v4 = vsub.f32 %v4568_v26, %v4569_v40 }
0x11fc   : > { %4724 = vmatpush.msra.mxu3 %v4563_v30  ;;  %v4807_v14 = vand.u32 4294901760, %v4806_v37  ;;  %v4542_v30 = vrot.slane %v5163_v16, 2 }
0x11fd   : > { %v4571_v62 = vand.u32 4294901760, %v4570_v4 }
0x11fe   : > { %4726 = vmatpush.msra.mxu3 %v4565_v9 }
0x11ff   : > { %4572 = vmatmul.f32.vlgmr.msra.gmra.mxu2 %v4571_v62  ;;  %4670 = vmatmul.f32.vlgmr.msrb.gmra.mxu3 %v4569_v40 }
0x1200   : > { %4689 = vmatpush.msra.mxu2 %v4590_v48  ;;  %4790 = vmatpush.msrb.mxu3 %v4789_v53 }
0x1202   : > { %4693 = vmatpush.msra.mxu2 %v4596_v19  ;;  %4796 = vmatpush.msrb.mxu3 %v4795_v31 }
0x1204   : > { %4697 = vmatpush.msra.mxu2 %v4602_v44  ;;  %4802 = vmatpush.msrb.mxu3 %v4801_v42 }
0x1206   : > { %4701 = vmatpush.msra.mxu2 %v4608_v60  ;;  %4808 = vmatpush.msrb.mxu3 %v4807_v14 }
0x1207   : > { %4643 = vmatmul.f32.vlgmr.msrb.gmra.mxu2 %v4568_v26  ;;  %4728 = vmatmul.f32.vlgmr.msra.gmra.mxu3 %v4567_v36 }
0x1208   : > { %4757 = vmatpush.msrb.mxu2 %v4756_v12  ;;  %4917 = vmatpush.msra.mxu3 %v4756_v12 }
0x120a   : > { %4759 = vmatpush.msrb.mxu2 %v4758_v23  ;;  %4919 = vmatpush.msra.mxu3 %v4758_v23 }
0x120c   : > { %4761 = vmatpush.msrb.mxu2 %v4760_v1  ;;  %4921 = vmatpush.msra.mxu3 %v4760_v1 }
0x120e   : > { %4763 = vmatpush.msrb.mxu2 %v4762_v2  ;;  %4923 = vmatpush.msra.mxu3 %v4762_v2 }
0x120f   : > { %4703 = vmatmul.f32.vlgmr.msra.gmra.mxu2 %v4567_v36 }
0x1210   : > { %4886 = vmatpush.msra.mxu2 %v4787_v29 }
0x1212   : > { %4890 = vmatpush.msra.mxu2 %v4793_v52 }
0x1214   : > { %4894 = vmatpush.msra.mxu2 %v4799_v5 }
0x1216   : > { %4898 = vmatpush.msra.mxu2 %v4805_v35 }
0x127a   : > { %v4614_v27 = vpop.f32.mrf.mxu3 }
0x1282   : > { %v4573_v48 = vpop.f32.mrf.mxu2  ;;  %v4671_v17 = vpop.f32.mrf.mxu3 }
0x1283   : > { %v4574_v43 = vadd.f32 %v4573_v48, %v4542_v30 }
0x1285   : > { %v4615_v18 = vadd.f32 %v4614_v27, %v4574_v43 }
0x128a   : > { %v4644_v19 = vpop.f32.mrf.mxu2  ;;  %v4729_v38 = vpop.f32.mrf.mxu3 }
0x128b   : > { %v4645_v9 = vadd.f32 %v4644_v19, %v4615_v18 }
0x128d   : > { %v4672_v63 = vadd.f32 %v4671_v17, %v4645_v9 }
0x1292   : > { %v4704_v41 = vpop.f32.mrf.mxu2 }
0x1293   : > { %v4705_v44 = vadd.f32 %v4704_v41, %v4672_v63 }
0x1295   : > { %v4730_v58 = vadd.f32 %v4729_v38, %v4705_v44 }
0x1297   : > { %5154 = vtanh.f32 %v4730_v58 }
0x129d   : > { %v5155_v60 = vpop.eup %5154 }
0x129e   : > { %v4734_v32 = vmul.f32 %v5155_v60, %v4733_v39 }
0x12a0   : > { %v4742_v56 = vsel %vm503_vm0, %v4734_v32, 0 }
0x12a1   : > { %v4764_v11 = vand.u32 4294901760, %v4742_v56 }
0x12a3   : > { %4810 = vmatmul.f32.vlgmr.msrb.gmra.mxu3 %v4764_v11  ;;  %v4765_v15 = vsub.f32 %v4742_v56, %v4764_v11 }
0x12a5   : > { %4840 = vmatmul.f32.vlgmr.msra.gmra.mxu0 %v4765_v15  ;;  %v4766_v61 = vand.u32 4294901760, %v4765_v15 }
0x12a7   : > { %4867 = vmatmul.f32.vlgmr.msra.gmra.mxu1 %v4766_v61  ;;  %v4767_v6 = vsub.f32 %v4765_v15, %v4766_v61 }
0x12a9   : > { %v4768_v22 = vand.u32 4294901760, %v4767_v6 }
0x12ab   : > { %4769 = vmatmul.f32.vlgmr.msrb.gmra.mxu2 %v4768_v22  ;;  %4925 = vmatmul.f32.vlgmr.msra.gmra.mxu3 %v4764_v11 }
0x12b3   : > { %4900 = vmatmul.f32.vlgmr.msra.gmra.mxu2 %v4764_v11 }
0x1322   : > { %v4841_v7 = vpop.f32.mrf.mxu0 }
0x1324   : > { %v4868_v8 = vpop.f32.mrf.mxu1 }
0x1326   : > { %v4811_v3 = vpop.f32.mrf.mxu3 }
0x132e   : > { %v4770_v28 = vpop.f32.mrf.mxu2  ;;  %v4926_v0 = vpop.f32.mrf.mxu3 }
0x132f   : > { %v4771_v57 = vadd.f32 %v4770_v28, %v4739_v47 }
0x1331   : > { %v4812_v46 = vadd.f32 %v4811_v3, %v4771_v57 }
0x1333   : > { %v4842_v10 = vadd.f32 %v4841_v7, %v4812_v46 }
0x1335   : > { %v4869_v49 = vadd.f32 %v4868_v8, %v4842_v10 }
0x1336   : > { %v4901_v24 = vpop.f32.mrf.mxu2 }
0x1337   : > { %v4902_v25 = vadd.f32 %v4901_v24, %v4869_v49 }
0x1339   : > { %v4927_v36 = vadd.f32 %v4926_v0, %v4902_v25 }
0x133b   : > { %v4929_v26 = vperm.slane %v4927_v36, 0 }
0x133d   : > { %4930 = vst [vmem:[%s480_s18] sm:$0xff] %v4929_v26 }
0x133e   : > { %5191 = shalt.err (!%p5188_p3)
}
0x133f   : > { %5063 = dma.vmem_to_hbm [thread:$0]  (%p5344_p5), %s4945_s26, 128, %s4947_s0, %s4932_s17  }
0x1340 PF: > { %p5069_p4 = scmp.ge.s32.totalorder %s5226_s16, 2  ;;  %s4958_s25 = sand.u32 1, %s5214_s29  }
0x1341   : > { %s4959_s22 = scalar_lea.sflag [#allocation3], %s4958_s25 }
0x1342   : > { %p5066_p7 = pnand %p5069_p4, %p5348_p6 }
0x1344   : > { %p5067_p8 = pneg %p5066_p7 }
0x1346   : > { %5209 = dma.done.wait (%p5067_p8), %s4959_s22, 128  }
0x1347   : > { %5211 = vsyncadd (%p5067_p8), %s4959_s22, 4294967168  ;;  %s6474_s1 = sld [smem:[#allocation5_spill]]  ;;  %p24_p9 = scmp.ge.s32.totalorder %s5331_s19, 4  }
0x1348   : > { %s6475_s29 = smov %s5218_s30  ;;  %s6476_s30 = smov %s5222_s15 }
0x1349   : > { %s6478_s16 = smov %s5331_s19  ;;  %26 = sbr.rel (!%p24_p9) target bundleno = 8 (0x8), region = 122 }
0x134d   : > { %s6477_s15 = smov %s6474_s1 }
0x134e   :  { %4965 = vsyncpa [#allocation3], 1 }
0x134f   :  { %4967 = vsyncpa [#allocation3 + $0x1], 1 }

</bundles_post_ra>
